<compile_context>
chip_gen: v7x
topology: tpu7x:2x2x1
jax: 0.10.0
libtpu: 0.0.40
codegen_flags: <defaults>
</compile_context>

<pallas_src>
import functools

import jax
import jax.numpy as jnp
from jax import lax
from jax.experimental import pallas as pl
from jax.experimental.pallas import tpu as pltpu


def _multiconv_kernel(cols1_ref, w1_ref, w2_ref, w3_ref, p_ref, o_ref,
                      pad_ref, col2_ref, *, B, H, W):
    # cols1_ref: (B*HW, 9*Cin)   bf16  conv1 im2col (built wrapper-side)
    # w1_ref:    (9*Cin, Cout)   bf16  3x3 conv #1 weights, tap-major
    # w2_ref:    (9*Cout, Cout)  bf16  3x3 conv #2 weights, tap-major
    # w3_ref:    (Cout, Cout)    f32   1x1 conv #3 weights
    # p_ref:     (8, Cout)       f32   rows: scale1, shift1, a1, scale2,
    #                                         shift2, a2, scale3, shift3
    # o_ref:     (B*HW, Cout)    f32   softmax output (lane-dense)
    # pad_ref:   (B*(H+2), W+2, Cout) bf16 scratch: zero-haloed conv1 act
    # col2_ref:  (B*HW, 9*Cout)  bf16 scratch: conv2 im2col
    Cout = o_ref.shape[-1]
    HW = H * W
    Hp, Wp = H + 2, W + 2

    scale1, shift1, a1 = p_ref[0:1, :], p_ref[1:2, :], p_ref[2:3, :]
    scale2, shift2, a2 = p_ref[3:4, :], p_ref[4:5, :], p_ref[5:6, :]
    scale3, shift3 = p_ref[6:7, :], p_ref[7:8, :]

    # --- conv1: 3x3 (Cin -> Cout) as one im2col matmul, K = 9*Cin ---------
    y = jnp.dot(cols1_ref[...], w1_ref[...],
                preferred_element_type=jnp.float32)
    y = y * scale1 + shift1               # conv bias + BatchNorm (eval) folded
    y = jnp.where(y >= 0.0, y, a1 * y)    # PReLU

    # --- zero-haloed bf16 intermediate for conv2 (halo strips only) -------
    pad_ref[:, 0:1, :] = jnp.zeros((B * Hp, 1, Cout), jnp.bfloat16)
    pad_ref[:, Wp - 1:Wp, :] = jnp.zeros((B * Hp, 1, Cout), jnp.bfloat16)
    y_bf = y.astype(jnp.bfloat16)         # single f32 -> bf16 cast
    for b in range(B):
        r0 = b * Hp
        pad_ref[r0:r0 + 1, :, :] = jnp.zeros((1, Wp, Cout), jnp.bfloat16)
        pad_ref[r0 + Hp - 1:r0 + Hp, :, :] = jnp.zeros((1, Wp, Cout),
                                                       jnp.bfloat16)
        pad_ref[r0 + 1:r0 + 1 + H, 1:1 + W, :] = (
            y_bf[b * HW:(b + 1) * HW].reshape(H, W, Cout))

    # --- conv2 im2col: paired taps -> 128-lane-aligned stores (Cout=64) ---
    for b in range(B):
        r0 = b * Hp

        def tap(k, r0=r0):
            dy, dx = k // 3, k % 3
            return pad_ref[r0 + dy:r0 + dy + H, dx:dx + W, :].reshape(HW, Cout)

        for k in range(0, 8, 2):
            slab = jnp.concatenate([tap(k), tap(k + 1)], axis=-1)  # (HW,2*Cout)
            col2_ref[b * HW:(b + 1) * HW, k * Cout:(k + 2) * Cout] = slab
        col2_ref[b * HW:(b + 1) * HW, 8 * Cout:9 * Cout] = tap(8)

    # --- conv2: 3x3 (Cout -> Cout) as one im2col matmul, K = 9*Cout -------
    y = jnp.dot(col2_ref[...], w2_ref[...], preferred_element_type=jnp.float32)
    y = y * scale2 + shift2
    y = jnp.where(y >= 0.0, y, a2 * y)    # PReLU

    # --- conv3: 1x1 (Cout -> Cout) + BatchNorm (kept f32) -----------------
    y = jnp.dot(y, w3_ref[...], preferred_element_type=jnp.float32)
    y = y * scale3 + shift3

    # --- Softmax2d: softmax over channels at every spatial location -------
    m = jnp.max(y, axis=-1, keepdims=True)
    e = jnp.exp(y - m)
    y = e * pl.reciprocal(jnp.sum(e, axis=-1, keepdims=True), approx=True)

    o_ref[...] = y


def multiconv(x_nhwc, w1_flat, w2_flat, w3, params, *, images_per_step=1):
    """x_nhwc: (N, H, W, Cin) float32 -> (N, H, W, Cout) float32.

    images_per_step: images per grid step.  Keep 1 on v7x (megacore splits the
    batch across TCs); use >=2 on single-TC v5e/v6e to raise the matmul M dim.
    """
    N, H, W, Cin = x_nhwc.shape
    Cout = w3.shape[-1]
    HW = H * W
    B = images_per_step
    assert N % B == 0

    # conv1 im2col hoisted to XLA (pure layout prep): (N*HW, 9*Cin), bf16,
    # tap-major with Cin innermost to match w1.reshape(9*Cin, Cout).
    xpad = jnp.pad(x_nhwc, ((0, 0), (1, 1), (1, 1), (0, 0)))
    cols1 = jnp.concatenate(
        [xpad[:, dy:dy + H, dx:dx + W, :].reshape(N, HW, Cin)
         for dy in range(3) for dx in range(3)],
        axis=-1).astype(jnp.bfloat16).reshape(N * HW, 9 * Cin)

    grid_spec = pltpu.PrefetchScalarGridSpec(
        num_scalar_prefetch=0,
        grid=(N // B,),
        in_specs=[
            pl.BlockSpec((B * HW, 9 * Cin), lambda n: (n, 0)),
            pl.BlockSpec((9 * Cin, Cout), lambda n: (0, 0)),
            pl.BlockSpec((9 * Cout, Cout), lambda n: (0, 0)),
            pl.BlockSpec((Cout, Cout), lambda n: (0, 0)),
            pl.BlockSpec((8, Cout), lambda n: (0, 0)),
        ],
        out_specs=pl.BlockSpec((B * HW, Cout), lambda n: (n, 0)),
        scratch_shapes=[
            pltpu.VMEM((B * (H + 2), W + 2, Cout), jnp.bfloat16),  # halo act1
            pltpu.VMEM((B * HW, 9 * Cout), jnp.bfloat16),          # conv2 col
        ],
    )
    out_flat = pl.pallas_call(
        functools.partial(_multiconv_kernel, B=B, H=H, W=W),
        out_shape=jax.ShapeDtypeStruct((N * HW, Cout), jnp.float32),
        grid_spec=grid_spec,
        compiler_params=pltpu.CompilerParams(
            dimension_semantics=("parallel",)),
    )(cols1,
      w1_flat.astype(jnp.bfloat16),
      w2_flat.astype(jnp.bfloat16),
      w3, params)
    return out_flat.reshape(N, H, W, Cout)


def _reference(x, w1, b1, w2, b2, w3, b3, bns, a1, a2):
    """Pure-JAX NHWC reference of the PyTorch forward (eval-mode BN)."""
    def conv(x, w, b, pad):
        y = lax.conv_general_dilated(
            x, w, window_strides=(1, 1), padding=[(pad, pad), (pad, pad)],
            dimension_numbers=("NHWC", "HWIO", "NHWC"))
        return y + b

    def bn(y, gamma, beta, mean, var, eps=1e-5):
        return (y - mean) / jnp.sqrt(var + eps) * gamma + beta

    def prelu(y, a):
        return jnp.where(y >= 0.0, y, a * y)

    y = prelu(bn(conv(x, w1, b1, 1), *bns[0]), a1)
    y = prelu(bn(conv(y, w2, b2, 1), *bns[1]), a2)
    y = bn(conv(y, w3.reshape(1, 1, *w3.shape), b3, 0), *bns[2])
    return jax.nn.softmax(y, axis=-1)   # Softmax2d == softmax over channels


if __name__ == "__main__":
    N, Hs, Ws = 2, 16, 16
    Cin, Cout = 4, 64          # BatchNorm2d(64) in the module forces out_ch == 64
    eps = 1e-5

    key = jax.random.PRNGKey(0)
    ks = jax.random.split(key, 16)

    # Conv weights (HWIO) + biases, deterministic synthetic init.
    w1 = 0.10 * jax.random.normal(ks[0], (3, 3, Cin, Cout), jnp.float32)
    b1 = 0.10 * jax.random.normal(ks[1], (Cout,), jnp.float32)
    w2 = 0.05 * jax.random.normal(ks[2], (3, 3, Cout, Cout), jnp.float32)
    b2 = 0.10 * jax.random.normal(ks[3], (Cout,), jnp.float32)
    w3 = 0.05 * jax.random.normal(ks[4], (Cout, Cout), jnp.float32)   # 1x1 conv
    b3 = 0.10 * jax.random.normal(ks[5], (Cout,), jnp.float32)

    # BatchNorm2d(64) eval-mode parameters (running_mean=0, running_var=1).
    bns = []
    for i in range(3):
        gamma = 1.0 + 0.1 * jax.random.normal(ks[6 + 2 * i], (Cout,), jnp.float32)
        beta = 0.1 * jax.random.normal(ks[7 + 2 * i], (Cout,), jnp.float32)
        mean = jnp.zeros((Cout,), jnp.float32)
        var = jnp.ones((Cout,), jnp.float32)
        bns.append((gamma, beta, mean, var))

    a1 = a2 = 0.25   # nn.PReLU() default single-parameter init

    # Fold conv bias + eval-mode BN into per-channel scale/shift.
    def fold(b, gamma, beta, mean, var):
        scale = gamma / jnp.sqrt(var + eps)
        shift = (b - mean) * scale + beta
        return scale, shift

    s1, t1 = fold(b1, *bns[0])
    s2, t2 = fold(b2, *bns[1])
    s3, t3 = fold(b3, *bns[2])
    params = jnp.stack([
        s1, t1, jnp.full((Cout,), a1, jnp.float32),
        s2, t2, jnp.full((Cout,), a2, jnp.float32),
        s3, t3,
    ])  # (8, Cout)

    w1_flat = w1.reshape(9 * Cin, Cout)     # tap-major [9*Cin, Cout]
    w2_flat = w2.reshape(9 * Cout, Cout)    # tap-major [9*Cout, Cout]

    # Input (NHWC; PyTorch NCHW (2,4,16,16) is just a transpose of this).
    x = jax.random.normal(ks[12], (N, Hs, Ws, Cin), jnp.float32)

    ref = _reference(x, w1, b1, w2, b2, w3, b3, bns, a1, a2)

    # v7x-style: one image per step, batch split across TensorCores.
    out1 = jax.block_until_ready(
        multiconv(x, w1_flat, w2_flat, w3, params, images_per_step=1))
    assert out1.shape == (N, Hs, Ws, Cout)
    assert bool(jnp.allclose(out1, ref, rtol=1.5e-2, atol=1.5e-3)), \
        "mismatch vs JAX reference (images_per_step=1)"

    # v5e/v6e-style: both images in one grid step (M = 2*HW per matmul).
    out2 = jax.block_until_ready(
        multiconv(x, w1_flat, w2_flat, w3, params, images_per_step=2))
    assert bool(jnp.allclose(out2, ref, rtol=1.5e-2, atol=1.5e-3)), \
        "mismatch vs JAX reference (images_per_step=2)"

    print("KERNEL_OK")
</pallas_src>

<mosaic_0001>
module attributes {stable_mosaic.version = 11 : i64} {
  func.func @_multiconv_kernel(%arg0: i32, %arg1: memref<256x36xbf16, #tpu.memory_space<vmem>>, %arg2: memref<36x64xbf16, #tpu.memory_space<vmem>>, %arg3: memref<576x64xbf16, #tpu.memory_space<vmem>>, %arg4: memref<64x64xf32, #tpu.memory_space<vmem>>, %arg5: memref<8x64xf32, #tpu.memory_space<vmem>>, %arg6: memref<256x64xf32, #tpu.memory_space<vmem>>, %arg7: memref<18x18x64xbf16, #tpu.memory_space<vmem>>, %arg8: memref<256x576xbf16, #tpu.memory_space<vmem>>) attributes {dimension_semantics = [#tpu.dimension_semantics<parallel>], iteration_bounds = array<i64: 2>, scalar_prefetch = 0 : i64, scratch_operands = 2 : i64, tpu.core_type = #tpu.core_type<tc>, window_params = [{transform_indices = @transform_0, window_bounds = array<i64: 256, 36>}, {pipeline_mode = #tpu.pipeline_mode<synchronous>, transform_indices = @transform_1, window_bounds = array<i64: 36, 64>}, {pipeline_mode = #tpu.pipeline_mode<synchronous>, transform_indices = @transform_2, window_bounds = array<i64: 576, 64>}, {pipeline_mode = #tpu.pipeline_mode<synchronous>, transform_indices = @transform_3, window_bounds = array<i64: 64, 64>}, {pipeline_mode = #tpu.pipeline_mode<synchronous>, transform_indices = @transform_4, window_bounds = array<i64: 8, 64>}, {transform_indices = @transform_5, window_bounds = array<i64: 256, 64>}]} {
    %c0 = arith.constant 0 : index
    %c0_0 = arith.constant 0 : index
    %0 = vector.load %arg5[%c0, %c0_0] : memref<8x64xf32, #tpu.memory_space<vmem>>, vector<1x64xf32>
    %c1 = arith.constant 1 : index
    %c0_1 = arith.constant 0 : index
    %1 = vector.load %arg5[%c1, %c0_1] : memref<8x64xf32, #tpu.memory_space<vmem>>, vector<1x64xf32>
    %c2 = arith.constant 2 : index
    %c0_2 = arith.constant 0 : index
    %2 = vector.load %arg5[%c2, %c0_2] : memref<8x64xf32, #tpu.memory_space<vmem>>, vector<1x64xf32>
    %c3 = arith.constant 3 : index
    %c0_3 = arith.constant 0 : index
    %3 = vector.load %arg5[%c3, %c0_3] : memref<8x64xf32, #tpu.memory_space<vmem>>, vector<1x64xf32>
    %c4 = arith.constant 4 : index
    %c0_4 = arith.constant 0 : index
    %4 = vector.load %arg5[%c4, %c0_4] : memref<8x64xf32, #tpu.memory_space<vmem>>, vector<1x64xf32>
    %c5 = arith.constant 5 : index
    %c0_5 = arith.constant 0 : index
    %5 = vector.load %arg5[%c5, %c0_5] : memref<8x64xf32, #tpu.memory_space<vmem>>, vector<1x64xf32>
    %c6 = arith.constant 6 : index
    %c0_6 = arith.constant 0 : index
    %6 = vector.load %arg5[%c6, %c0_6] : memref<8x64xf32, #tpu.memory_space<vmem>>, vector<1x64xf32>
    %c7 = arith.constant 7 : index
    %c0_7 = arith.constant 0 : index
    %7 = vector.load %arg5[%c7, %c0_7] : memref<8x64xf32, #tpu.memory_space<vmem>>, vector<1x64xf32>
    %c0_8 = arith.constant 0 : index
    %c0_9 = arith.constant 0 : index
    %8 = vector.load %arg1[%c0_8, %c0_9] : memref<256x36xbf16, #tpu.memory_space<vmem>>, vector<256x36xbf16>
    %c0_10 = arith.constant 0 : index
    %c0_11 = arith.constant 0 : index
    %9 = vector.load %arg2[%c0_10, %c0_11] : memref<36x64xbf16, #tpu.memory_space<vmem>>, vector<36x64xbf16>
    %cst = arith.constant dense<0.000000e+00> : vector<256x64xf32>
    %10 = tpu.matmul %8, %9, %cst {dimension_numbers = #tpu.dot_dimension_numbers<[1], [0], [0], [1], [0, 0, 1, 1], [], []>} : vector<256x36xbf16>, vector<36x64xbf16>, vector<256x64xf32> -> vector<256x64xf32>
    %11 = vector.broadcast %0 : vector<1x64xf32> to vector<256x64xf32>
    %12 = arith.mulf %10, %11 : vector<256x64xf32>
    %13 = vector.broadcast %1 : vector<1x64xf32> to vector<256x64xf32>
    %14 = arith.addf %12, %13 : vector<256x64xf32>
    %cst_12 = arith.constant 0.000000e+00 : f32
    %15 = vector.broadcast %cst_12 : f32 to vector<256x64xf32>
    %16 = arith.cmpf oge, %14, %15 : vector<256x64xf32>
    %17 = vector.broadcast %2 : vector<1x64xf32> to vector<256x64xf32>
    %18 = arith.mulf %17, %14 : vector<256x64xf32>
    %19 = arith.select %16, %14, %18 : vector<256x64xi1>, vector<256x64xf32>
    %cst_13 = arith.constant 0.000000e+00 : bf16
    %20 = vector.broadcast %cst_13 : bf16 to vector<18x1x64xbf16>
    %c0_14 = arith.constant 0 : index
    %c0_15 = arith.constant 0 : index
    %c0_16 = arith.constant 0 : index
    %21 = vector.load %arg7[%c0_14, %c0_15, %c0_16] : memref<18x18x64xbf16, #tpu.memory_space<vmem>>, vector<18x1x64xbf16>
    tpu.vector_store %arg7[%c0_14, %c0_15, %c0_16], %20 {strides = array<i32>} : memref<18x18x64xbf16, #tpu.memory_space<vmem>>, vector<18x1x64xbf16>,
    %cst_17 = arith.constant 0.000000e+00 : bf16
    %22 = vector.broadcast %cst_17 : bf16 to vector<18x1x64xbf16>
    %c0_18 = arith.constant 0 : index
    %c17 = arith.constant 17 : index
    %c0_19 = arith.constant 0 : index
    %23 = vector.load %arg7[%c0_18, %c17, %c0_19] : memref<18x18x64xbf16, #tpu.memory_space<vmem>>, vector<18x1x64xbf16>
    tpu.vector_store %arg7[%c0_18, %c17, %c0_19], %22 {strides = array<i32>} : memref<18x18x64xbf16, #tpu.memory_space<vmem>>, vector<18x1x64xbf16>,
    %24 = arith.truncf %19 : vector<256x64xf32> to vector<256x64xbf16>
    %cst_20 = arith.constant 0.000000e+00 : bf16
    %25 = vector.broadcast %cst_20 : bf16 to vector<1x18x64xbf16>
    %c0_21 = arith.constant 0 : index
    %c0_22 = arith.constant 0 : index
    %c0_23 = arith.constant 0 : index
    %26 = vector.load %arg7[%c0_21, %c0_22, %c0_23] : memref<18x18x64xbf16, #tpu.memory_space<vmem>>, vector<1x18x64xbf16>
    tpu.vector_store %arg7[%c0_21, %c0_22, %c0_23], %25 {strides = array<i32>} : memref<18x18x64xbf16, #tpu.memory_space<vmem>>, vector<1x18x64xbf16>,
    %cst_24 = arith.constant 0.000000e+00 : bf16
    %27 = vector.broadcast %cst_24 : bf16 to vector<1x18x64xbf16>
    %c17_25 = arith.constant 17 : index
    %c0_26 = arith.constant 0 : index
    %c0_27 = arith.constant 0 : index
    %28 = vector.load %arg7[%c17_25, %c0_26, %c0_27] : memref<18x18x64xbf16, #tpu.memory_space<vmem>>, vector<1x18x64xbf16>
    tpu.vector_store %arg7[%c17_25, %c0_26, %c0_27], %27 {strides = array<i32>} : memref<18x18x64xbf16, #tpu.memory_space<vmem>>, vector<1x18x64xbf16>,
    %29 = vector.shape_cast %24 : vector<256x64xbf16> to vector<16x16x64xbf16>
    %c1_28 = arith.constant 1 : index
    %c1_29 = arith.constant 1 : index
    %c0_30 = arith.constant 0 : index
    %30 = vector.load %arg7[%c1_28, %c1_29, %c0_30] : memref<18x18x64xbf16, #tpu.memory_space<vmem>>, vector<16x16x64xbf16>
    tpu.vector_store %arg7[%c1_28, %c1_29, %c0_30], %29 {strides = array<i32>} : memref<18x18x64xbf16, #tpu.memory_space<vmem>>, vector<16x16x64xbf16>,
    %c0_31 = arith.constant 0 : index
    %c0_32 = arith.constant 0 : index
    %c0_33 = arith.constant 0 : index
    %31 = vector.load %arg7[%c0_31, %c0_32, %c0_33] : memref<18x18x64xbf16, #tpu.memory_space<vmem>>, vector<16x16x64xbf16>
    %32 = vector.shape_cast %31 : vector<16x16x64xbf16> to vector<256x64xbf16>
    %c0_34 = arith.constant 0 : index
    %c1_35 = arith.constant 1 : index
    %c0_36 = arith.constant 0 : index
    %33 = vector.load %arg7[%c0_34, %c1_35, %c0_36] : memref<18x18x64xbf16, #tpu.memory_space<vmem>>, vector<16x16x64xbf16>
    %34 = vector.shape_cast %33 : vector<16x16x64xbf16> to vector<256x64xbf16>
    %35 = tpu.concatenate %32, %34 in 1 : vector<256x64xbf16>, vector<256x64xbf16> -> vector<256x128xbf16>
    %c0_37 = arith.constant 0 : index
    %c0_38 = arith.constant 0 : index
    %36 = vector.load %arg8[%c0_37, %c0_38] : memref<256x576xbf16, #tpu.memory_space<vmem>>, vector<256x128xbf16>
    tpu.vector_store %arg8[%c0_37, %c0_38], %35 {strides = array<i32>} : memref<256x576xbf16, #tpu.memory_space<vmem>>, vector<256x128xbf16>,
    %c0_39 = arith.constant 0 : index
    %c2_40 = arith.constant 2 : index
    %c0_41 = arith.constant 0 : index
    %37 = vector.load %arg7[%c0_39, %c2_40, %c0_41] : memref<18x18x64xbf16, #tpu.memory_space<vmem>>, vector<16x16x64xbf16>
    %38 = vector.shape_cast %37 : vector<16x16x64xbf16> to vector<256x64xbf16>
    %c1_42 = arith.constant 1 : index
    %c0_43 = arith.constant 0 : index
    %c0_44 = arith.constant 0 : index
    %39 = vector.load %arg7[%c1_42, %c0_43, %c0_44] : memref<18x18x64xbf16, #tpu.memory_space<vmem>>, vector<16x16x64xbf16>
    %40 = vector.shape_cast %39 : vector<16x16x64xbf16> to vector<256x64xbf16>
    %41 = tpu.concatenate %38, %40 in 1 : vector<256x64xbf16>, vector<256x64xbf16> -> vector<256x128xbf16>
    %c0_45 = arith.constant 0 : index
    %c128 = arith.constant 128 : index
    %42 = vector.load %arg8[%c0_45, %c128] : memref<256x576xbf16, #tpu.memory_space<vmem>>, vector<256x128xbf16>
    tpu.vector_store %arg8[%c0_45, %c128], %41 {strides = array<i32>} : memref<256x576xbf16, #tpu.memory_space<vmem>>, vector<256x128xbf16>,
    %c1_46 = arith.constant 1 : index
    %c1_47 = arith.constant 1 : index
    %c0_48 = arith.constant 0 : index
    %43 = vector.load %arg7[%c1_46, %c1_47, %c0_48] : memref<18x18x64xbf16, #tpu.memory_space<vmem>>, vector<16x16x64xbf16>
    %44 = vector.shape_cast %43 : vector<16x16x64xbf16> to vector<256x64xbf16>
    %c1_49 = arith.constant 1 : index
    %c2_50 = arith.constant 2 : index
    %c0_51 = arith.constant 0 : index
    %45 = vector.load %arg7[%c1_49, %c2_50, %c0_51] : memref<18x18x64xbf16, #tpu.memory_space<vmem>>, vector<16x16x64xbf16>
    %46 = vector.shape_cast %45 : vector<16x16x64xbf16> to vector<256x64xbf16>
    %47 = tpu.concatenate %44, %46 in 1 : vector<256x64xbf16>, vector<256x64xbf16> -> vector<256x128xbf16>
    %c0_52 = arith.constant 0 : index
    %c256 = arith.constant 256 : index
    %48 = vector.load %arg8[%c0_52, %c256] : memref<256x576xbf16, #tpu.memory_space<vmem>>, vector<256x128xbf16>
    tpu.vector_store %arg8[%c0_52, %c256], %47 {strides = array<i32>} : memref<256x576xbf16, #tpu.memory_space<vmem>>, vector<256x128xbf16>,
    %c2_53 = arith.constant 2 : index
    %c0_54 = arith.constant 0 : index
    %c0_55 = arith.constant 0 : index
    %49 = vector.load %arg7[%c2_53, %c0_54, %c0_55] : memref<18x18x64xbf16, #tpu.memory_space<vmem>>, vector<16x16x64xbf16>
    %50 = vector.shape_cast %49 : vector<16x16x64xbf16> to vector<256x64xbf16>
    %c2_56 = arith.constant 2 : index
    %c1_57 = arith.constant 1 : index
    %c0_58 = arith.constant 0 : index
    %51 = vector.load %arg7[%c2_56, %c1_57, %c0_58] : memref<18x18x64xbf16, #tpu.memory_space<vmem>>, vector<16x16x64xbf16>
    %52 = vector.shape_cast %51 : vector<16x16x64xbf16> to vector<256x64xbf16>
    %53 = tpu.concatenate %50, %52 in 1 : vector<256x64xbf16>, vector<256x64xbf16> -> vector<256x128xbf16>
    %c0_59 = arith.constant 0 : index
    %c384 = arith.constant 384 : index
    %54 = vector.load %arg8[%c0_59, %c384] : memref<256x576xbf16, #tpu.memory_space<vmem>>, vector<256x128xbf16>
    tpu.vector_store %arg8[%c0_59, %c384], %53 {strides = array<i32>} : memref<256x576xbf16, #tpu.memory_space<vmem>>, vector<256x128xbf16>,
    %c2_60 = arith.constant 2 : index
    %c2_61 = arith.constant 2 : index
    %c0_62 = arith.constant 0 : index
    %55 = vector.load %arg7[%c2_60, %c2_61, %c0_62] : memref<18x18x64xbf16, #tpu.memory_space<vmem>>, vector<16x16x64xbf16>
    %56 = vector.shape_cast %55 : vector<16x16x64xbf16> to vector<256x64xbf16>
    %c0_63 = arith.constant 0 : index
    %c512 = arith.constant 512 : index
    %57 = vector.load %arg8[%c0_63, %c512] : memref<256x576xbf16, #tpu.memory_space<vmem>>, vector<256x64xbf16>
    tpu.vector_store %arg8[%c0_63, %c512], %56 {strides = array<i32>} : memref<256x576xbf16, #tpu.memory_space<vmem>>, vector<256x64xbf16>,
    %c0_64 = arith.constant 0 : index
    %c0_65 = arith.constant 0 : index
    %58 = vector.load %arg8[%c0_64, %c0_65] : memref<256x576xbf16, #tpu.memory_space<vmem>>, vector<256x576xbf16>
    %c0_66 = arith.constant 0 : index
    %c0_67 = arith.constant 0 : index
    %59 = vector.load %arg3[%c0_66, %c0_67] : memref<576x64xbf16, #tpu.memory_space<vmem>>, vector<576x64xbf16>
    %cst_68 = arith.constant dense<0.000000e+00> : vector<256x64xf32>
    %60 = tpu.matmul %58, %59, %cst_68 {dimension_numbers = #tpu.dot_dimension_numbers<[1], [0], [0], [1], [0, 0, 1, 1], [], []>} : vector<256x576xbf16>, vector<576x64xbf16>, vector<256x64xf32> -> vector<256x64xf32>
    %61 = vector.broadcast %3 : vector<1x64xf32> to vector<256x64xf32>
    %62 = arith.mulf %60, %61 : vector<256x64xf32>
    %63 = vector.broadcast %4 : vector<1x64xf32> to vector<256x64xf32>
    %64 = arith.addf %62, %63 : vector<256x64xf32>
    %cst_69 = arith.constant 0.000000e+00 : f32
    %65 = vector.broadcast %cst_69 : f32 to vector<256x64xf32>
    %66 = arith.cmpf oge, %64, %65 : vector<256x64xf32>
    %67 = vector.broadcast %5 : vector<1x64xf32> to vector<256x64xf32>
    %68 = arith.mulf %67, %64 : vector<256x64xf32>
    %69 = arith.select %66, %64, %68 : vector<256x64xi1>, vector<256x64xf32>
    %c0_70 = arith.constant 0 : index
    %c0_71 = arith.constant 0 : index
    %70 = vector.load %arg4[%c0_70, %c0_71] : memref<64x64xf32, #tpu.memory_space<vmem>>, vector<64x64xf32>
    %cst_72 = arith.constant dense<0.000000e+00> : vector<256x64xf32>
    %71 = tpu.matmul %69, %70, %cst_72 {dimension_numbers = #tpu.dot_dimension_numbers<[1], [0], [0], [1], [0, 0, 1, 1], [], []>} : vector<256x64xf32>, vector<64x64xf32>, vector<256x64xf32> -> vector<256x64xf32>
    %72 = vector.broadcast %6 : vector<1x64xf32> to vector<256x64xf32>
    %73 = arith.mulf %71, %72 : vector<256x64xf32>
    %74 = vector.broadcast %7 : vector<1x64xf32> to vector<256x64xf32>
    %75 = arith.addf %73, %74 : vector<256x64xf32>
    %cst_73 = arith.constant dense<0xFF800000> : vector<256xf32>
    %76 = vector.multi_reduction <maximumf>, %75, %cst_73 [1] : vector<256x64xf32> to vector<256xf32>
    %77 = vector.shape_cast %76 : vector<256xf32> to vector<256x1xf32>
    %78 = vector.broadcast %77 : vector<256x1xf32> to vector<256x64xf32>
    %79 = arith.subf %75, %78 : vector<256x64xf32>
    %80 = math.exp %79 : vector<256x64xf32>
    %cst_74 = arith.constant dense<0.000000e+00> : vector<256xf32>
    %81 = vector.multi_reduction <add>, %80, %cst_74 [1] : vector<256x64xf32> to vector<256xf32>
    %82 = vector.shape_cast %81 : vector<256xf32> to vector<256x1xf32>
    %83 = tpu.reciprocal %82 {approx = true} : vector<256x1xf32> -> vector<256x1xf32>
    %84 = vector.broadcast %83 : vector<256x1xf32> to vector<256x64xf32>
    %85 = arith.mulf %80, %84 : vector<256x64xf32>
    %c0_75 = arith.constant 0 : index
    %c0_76 = arith.constant 0 : index
    %86 = vector.load %arg6[%c0_75, %c0_76] : memref<256x64xf32, #tpu.memory_space<vmem>>, vector<256x64xf32>
    tpu.vector_store %arg6[%c0_75, %c0_76], %85 {strides = array<i32>} : memref<256x64xf32, #tpu.memory_space<vmem>>, vector<256x64xf32>,
    return
  }
  func.func @transform_0(%arg0: i32) -> (i32, i32) {
    %c0_i32 = arith.constant 0 : i32
    %c0_i32_0 = arith.constant 0 : i32
    return %arg0, %c0_i32 : i32, i32
  }
  func.func @transform_1(%arg0: i32) -> (i32, i32) {
    %c0_i32 = arith.constant 0 : i32
    %c0_i32_0 = arith.constant 0 : i32
    %c0_i32_1 = arith.constant 0 : i32
    return %c0_i32, %c0_i32_0 : i32, i32
  }
  func.func @transform_2(%arg0: i32) -> (i32, i32) {
    %c0_i32 = arith.constant 0 : i32
    %c0_i32_0 = arith.constant 0 : i32
    %c0_i32_1 = arith.constant 0 : i32
    return %c0_i32, %c0_i32_0 : i32, i32
  }
  func.func @transform_3(%arg0: i32) -> (i32, i32) {
    %c0_i32 = arith.constant 0 : i32
    %c0_i32_0 = arith.constant 0 : i32
    %c0_i32_1 = arith.constant 0 : i32
    return %c0_i32, %c0_i32_0 : i32, i32
  }
  func.func @transform_4(%arg0: i32) -> (i32, i32) {
    %c0_i32 = arith.constant 0 : i32
    %c0_i32_0 = arith.constant 0 : i32
    %c0_i32_1 = arith.constant 0 : i32
    return %c0_i32, %c0_i32_0 : i32, i32
  }
  func.func @transform_5(%arg0: i32) -> (i32, i32) {
    %c0_i32 = arith.constant 0 : i32
    %c0_i32_0 = arith.constant 0 : i32
    return %arg0, %c0_i32 : i32, i32
  }
}

</mosaic_0001>

<bundles_post_ra>
// kernel: tpu_custom_call.1
= control target key start
LH: loop header
LB: loop body
LE: loop exit
PB: predicated region body
PF: predicated region fallthrough
CT: control target
= control target key end

     0   :  { %s7454_s18 = smov 0   ;;  %s9917_s0 = inlined_call_operand.vmem [shape: bf16[512,36], index: 0, kind: input, shape index: {}]   ;;  %s9918_s1 = inlined_call_operand.vmem [shape: bf16[36,64], index: 1, kind: input, shape index: {}]   ;;  %s9919_s2 = inlined_call_operand.vmem [shape: bf16[576,64], index: 2, kind: input, shape index: {}]   ;;  %s9920_s3 = inlined_call_operand.vmem [shape: f32[64,64], index: 3, kind: input, shape index: {}]   ;;  %s9921_s4 = inlined_call_operand.vmem [shape: f32[8,64], index: 4, kind: input, shape index: {}]   ;;  %s9922_s5 = inlined_call_operand.vmem [shape: f32[512,64], index: 5, kind: output, shape index: {}]  }
   0x1 LB: > { %s6258_s19 = sadd.s32 4294967295, %s7420_s18   ;;  %p6262_p0 = scmp.ge.s32.totalorder %s7420_s18, 1  ;;  %s7420_s18 = sphi %s7454_s18, %s15_s18  }
   0x2   : > { %p188_p1 = scmp.lt.s32.totalorder %s7420_s18, 3 }
   0x4   : > { %p189_p2 = pnand %p6262_p0, %p188_p1 }
   0x6   : > { %192 = sbr.rel (%p189_p2) target bundleno = 1460 (0x5b4), region = 40 }
   0xd   : > { %v7131_v0 = vld [vmem:[%s9918_s1] sm:$0xff]   ;;  %v7132_v1 = vld [vmem:[%s9918_s1 + $0x8] sm:$0xff]   ;;  %s6263_s24 = sshll.u32 %s6258_s19, 5  ;;  %vm418_vm0 = vcmask 1041408   ;;  %vm369_vm1 = vcmask 293888   ;;  %vm755_vm2 = vcmask 516096  }
   0xe   : > { %6955 = vmatprep.subr.bf16.mxu0 %v7131_v0  ;;  %p217_p3 = scmp.lt.s32.totalorder %s6263_s24, 63  ;;  %7113 = vmatprep.subr.bf16.mxu1 %v7131_v0  ;;  %v7133_v2 = vld [vmem:[%s9918_s1 + $0x10] ss:$0 sps:$4 sm:$0x33]   ;;  %vm756_vm3 = vsmask.f32 256 }
   0xf   : > { %6956 = vmatpush3.bf16.msra.mxu0 %v7131_v0  ;;  %7116 = vmatpush3.bf16.msra.mxu1 %v7131_v0  ;;  %v420_v3 = vsel %vm418_vm0, %v7133_v2, 0  ;;  %vm7513_vm4 = vmand %vm755_vm2, %vm756_vm3  ;;  %v764_v21 = vld [vmem:[#allocation2 + $0x18] sm:$0x1]  ;;  %vm812_vm5 = vsmask.f32 7938  ;;  %vm884_vm7 = vcmask 519168  }
  0x10   : > { %6957 = vmatprep.subr.bf16.mxu0 %v7132_v1  ;;  %s10021_s24 = smov (!%p217_p3, %s6263_s24), 63  ;;  %7114 = vmatprep.subr.bf16.mxu1 %v7132_v1  ;;  %v765_v22 = vsel %vm7513_vm4, 0, %v764_v21  ;;  %v761_v23 = vld [vmem:[#allocation2 + $0xc] sm:$0x1]  ;;  %vm7521_vm6 = vmand %vm755_vm2, %vm812_vm5  ;;  %v820_v26 = vld [vmem:[#allocation2 + $0x20] sm:$0x1] }
  0x11   : > { %s6264_s27 = sshll.u32 %s10021_s24, 2  ;;  %766 = vst [vmem:[#allocation2 + $0x18] sm:$0x1] %v765_v22  ;;  %v762_v25 = vsel %vm7513_vm4, 0, %v761_v23  ;;  %v821_v27 = vsel %vm7521_vm6, 0, %v820_v26  ;;  %v9923_v40 = vmov 0  }
  0x12   : > { %s7477_s30 = scalar_lea.vmem %s9917_s0, %s6264_s27  ;;  %763 = vst [vmem:[#allocation2 + $0xc] sm:$0x1] %v762_v25  ;;  %v817_v28 = vld [vmem:[#allocation2 + $0x14] sm:$0x1]  ;;  %822 = vst [vmem:[#allocation2 + $0x20] sm:$0x1] %v821_v27 }
  0x13   : > { %6958 = vmatpush3.bf16.msra.mxu0 %v7132_v1  ;;  %7117 = vmatpush3.bf16.msra.mxu1 %v7132_v1  ;;  %v7134_v4 = vld [vmem:[%s7477_s30] sm:$0xff]   ;;  %v7135_v5 = vld [vmem:[%s7477_s30 + $0x8] sm:$0xff]   ;;  %v7136_v6 = vld [vmem:[%s7477_s30 + $0x10] sm:$0xff]   ;;  %v818_v29 = vsel %vm7521_vm6, 0, %v817_v28  ;;  %886 = vst.msk [vmem:[#allocation2 + $0x4] sm:$0xf] %vm884_vm7, %v9923_v40 }
  0x14   : > { %7119 = vmatprep.subr.msk.bf16.mxu0 %vm418_vm0, %v7133_v2  ;;  %7120 = vmatprep.subr.msk.bf16.mxu1 %vm418_vm0, %v7133_v2  ;;  %v7137_v7 = vld [vmem:[%s7477_s30 + $0x18] sm:$0xff]   ;;  %v7142_v8 = vld [vmem:[%s7477_s30 + $0x40] sm:$0xff]   ;;  %v7143_v9 = vld [vmem:[%s7477_s30 + $0x48] sm:$0xff]   ;;  %819 = vst [vmem:[#allocation2 + $0x14] sm:$0x1] %v818_v29  ;;  %s7423_s12 = smov 64  }
  0x15   : > { %6961 = vmatprep.mubr.msk.bf16.mxu0 %vm369_vm1, %v7134_v4  ;;  %6977 = vmatprep.mubr.msk.bf16.mxu1 %vm369_vm1, %v7142_v8  ;;  %v7144_v10 = vld [vmem:[%s7477_s30 + $0x50] sm:$0xff]   ;;  %v7138_v11 = vld [vmem:[%s7477_s30 + $0x20] sm:$0xff]   ;;  %v7145_v12 = vld [vmem:[%s7477_s30 + $0x58] sm:$0xff]   ;;  %891 = vst.msk [vmem:[#allocation2 + $0xd0] sm:$0xf] %vm884_vm7, %v9923_v40  ;;  %s6266_s6 = sshll.u32 %s10021_s24, 3 }
  0x16   : > { %v7146_v13 = vld [vmem:[%s7477_s30 + $0x60] sm:$0xff]   ;;  %v7139_v14 = vld [vmem:[%s7477_s30 + $0x28] sm:$0xff]   ;;  %v7140_v15 = vld [vmem:[%s7477_s30 + $0x30] sm:$0xff]   ;;  %vm1458_vm8 = vsmask.f32 3328  ;;  %s9816_s9 = scalar_lea.vmem %s9922_s5, %s6266_s6 }
  0x17   : > { %6960 = vmatpush3.bf16.msra.mxu0 %v420_v3  ;;  %7118 = vmatpush3.bf16.msra.mxu1 %v420_v3  ;;  %v7147_v16 = vld [vmem:[%s7477_s30 + $0x68] sm:$0xff]   ;;  %v7148_v17 = vld [vmem:[%s7477_s30 + $0x70] sm:$0xff]   ;;  %v7141_v18 = vld [vmem:[%s7477_s30 + $0x38] sm:$0xff]   ;;  %vm1459_vm9 = vsmask.f32 7440 }
  0x18   : > { %v7149_v19 = vld [vmem:[%s7477_s30 + $0x78] sm:$0xff]   ;;  %v770_v30 = vld [vmem:[#allocation2 + $0x30] sm:$0x1]  ;;  %v767_v32 = vld [vmem:[#allocation2 + $0x24] sm:$0x1] }
  0x19   : > { %v771_v31 = vsel %vm7513_vm4, 0, %v770_v30  ;;  %v768_v33 = vsel %vm7513_vm4, 0, %v767_v32  ;;  %v758_v34 = vld [vmem:[#allocation2] sm:$0x1]  ;;  %v826_v36 = vld [vmem:[#allocation2 + $0x38] sm:$0x1]  ;;  %vm7594_vm10 = vmor %vm1458_vm8, %vm1459_vm9 }
  0x1a   : > { %6962 = vmatmul.mubr.msk.bf16.vlgmr.msra.gmra.mrb[0].mxu0 %vm369_vm1, %v7135_v5  ;;  %6978 = vmatmul.mubr.msk.bf16.vlgmr.msra.gmra.mrb[0].mxu1 %vm369_vm1, %v7143_v9  ;;  %772 = vst [vmem:[#allocation2 + $0x30] sm:$0x1] %v771_v31  ;;  %769 = vst [vmem:[#allocation2 + $0x24] sm:$0x1] %v768_v33  ;;  %v759_v35 = vsel %vm7513_vm4, 0, %v758_v34  ;;  %v827_v38 = vsel %vm7521_vm6, 0, %v826_v36 }
  0x1b   : > { %6965 = vmatprep.mubr.msk.bf16.mxu0 %vm369_vm1, %v7136_v6  ;;  %6981 = vmatprep.mubr.msk.bf16.mxu1 %vm369_vm1, %v7144_v10  ;;  %v823_v37 = vld [vmem:[#allocation2 + $0x2c] sm:$0x1]  ;;  %760 = vst [vmem:[#allocation2] sm:$0x1] %v759_v35  ;;  %828 = vst [vmem:[#allocation2 + $0x38] sm:$0x1] %v827_v38 }
  0x1c   : > { %v824_v39 = vsel %vm7521_vm6, 0, %v823_v37  ;;  %885 = vst.msk [vmem:[#allocation2] sm:$0xf] %vm884_vm7, %v9923_v40  ;;  %v814_v41 = vld [vmem:[#allocation2 + $0x8] sm:$0x1]  ;;  %vm7644_vm0 = vmand %vm884_vm7, %vm812_vm5 }
  0x1d   : > { %825 = vst [vmem:[#allocation2 + $0x2c] sm:$0x1] %v824_v39  ;;  %v815_v42 = vsel %vm7521_vm6, 0, %v814_v41  ;;  %v773_v43 = vld [vmem:[#allocation2 + $0x3c] sm:$0x1] }
  0x1e   : > { %816 = vst [vmem:[#allocation2 + $0x8] sm:$0x1] %v815_v42  ;;  %v774_v44 = vsel %vm7513_vm4, 0, %v773_v43  ;;  %v776_v45 = vld [vmem:[#allocation2 + $0x48] sm:$0x1] }
  0x1f   : > { %888 = vst.msk [vmem:[#allocation2 + $0x8] sm:$0x1] %vm755_vm2, %v9923_v40  ;;  %775 = vst [vmem:[#allocation2 + $0x3c] sm:$0x1] %v774_v44  ;;  %v777_v46 = vsel %vm7513_vm4, 0, %v776_v45 }
  0x20   : > { %778 = vst [vmem:[#allocation2 + $0x48] sm:$0x1] %v777_v46  ;;  %v832_v47 = vld [vmem:[#allocation2 + $0x50] sm:$0x1]  ;;  %v829_v49 = vld [vmem:[#allocation2 + $0x44] sm:$0x1] }
  0x21   : > { %v833_v48 = vsel %vm7521_vm6, 0, %v832_v47  ;;  %v830_v50 = vsel %vm7521_vm6, 0, %v829_v49  ;;  %v779_v51 = vld [vmem:[#allocation2 + $0x54] sm:$0x1]  ;;  %v782_v53 = vld [vmem:[#allocation2 + $0x60] sm:$0x1] }
  0x22   : > { %6966 = vmatmul.mubr.msk.bf16.gmra.mrb[4].mxu0 %vm369_vm1, %v7137_v7  ;;  %6982 = vmatmul.mubr.msk.bf16.gmra.mrb[4].mxu1 %vm369_vm1, %v7145_v12  ;;  %834 = vst [vmem:[#allocation2 + $0x50] sm:$0x1] %v833_v48  ;;  %831 = vst [vmem:[#allocation2 + $0x44] sm:$0x1] %v830_v50  ;;  %v780_v52 = vsel %vm7513_vm4, 0, %v779_v51  ;;  %v783_v54 = vsel %vm7513_vm4, 0, %v782_v53 }
  0x23   : > { %6969 = vmatprep.mubr.msk.bf16.mxu0 %vm369_vm1, %v7138_v11  ;;  %6985 = vmatprep.mubr.msk.bf16.mxu1 %vm369_vm1, %v7146_v13  ;;  %781 = vst [vmem:[#allocation2 + $0x54] sm:$0x1] %v780_v52  ;;  %784 = vst [vmem:[#allocation2 + $0x60] sm:$0x1] %v783_v54  ;;  %v838_v55 = vld [vmem:[#allocation2 + $0x68] sm:$0x1] }
  0x24   : > { %v835_v56 = vld [vmem:[#allocation2 + $0x5c] sm:$0x1]  ;;  %v839_v57 = vsel %vm7521_vm6, 0, %v838_v55  ;;  %v785_v59 = vld [vmem:[#allocation2 + $0x6c] sm:$0x1] }
  0x25   : > { %v836_v58 = vsel %vm7521_vm6, 0, %v835_v56  ;;  %840 = vst [vmem:[#allocation2 + $0x68] sm:$0x1] %v839_v57  ;;  %v786_v60 = vsel %vm7513_vm4, 0, %v785_v59  ;;  %v788_v61 = vld [vmem:[#allocation2 + $0x78] sm:$0x1] }
  0x26   : > { %837 = vst [vmem:[#allocation2 + $0x5c] sm:$0x1] %v836_v58  ;;  %787 = vst [vmem:[#allocation2 + $0x6c] sm:$0x1] %v786_v60  ;;  %v789_v62 = vsel %vm7513_vm4, 0, %v788_v61 }
  0x27   : > { %790 = vst [vmem:[#allocation2 + $0x78] sm:$0x1] %v789_v62  ;;  %v844_v63 = vld [vmem:[#allocation2 + $0x80] sm:$0x1]  ;;  %v841_v0 = vld [vmem:[#allocation2 + $0x74] sm:$0x1] }
  0x28   : > { %v845_v1 = vsel %vm7521_vm6, 0, %v844_v63  ;;  %v842_v2 = vsel %vm7521_vm6, 0, %v841_v0  ;;  %v794_v3 = vld [vmem:[#allocation2 + $0x90] sm:$0x1]  ;;  %v791_v5 = vld [vmem:[#allocation2 + $0x84] sm:$0x1] }
  0x29   : > { %846 = vst [vmem:[#allocation2 + $0x80] sm:$0x1] %v845_v1  ;;  %843 = vst [vmem:[#allocation2 + $0x74] sm:$0x1] %v842_v2  ;;  %v795_v4 = vsel %vm7513_vm4, 0, %v794_v3  ;;  %v792_v6 = vsel %vm7513_vm4, 0, %v791_v5 }
  0x2a   : > { %6970 = vmatmul.mubr.msk.bf16.gmra.mrb[8].mxu0 %vm369_vm1, %v7139_v14  ;;  %6986 = vmatmul.mubr.msk.bf16.gmra.mrb[8].mxu1 %vm369_vm1, %v7147_v16  ;;  %796 = vst [vmem:[#allocation2 + $0x90] sm:$0x1] %v795_v4  ;;  %v850_v7 = vld [vmem:[#allocation2 + $0x98] sm:$0x1]  ;;  %793 = vst [vmem:[#allocation2 + $0x84] sm:$0x1] %v792_v6 }
  0x2b   : > { %6973 = vmatprep.mubr.msk.bf16.mxu0 %vm369_vm1, %v7140_v15  ;;  %6989 = vmatprep.mubr.msk.bf16.mxu1 %vm369_vm1, %v7148_v17  ;;  %v851_v8 = vsel %vm7521_vm6, 0, %v850_v7  ;;  %v847_v9 = vld [vmem:[#allocation2 + $0x8c] sm:$0x1]  ;;  %v1410_v11 = vld [vmem:[#allocation2] sm:$0xf] }
  0x2c   : > { %852 = vst [vmem:[#allocation2 + $0x98] sm:$0x1] %v851_v8  ;;  %v848_v10 = vsel %vm7521_vm6, 0, %v847_v9  ;;  %v1411_v12 = vld [vmem:[#allocation2 + $0x4] sm:$0xf]  ;;  %v1462_v13 = vshrl.u32 %v1410_v11, 16 }
  0x2d   : > { %849 = vst [vmem:[#allocation2 + $0x8c] sm:$0x1] %v848_v10  ;;  %v1465_v14 = vshll.u32 %v1410_v11, 16  ;;  %v1471_v15 = vshll.u32 %v1411_v12, 16  ;;  %v1475_v16 = vshrl.u32 %v1411_v12, 16 }
  0x2e   : > { %v800_v17 = vld [vmem:[#allocation2 + $0xa8] sm:$0x1]  ;;  %v797_v26 = vld [vmem:[#allocation2 + $0x9c] sm:$0x1]  ;;  %v856_v31 = vld [vmem:[#allocation2 + $0xb0] sm:$0x1] }
  0x2f   : > { %v1467_v21 = vrot.slane %v1465_v14, 5  ;;  %v1473_v22 = vrot.slane %v1471_v15, 5  ;;  %v1477_v23 = vrot.slane %v1475_v16, 4  ;;  %v1442_v25 = vld [vmem:[#allocation2 + $0x8] sm:$0x1]  ;;  %v798_v30 = vsel %vm7513_vm4, 0, %v797_v26 }
  0x30   : > { %v1481_v29 = vshll.u32 %v1442_v25, 16  ;;  %799 = vst [vmem:[#allocation2 + $0x9c] sm:$0x1] %v798_v30  ;;  %v857_v32 = vsel %vm7521_vm6, 0, %v856_v31  ;;  %v7592_v33 = vld [vmem:[%s9921_s4] ss:$0 sm:$0xff] }
  0x31   : > { %v1478_v28 = vor.u32 %v1477_v23, %v1473_v22  ;;  %858 = vst [vmem:[#allocation2 + $0xb0] sm:$0x1] %v857_v32  ;;  %v853_v37 = vld [vmem:[#allocation2 + $0xa4] sm:$0x1]  ;;  %v7603_v41 = vld [vmem:[%s9921_s4 + $0x1] ss:$0 sm:$0xff] }
  0x32   : > { %6974 = vmatmul.mubr.msk.bf16.gmra.mrb[12].mxu0 %vm369_vm1, %v7141_v18  ;;  %6990 = vmatmul.mubr.msk.bf16.gmra.mrb[12].mxu1 %vm369_vm1, %v7149_v19  ;;  %v801_v18 = vsel %vm7513_vm4, 0, %v800_v17  ;;  %v1464_v19 = vrot.slane %v1462_v13, 4  ;;  %v1483_v36 = vrot.slane %v1481_v29, 5  ;;  %v854_v39 = vsel %vm7521_vm6, 0, %v853_v37  ;;  %v7609_v45 = vld [vmem:[%s9921_s4 + $0x2] ss:$0 sm:$0xff] }
  0x33   : > { %802 = vst [vmem:[#allocation2 + $0xa8] sm:$0x1] %v801_v18  ;;  %v1479_v35 = vrot.slane %v1478_v28, 4  ;;  %855 = vst [vmem:[#allocation2 + $0xa4] sm:$0x1] %v854_v39 }
  0x34   : > { %v1468_v27 = vor.u32 %v1467_v21, %v1464_v19  ;;  %vm973_vm11 = vsmask.f32 4368  ;;  %v1305_v26 = vld [vmem:[#allocation2 + $0x18] sm:$0xf]  ;;  %v1298_v39 = vld [vmem:[#allocation2 + $0xc] sm:$0xf] }
  0x35   : > { %v1484_v49 = vsel %vm7594_vm10, %v1479_v35, %v1483_v36  ;;  %vm7655_vm5 = vmor %vm756_vm3, %vm973_vm11 }
  0x36   : > { %v1469_v34 = vrot.slane %v1468_v27, 4 }
  0x38   : > { %v1474_v48 = vsel %vm7594_vm10, %v1469_v34, %v1473_v22 }
  0x39   : > { %v7622_v58 = vcombine.low %v1474_v48, %v1484_v49  ;;  %v1309_v49 = vld [vmem:[#allocation2 + $0x20] sm:$0x1] }
  0xed   : > { %v6963_v42 = vpop.f32.mrb[0].mxu0  ;;  %v6979_v57 = vpop.f32.mrb[0].mxu1 }
  0xee   : > { %v589_v43 = vmul.f32 %v6963_v42, %v7592_v33  ;;  %v456_v44 = vpop.f32.mrb[1].mxu0  ;;  %v605_v61 = vmul.f32 %v6979_v57, %v7592_v33  ;;  %v520_v62 = vpop.f32.mrb[1].mxu1 }
  0xef   : > { %v587_v46 = vmul.f32 %v7592_v33, %v456_v44  ;;  %v6964_v47 = vpop.f32.mrb[2].mxu0  ;;  %v7629_v1 = vmul.f32 %v7592_v33, %v520_v62  ;;  %v7631_v2 = vpop.f32.mrb[2].mxu1 }
  0xf0   : > { %v625_v50 = vadd.f32 %v7603_v41, %v589_v43  ;;  %v590_v51 = vmul.f32 %v6964_v47, %v7592_v33  ;;  %v459_v52 = vpop.f32.mrb[3].mxu0  ;;  %v7634_v7 = vpop.f32.mrb[3].mxu1  ;;  %v7638_v12 = vadd.f32 %v7603_v41, %v605_v61 }
  0xf1   : > { %v623_v53 = vadd.f32 %v7603_v41, %v587_v46  ;;  %v588_v54 = vmul.f32 %v7592_v33, %v459_v52 }
  0xf2   : > { %vm657_vm12 = vcmp.ge.f32.partialorder %v625_v50, 0.0  ;;  %v693_v55 = vmul.f32 %v7609_v45, %v625_v50  ;;  %v626_v56 = vadd.f32 %v7603_v41, %v590_v51 }
  0xf3   : > { %vm655_vm13 = vcmp.ge.f32.partialorder %v623_v53, 0.0  ;;  %v691_v59 = vmul.f32 %v7609_v45, %v623_v53  ;;  %v624_v60 = vadd.f32 %v7603_v41, %v588_v54 }
  0xf4   : > { %v725_v63 = vsel %vm657_vm12, %v625_v50, %v693_v55  ;;  %vm658_vm14 = vcmp.ge.f32.partialorder %v626_v56, 0.0  ;;  %v694_v0 = vmul.f32 %v7609_v45, %v626_v56 }
  0xf5   : > { %v6622_v3 = vpack.c.bf16 %v725_v63, %v725_v63  ;;  %v723_v4 = vsel %vm655_vm13, %v623_v53, %v691_v59  ;;  %vm656_vm15 = vcmp.ge.f32.partialorder %v624_v60, 0.0  ;;  %v692_v5 = vmul.f32 %v7609_v45, %v624_v60  ;;  %v6967_v6 = vpop.f32.mrb[4].mxu0  ;;  %v7648_v35 = vpop.f32.mrb[4].mxu1 }
  0xf6   : > { %v6620_v8 = vpack.c.bf16 %v723_v4, %v723_v4  ;;  %v726_v9 = vsel %vm658_vm14, %v626_v56, %v694_v0  ;;  %v593_v10 = vmul.f32 %v6967_v6, %v7592_v33  ;;  %v472_v11 = vpop.f32.mrb[5].mxu0  ;;  %v7651_v44 = vpop.f32.mrb[5].mxu1  ;;  %v1302_v56 = vld [vmem:[#allocation2 + $0x14] sm:$0x1] }
  0xf7   : > { %v993_v13 = vshrl.u32 %v6622_v3, 16  ;;  %v996_v14 = vshll.u32 %v6622_v3, 16  ;;  %v6623_v15 = vpack.c.bf16 %v726_v9, %v726_v9  ;;  %v724_v16 = vsel %vm656_vm15, %v624_v60, %v692_v5  ;;  %v6968_v17 = vpop.f32.mrb[6].mxu0  ;;  %v7660_v52 = vpop.f32.mrb[6].mxu1 }
  0xf8   : > { %v976_v18 = vshrl.u32 %v6620_v8, 16  ;;  %v979_v19 = vshll.u32 %v6620_v8, 16  ;;  %v6621_v21 = vpack.c.bf16 %v724_v16, %v724_v16  ;;  %v629_v22 = vadd.f32 %v7603_v41, %v593_v10  ;;  %v475_v23 = vpop.f32.mrb[7].mxu0  ;;  %v7665_v60 = vpop.f32.mrb[7].mxu1 }
  0xf9   : > { %v995_v25 = vrot.slane %v993_v13, 7  ;;  %v1001_v27 = vshrl.u32 %v6623_v15, 16  ;;  %v1004_v28 = vshll.u32 %v6623_v15, 16  ;;  %v591_v29 = vmul.f32 %v7592_v33, %v472_v11 }
  0xfa   : > { %v978_v31 = vrot.slane %v976_v18, 7  ;;  %v984_v32 = vshrl.u32 %v6621_v21, 16  ;;  %v987_v34 = vshll.u32 %v6621_v21, 16  ;;  %vm661_vm1 = vcmp.ge.f32.partialorder %v629_v22, 0.0 }
  0xfb   : > { %v998_v36 = vor.u32 %v996_v14, %v995_v25  ;;  %v999_v37 = vrot.slane %v995_v25, 4  ;;  %v1003_v42 = vrot.slane %v1001_v27, 7  ;;  %v697_v43 = vmul.f32 %v7609_v45, %v629_v22 }
  0xfc   : > { %v981_v46 = vor.u32 %v979_v19, %v978_v31  ;;  %v982_v47 = vrot.slane %v978_v31, 4  ;;  %v986_v50 = vrot.slane %v984_v32, 7  ;;  %v627_v51 = vadd.f32 %v7603_v41, %v591_v29 }
  0xfd   : > { %v1306_v53 = vsel %vm7644_vm0, %v998_v36, %v1305_v26  ;;  %v1006_v54 = vor.u32 %v1004_v28, %v1003_v42  ;;  %v1008_v55 = vrot.slane %v1003_v42, 4  ;;  %v729_v57 = vsel %vm661_vm1, %v629_v22, %v697_v43  ;;  %v6971_v59 = vpop.f32.mrb[8].mxu0  ;;  %v7687_v27 = vpop.f32.mrb[8].mxu1  ;;  %v1319_v28 = vld [vmem:[#allocation2 + $0x30] sm:$0xf] }
  0xfe   : > { %1307 = vst [vmem:[#allocation2 + $0x18] sm:$0xf] %v1306_v53  ;;  %v1299_v61 = vsel %vm7644_vm0, %v981_v46, %v1298_v39  ;;  %v989_v62 = vor.u32 %v987_v34, %v986_v50  ;;  %v991_v63 = vrot.slane %v986_v50, 4  ;;  %v6626_v0 = vpack.c.bf16 %v729_v57, %v729_v57  ;;  %v488_v3 = vpop.f32.mrb[9].mxu0  ;;  %v7693_v32 = vpop.f32.mrb[9].mxu1 }
  0xff   : > { %1300 = vst [vmem:[#allocation2 + $0xc] sm:$0xf] %v1299_v61  ;;  %v1007_v4 = vsel %vm7655_vm5, %v999_v37, %v1006_v54  ;;  %v1310_v5 = vsel %vm7513_vm4, %v1008_v55, %v1309_v49  ;;  %vm659_vm3 = vcmp.ge.f32.partialorder %v627_v51, 0.0  ;;  %v695_v6 = vmul.f32 %v7609_v45, %v627_v51  ;;  %v6972_v8 = vpop.f32.mrb[10].mxu0  ;;  %v7697_v42 = vpop.f32.mrb[10].mxu1 }
 0x100   : > { %1308 = vst.msk [vmem:[#allocation2 + $0x1c] sm:$0xf] %vm884_vm7, %v1007_v4  ;;  %1311 = vst [vmem:[#allocation2 + $0x20] sm:$0x1] %v1310_v5  ;;  %v990_v9 = vsel %vm7655_vm5, %v982_v47, %v989_v62  ;;  %v1303_v10 = vsel %vm7513_vm4, %v991_v63, %v1302_v56  ;;  %v1027_v11 = vshrl.u32 %v6626_v0, 16  ;;  %v1030_v13 = vshll.u32 %v6626_v0, 16 }
 0x101   : > { %v491_v14 = vpop.f32.mrb[11].mxu0  ;;  %1301 = vst.msk [vmem:[#allocation2 + $0x10] sm:$0xf] %vm884_vm7, %v990_v9  ;;  %1304 = vst [vmem:[#allocation2 + $0x14] sm:$0x1] %v1303_v10  ;;  %v727_v15 = vsel %vm659_vm3, %v627_v51, %v695_v6  ;;  %v594_v16 = vmul.f32 %v6968_v17, %v7592_v33  ;;  %v592_v18 = vmul.f32 %v7592_v33, %v475_v23  ;;  %v7701_v49 = vpop.f32.mrb[11].mxu1 }
 0x102   : > { %v597_v19 = vmul.f32 %v6971_v59, %v7592_v33  ;;  %v7683_v21 = vrot.slane %v1027_v11, 7  ;;  %v6624_v22 = vpack.c.bf16 %v727_v15, %v727_v15  ;;  %v595_v25 = vmul.f32 %v7592_v33, %v488_v3  ;;  %v1312_v55 = vld [vmem:[#allocation2 + $0x24] sm:$0xf] }
 0x103   : > { %v598_v26 = vmul.f32 %v6972_v8, %v7592_v33  ;;  %v630_v29 = vadd.f32 %v7603_v41, %v594_v16  ;;  %v628_v31 = vadd.f32 %v7603_v41, %v592_v18  ;;  %v596_v23 = vmul.f32 %v7592_v33, %v491_v14 }
 0x104   : > { %v633_v17 = vadd.f32 %v7603_v41, %v597_v19  ;;  %v1032_v34 = vor.u32 %v1030_v13, %v7683_v21  ;;  %v1033_v36 = vrot.slane %v7683_v21, 4  ;;  %v1010_v37 = vshrl.u32 %v6624_v22, 16 }
 0x105   : > { %v1013_v39 = vshll.u32 %v6624_v22, 16  ;;  %vm662_vm8 = vcmp.ge.f32.partialorder %v630_v29, 0.0  ;;  %v698_v43 = vmul.f32 %v7609_v45, %v630_v29  ;;  %vm660_vm9 = vcmp.ge.f32.partialorder %v628_v31, 0.0  ;;  %v6975_v47 = vpop.f32.mrb[12].mxu0  ;;  %v7720_v16 = vpop.f32.mrb[12].mxu1 }
 0x106   : > { %v696_v46 = vmul.f32 %v7609_v45, %v628_v31  ;;  %v1320_v50 = vsel %vm7644_vm0, %v1032_v34, %v1319_v28  ;;  %v1012_v51 = vrot.slane %v1010_v37, 7  ;;  %vm665_vm11 = vcmp.ge.f32.partialorder %v633_v17, 0.0  ;;  %v7706_v54 = vpop.f32.mrb[13].mxu0  ;;  %v1323_v34 = vld [vmem:[#allocation2 + $0x38] sm:$0x1] }
 0x107   : > { %v701_v53 = vmul.f32 %v7609_v45, %v633_v17  ;;  %1321 = vst [vmem:[#allocation2 + $0x30] sm:$0xf] %v1320_v50  ;;  %v730_v56 = vsel %vm662_vm8, %v630_v29, %v698_v43  ;;  %v631_v59 = vadd.f32 %v7603_v41, %v595_v25  ;;  %v634_v61 = vadd.f32 %v7603_v41, %v598_v26  ;;  %v7710_v62 = vpop.f32.mrb[14].mxu0  ;;  %v7150_v63 = vld [vmem:[#allocation2 + $0x18] sm:$0xff]   ;;  %v7723_v26 = vpop.f32.mrb[13].mxu1 }
 0x108   : > { %v728_v57 = vsel %vm660_vm9, %v628_v31, %v696_v46  ;;  %v1015_v0 = vor.u32 %v1013_v39, %v1012_v51  ;;  %v1016_v3 = vrot.slane %v1012_v51, 4  ;;  %v6627_v4 = vpack.c.bf16 %v730_v56, %v730_v56  ;;  %v7712_v6 = vpop.f32.mrb[15].mxu0  ;;  %v7151_v8 = vld [vmem:[#allocation2 + $0xc] sm:$0xff]   ;;  %2459 = vrot.lane.b32.xlu1 %v7150_v63, %s7423_s12 }
 0x109   : > { %v6625_v5 = vpack.c.bf16 %v728_v57, %v728_v57  ;;  %v733_v9 = vsel %vm665_vm11, %v633_v17, %v701_v53  ;;  %vm663_vm12 = vcmp.ge.f32.partialorder %v631_v59, 0.0  ;;  %v699_v10 = vmul.f32 %v7609_v45, %v631_v59  ;;  %2457 = vrot.lane.b32.xlu0 %v7151_v8, %s7423_s12  ;;  %v1316_v37 = vld [vmem:[#allocation2 + $0x2c] sm:$0x1] }
 0x10a   : > { %vm666_vm13 = vcmp.ge.f32.partialorder %v634_v61, 0.0  ;;  %v1313_v11 = vsel %vm7644_vm0, %v1015_v0, %v1312_v55  ;;  %v1035_v13 = vshrl.u32 %v6627_v4, 16  ;;  %v1038_v14 = vshll.u32 %v6627_v4, 16 }
 0x10b   : > { %v1018_v15 = vshrl.u32 %v6625_v5, 16  ;;  %1314 = vst [vmem:[#allocation2 + $0x24] sm:$0xf] %v1313_v11  ;;  %v1021_v18 = vshll.u32 %v6625_v5, 16  ;;  %v6630_v19 = vpack.c.bf16 %v733_v9, %v733_v9  ;;  %v731_v22 = vsel %vm663_vm12, %v631_v59, %v699_v10  ;;  %v1333_v5 = vld [vmem:[#allocation2 + $0x48] sm:$0xf] }
 0x10c   : > { %v702_v25 = vmul.f32 %v7609_v45, %v634_v61  ;;  %v1037_v28 = vrot.slane %v1035_v13, 7  ;;  %v6628_v31 = vpack.c.bf16 %v731_v22, %v731_v22  ;;  %v632_v17 = vadd.f32 %v7603_v41, %v596_v23  ;;  %v7730_v23 = vpop.f32.mrb[14].mxu1  ;;  %v1326_v11 = vld [vmem:[#allocation2 + $0x3c] sm:$0xf] }
 0x10d   : > { %v1020_v29 = vrot.slane %v1018_v15, 7  ;;  %v1061_v39 = vshrl.u32 %v6630_v19, 16  ;;  %v1064_v43 = vshll.u32 %v6630_v19, 16  ;;  %v601_v50 = vmul.f32 %v6975_v47, %v7592_v33  ;;  %1973 = vrot.lane.b32.xlu0 %v7622_v58, %s7423_s12  ;;  %v7744_v10 = vpop.f32.mrb[15].mxu1 }
 0x10e   : > { %v734_v46 = vsel %vm666_vm13, %v634_v61, %v702_v25  ;;  %v1040_v51 = vor.u32 %v1038_v14, %v1037_v28  ;;  %v1042_v53 = vrot.slane %v1037_v28, 4  ;;  %v1044_v59 = vshrl.u32 %v6628_v31, 16  ;;  %v1337_v25 = vld [vmem:[#allocation2 + $0x50] sm:$0x1]  ;;  %v3004_v48 = vld [vmem:[#allocation2 + $0x30] sm:$0xe] }
 0x10f   : > { %v1023_v55 = vor.u32 %v1021_v18, %v1020_v29  ;;  %v1025_v56 = vrot.slane %v1020_v29, 4  ;;  %v1063_v57 = vrot.slane %v1061_v39, 7  ;;  %v1047_v63 = vshll.u32 %v6628_v31, 16 }
 0x110   : > { %v6631_v0 = vpack.c.bf16 %v734_v46, %v734_v46  ;;  %v1041_v61 = vsel %vm7655_vm5, %v1033_v36, %v1040_v51  ;;  %v1324_v47 = vsel %vm7513_vm4, %v1042_v53, %v1323_v34  ;;  %v1046_v9 = vrot.slane %v1044_v59, 7 }
 0x111   : > { %v1024_v4 = vsel %vm7655_vm5, %v1016_v3, %v1023_v55  ;;  %v1317_v58 = vsel %vm7513_vm4, %v1025_v56, %v1316_v37  ;;  %1322 = vst.msk [vmem:[#allocation2 + $0x34] sm:$0xf] %vm884_vm7, %v1041_v61  ;;  %1325 = vst [vmem:[#allocation2 + $0x38] sm:$0x1] %v1324_v47  ;;  %v1066_v21 = vor.u32 %v1064_v43, %v1063_v57  ;;  %v1067_v8 = vrot.slane %v1063_v57, 4 }
 0x112   : > { %1315 = vst.msk [vmem:[#allocation2 + $0x28] sm:$0xf] %vm884_vm7, %v1024_v4  ;;  %1318 = vst [vmem:[#allocation2 + $0x2c] sm:$0x1] %v1317_v58  ;;  %v1069_v36 = vshrl.u32 %v6631_v0, 16  ;;  %v1072_v13 = vshll.u32 %v6631_v0, 16  ;;  %v700_v3 = vmul.f32 %v7609_v45, %v632_v17  ;;  %v637_v14 = vadd.f32 %v7603_v41, %v601_v50 }
 0x113   : > { %vm664_vm14 = vcmp.ge.f32.partialorder %v632_v17, 0.0  ;;  %v1334_v15 = vsel %vm7644_vm0, %v1066_v21, %v1333_v5  ;;  %v1049_v18 = vor.u32 %v1047_v63, %v1046_v9  ;;  %v1050_v19 = vrot.slane %v1046_v9, 4  ;;  %v1330_v47 = vld [vmem:[#allocation2 + $0x44] sm:$0x1] }
 0x114   : > { %v1071_v22 = vrot.slane %v1069_v36, 7  ;;  %1335 = vst [vmem:[#allocation2 + $0x48] sm:$0xf] %v1334_v15  ;;  %v732_v28 = vsel %vm664_vm14, %v632_v17, %v700_v3  ;;  %vm669_vm15 = vcmp.ge.f32.partialorder %v637_v14, 0.0  ;;  %v705_v29 = vmul.f32 %v7609_v45, %v637_v14 }
 0x115   : > { %v599_v31 = vmul.f32 %v7592_v33, %v7706_v54  ;;  %v1327_v34 = vsel %vm7644_vm0, %v1049_v18, %v1326_v11  ;;  %v6629_v43 = vpack.c.bf16 %v732_v28, %v732_v28  ;;  %v602_v51 = vmul.f32 %v7710_v62, %v7592_v33 }
 0x116   : > { %v1074_v37 = vor.u32 %v1072_v13, %v1071_v22  ;;  %v1076_v39 = vrot.slane %v1071_v22, 4  ;;  %1328 = vst [vmem:[#allocation2 + $0x3c] sm:$0xf] %v1327_v34  ;;  %v737_v46 = vsel %vm669_vm15, %v637_v14, %v705_v29  ;;  %v600_v17 = vmul.f32 %v7592_v33, %v7712_v6  ;;  %v1347_v22 = vld [vmem:[#allocation2 + $0x60] sm:$0xf] }
 0x117   : > { %v635_v50 = vadd.f32 %v7603_v41, %v599_v31  ;;  %v1052_v55 = vshrl.u32 %v6629_v43, 16  ;;  %v1055_v56 = vshll.u32 %v6629_v43, 16  ;;  %v6634_v57 = vpack.c.bf16 %v737_v46, %v737_v46 }
 0x118   : > { %v1075_v53 = vsel %vm7655_vm5, %v1067_v8, %v1074_v37  ;;  %v1338_v54 = vsel %vm7513_vm4, %v1076_v39, %v1337_v25  ;;  %v638_v62 = vadd.f32 %v7603_v41, %v602_v51  ;;  %v636_v6 = vadd.f32 %v7603_v41, %v600_v17  ;;  %v7153_v21 = vld [vmem:[#allocation2 + $0x30] sm:$0xff]  }
 0x119   : > { %1336 = vst.msk [vmem:[#allocation2 + $0x4c] sm:$0xf] %vm884_vm7, %v1075_v53  ;;  %1339 = vst [vmem:[#allocation2 + $0x50] sm:$0x1] %v1338_v54  ;;  %vm667_vm1 = vcmp.ge.f32.partialorder %v635_v50, 0.0  ;;  %v703_v59 = vmul.f32 %v7609_v45, %v635_v50  ;;  %v7152_v63 = vld [vmem:[#allocation2 + $0x24] sm:$0xff]   ;;  %v709_v61 = vmul.f32 %v7609_v45, %v7638_v12  ;;  %v639_v51 = vadd.f32 %v7603_v41, %v7629_v1 }
 0x11a   : > { %v1054_v0 = vrot.slane %v1052_v55, 7  ;;  %vm673_vm3 = vcmp.ge.f32.partialorder %v7638_v12, 0.0  ;;  %v1095_v4 = vshrl.u32 %v6634_v57, 16  ;;  %v1098_v58 = vshll.u32 %v6634_v57, 16  ;;  %2461 = vrot.lane.b32.xlu0 %v7152_v63, %s7423_s12 }
 0x11b   : > { %v735_v5 = vsel %vm667_vm1, %v635_v50, %v703_v59  ;;  %vm670_vm8 = vcmp.ge.f32.partialorder %v638_v62, 0.0  ;;  %v706_v11 = vmul.f32 %v7609_v45, %v638_v62  ;;  %vm668_vm9 = vcmp.ge.f32.partialorder %v636_v6, 0.0  ;;  %v1340_v50 = vld [vmem:[#allocation2 + $0x54] sm:$0xf] }
 0x11c   : > { %v1057_v8 = vor.u32 %v1055_v56, %v1054_v0  ;;  %v1059_v9 = vrot.slane %v1054_v0, 4  ;;  %v6632_v36 = vpack.c.bf16 %v735_v5, %v735_v5  ;;  %v1097_v13 = vrot.slane %v1095_v4, 7  ;;  %v1344_v4 = vld [vmem:[#allocation2 + $0x5c] sm:$0x1]  ;;  %v1361_v5 = vld [vmem:[#allocation2 + $0x78] sm:$0xf] }
 0x11d   : > { %v704_v3 = vmul.f32 %v7609_v45, %v636_v6  ;;  %v741_v14 = vsel %vm673_vm3, %v7638_v12, %v709_v61  ;;  %v738_v34 = vsel %vm670_vm8, %v638_v62, %v706_v11  ;;  %v606_v17 = vmul.f32 %v7631_v2, %v7592_v33 }
 0x11e   : > { %v1058_v15 = vsel %vm7655_vm5, %v1050_v19, %v1057_v8  ;;  %v1331_v18 = vsel %vm7513_vm4, %v1059_v9, %v1330_v47  ;;  %v1078_v25 = vshrl.u32 %v6632_v36, 16  ;;  %v1081_v28 = vshll.u32 %v6632_v36, 16  ;;  %2463 = vrot.lane.b32.xlu0 %v7153_v21, %s7423_s12  ;;  %v1351_v47 = vld [vmem:[#allocation2 + $0x68] sm:$0x1] }
 0x11f   : > { %1329 = vst.msk [vmem:[#allocation2 + $0x40] sm:$0xf] %vm884_vm7, %v1058_v15  ;;  %1332 = vst [vmem:[#allocation2 + $0x44] sm:$0x1] %v1331_v18  ;;  %v1100_v29 = vor.u32 %v1098_v58, %v1097_v13  ;;  %v1101_v31 = vrot.slane %v1097_v13, 4  ;;  %v736_v37 = vsel %vm668_vm9, %v636_v6, %v704_v3  ;;  %v6635_v39 = vpack.c.bf16 %v738_v34, %v738_v34 }
 0x120   : > { %v1080_v12 = vrot.slane %v1078_v25, 7  ;;  %v6633_v43 = vpack.c.bf16 %v736_v37, %v736_v37  ;;  %v6638_v19 = vpack.c.bf16 %v741_v14, %v741_v14  ;;  %v604_v53 = vmul.f32 %v7592_v33, %v7634_v7  ;;  %v1412_v6 = vld [vmem:[#allocation2 + $0xc] sm:$0xf]  ;;  %v1413_v34 = vld [vmem:[#allocation2 + $0x10] sm:$0xf] }
 0x121   : > { %v1348_v46 = vsel %vm7644_vm0, %v1100_v29, %v1347_v22  ;;  %v1103_v56 = vshrl.u32 %v6635_v39, 16  ;;  %v1106_v57 = vshll.u32 %v6635_v39, 16  ;;  %vm671_vm11 = vcmp.ge.f32.partialorder %v639_v51, 0.0  ;;  %v7155_v37 = vld [vmem:[#allocation2 + $0x48] sm:$0xff]  }
 0x122   : > { %1349 = vst [vmem:[#allocation2 + $0x60] sm:$0xf] %v1348_v46  ;;  %v1083_v54 = vor.u32 %v1081_v28, %v1080_v12  ;;  %v1084_v55 = vrot.slane %v1080_v12, 4  ;;  %v1086_v59 = vshrl.u32 %v6633_v43, 16  ;;  %v1089_v62 = vshll.u32 %v6633_v43, 16 }
 0x123   : > { %v1129_v63 = vshrl.u32 %v6638_v19, 16  ;;  %v1132_v0 = vshll.u32 %v6638_v19, 16  ;;  %v1105_v1 = vrot.slane %v1103_v56, 7  ;;  %v707_v2 = vmul.f32 %v7609_v45, %v639_v51 }
 0x124   : > { %v1341_v61 = vsel %vm7644_vm0, %v1083_v54, %v1340_v50  ;;  %v1088_v7 = vrot.slane %v1086_v59, 7  ;;  %v642_v21 = vadd.f32 %v7603_v41, %v606_v17  ;;  %v640_v8 = vadd.f32 %v7603_v41, %v604_v53 }
 0x125   : > { %1342 = vst [vmem:[#allocation2 + $0x54] sm:$0xf] %v1341_v61  ;;  %v7795_v58 = vrot.slane %v1129_v63, 7  ;;  %v1108_v9 = vor.u32 %v1106_v57, %v1105_v1  ;;  %v1110_v36 = vrot.slane %v1105_v1, 4  ;;  %v739_v11 = vsel %vm671_vm11, %v639_v51, %v707_v2  ;;  %v1443_v51 = vld [vmem:[#allocation2 + $0x14] sm:$0x1] }
 0x126   : > { %v1486_v13 = vshrl.u32 %v1412_v6, 16  ;;  %v7154_v3 = vld [vmem:[#allocation2 + $0x3c] sm:$0xff]   ;;  %v1091_v14 = vor.u32 %v1089_v62, %v1088_v7  ;;  %v1093_v15 = vrot.slane %v1088_v7, 4  ;;  %v6636_v29 = vpack.c.bf16 %v739_v11, %v739_v11  ;;  %v1354_v57 = vld [vmem:[#allocation2 + $0x6c] sm:$0xf] }
 0x127   : > { %v1134_v18 = vor.u32 %v1132_v0, %v7795_v58  ;;  %v1135_v22 = vrot.slane %v7795_v58, 4  ;;  %v1109_v25 = vsel %vm7655_vm5, %v1101_v31, %v1108_v9  ;;  %v1352_v28 = vsel %vm7513_vm4, %v1110_v36, %v1351_v47  ;;  %2465 = vrot.lane.b32.xlu0 %v7154_v3, %s7423_s12  ;;  %v1414_v2 = vld [vmem:[#allocation2 + $0x18] sm:$0xf]  ;;  %v1415_v3 = vld [vmem:[#allocation2 + $0x1c] sm:$0xf] }
 0x128   : > { %vm674_vm12 = vcmp.ge.f32.partialorder %v642_v21, 0.0  ;;  %1350 = vst.msk [vmem:[#allocation2 + $0x64] sm:$0xf] %vm884_vm7, %v1109_v25  ;;  %1353 = vst [vmem:[#allocation2 + $0x68] sm:$0x1] %v1352_v28  ;;  %v1092_v12 = vsel %vm7655_vm5, %v1084_v55, %v1091_v14  ;;  %v1345_v39 = vsel %vm7513_vm4, %v1093_v15, %v1344_v4  ;;  %v710_v43 = vmul.f32 %v7609_v45, %v642_v21 }
 0x129   : > { %v1362_v31 = vsel %vm7644_vm0, %v1134_v18, %v1361_v5  ;;  %1343 = vst.msk [vmem:[#allocation2 + $0x58] sm:$0xf] %vm884_vm7, %v1092_v12  ;;  %1346 = vst [vmem:[#allocation2 + $0x5c] sm:$0x1] %v1345_v39  ;;  %v1112_v19 = vshrl.u32 %v6636_v29, 16  ;;  %v1115_v46 = vshll.u32 %v6636_v29, 16  ;;  %v708_v50 = vmul.f32 %v7609_v45, %v640_v8 }
 0x12a   : > { %1363 = vst [vmem:[#allocation2 + $0x78] sm:$0xf] %v1362_v31  ;;  %vm672_vm13 = vcmp.ge.f32.partialorder %v640_v8, 0.0  ;;  %v742_v17 = vsel %vm674_vm12, %v642_v21, %v710_v43  ;;  %v1488_v53 = vrot.slane %v1486_v13, 4  ;;  %v1489_v54 = vshll.u32 %v1412_v6, 16 }
 0x12b   : > { %v1495_v55 = vshll.u32 %v1413_v34, 16  ;;  %v1114_v56 = vrot.slane %v1112_v19, 7  ;;  %v6639_v59 = vpack.c.bf16 %v742_v17, %v742_v17  ;;  %v740_v62 = vsel %vm672_vm13, %v640_v8, %v708_v50  ;;  %2467 = vrot.lane.b32.xlu0 %v7155_v37, %s7423_s12  ;;  %v1365_v21 = vld [vmem:[#allocation2 + $0x80] sm:$0x1]  ;;  %v1358_v15 = vld [vmem:[#allocation2 + $0x74] sm:$0x1] }
 0x12c   : > { %v1499_v63 = vshrl.u32 %v1413_v34, 16  ;;  %v6637_v0 = vpack.c.bf16 %v740_v62, %v740_v62  ;;  %v1491_v61 = vrot.slane %v1489_v54, 5  ;;  %v1505_v47 = vshll.u32 %v1443_v51, 16  ;;  %v1444_v43 = vld [vmem:[#allocation2 + $0x20] sm:$0x1] }
 0x12d   : > { %v1497_v1 = vrot.slane %v1495_v55, 5  ;;  %v1117_v7 = vor.u32 %v1115_v46, %v1114_v56  ;;  %v1118_v4 = vrot.slane %v1114_v56, 4  ;;  %v1137_v5 = vshrl.u32 %v6639_v59, 16  ;;  %v1416_v54 = vld [vmem:[#allocation2 + $0x24] sm:$0xf] }
 0x12e   : > { %v1140_v9 = vshll.u32 %v6639_v59, 16  ;;  %v1120_v36 = vshrl.u32 %v6637_v0, 16  ;;  %v1123_v6 = vshll.u32 %v6637_v0, 16  ;;  %v1492_v11 = vor.u32 %v1491_v61, %v1488_v53 }
 0x12f   : > { %v1501_v13 = vrot.slane %v1499_v63, 4  ;;  %v1355_v8 = vsel %vm7644_vm0, %v1117_v7, %v1354_v57  ;;  %v1139_v14 = vrot.slane %v1137_v5, 7  ;;  %v1507_v18 = vrot.slane %v1505_v47, 5  ;;  %v7157_v55 = vld [vmem:[#allocation2 + $0x60] sm:$0xff]   ;;  %v1417_v63 = vld [vmem:[#allocation2 + $0x28] sm:$0xf] }
 0x130   : > { %v1510_v25 = vshrl.u32 %v1414_v2, 16  ;;  %1356 = vst [vmem:[#allocation2 + $0x6c] sm:$0xf] %v1355_v8  ;;  %v1122_v28 = vrot.slane %v1120_v36, 7  ;;  %v1493_v29 = vrot.slane %v1492_v11, 4  ;;  %v1513_v37 = vshll.u32 %v1414_v2, 16 }
 0x131   : > { %v1502_v34 = vor.u32 %v1501_v13, %v1497_v1  ;;  %v7156_v12 = vld [vmem:[#allocation2 + $0x54] sm:$0xff]   ;;  %v1142_v39 = vor.u32 %v1140_v9, %v1139_v14  ;;  %v1144_v31 = vrot.slane %v1139_v14, 4  ;;  %v1519_v46 = vshll.u32 %v1415_v3, 16 }
 0x132   : > { %v1512_v19 = vrot.slane %v1510_v25, 4  ;;  %v1125_v50 = vor.u32 %v1123_v6, %v1122_v28  ;;  %v1127_v51 = vrot.slane %v1122_v28, 4  ;;  %v1498_v17 = vsel %vm7594_vm10, %v1493_v29, %v1497_v1  ;;  %2469 = vrot.lane.b32.xlu0 %v7156_v12, %s7423_s12  ;;  %v1418_v25 = vld [vmem:[#allocation2 + $0x30] sm:$0xf] }
 0x133   : > { %v1503_v53 = vrot.slane %v1502_v34, 4  ;;  %v1143_v56 = vsel %vm7655_vm5, %v1135_v22, %v1142_v39  ;;  %v1366_v57 = vsel %vm7513_vm4, %v1144_v31, %v1365_v21  ;;  %v1515_v59 = vrot.slane %v1513_v37, 5  ;;  %v1445_v22 = vld [vmem:[#allocation2 + $0x2c] sm:$0x1] }
 0x134   : > { %v1521_v62 = vrot.slane %v1519_v46, 5  ;;  %1364 = vst.msk [vmem:[#allocation2 + $0x7c] sm:$0xf] %vm884_vm7, %v1143_v56  ;;  %1367 = vst [vmem:[#allocation2 + $0x80] sm:$0x1] %v1366_v57  ;;  %v1126_v0 = vsel %vm7655_vm5, %v1118_v4, %v1125_v50  ;;  %v1359_v61 = vsel %vm7513_vm4, %v1127_v51, %v1358_v15  ;;  %v1523_v1 = vshrl.u32 %v1415_v3, 16 }
 0x135   : > { %v1508_v58 = vsel %vm7594_vm10, %v1503_v53, %v1507_v18  ;;  %1357 = vst.msk [vmem:[#allocation2 + $0x70] sm:$0xf] %vm884_vm7, %v1126_v0  ;;  %1360 = vst [vmem:[#allocation2 + $0x74] sm:$0x1] %v1359_v61  ;;  %v1516_v2 = vor.u32 %v1515_v59, %v1512_v19  ;;  %v1529_v7 = vshll.u32 %v1444_v43, 16  ;;  %v1534_v5 = vshrl.u32 %v1416_v54, 16 }
 0x136   : > { %v6354_v47 = vcombine.low %v1498_v17, %v1508_v58  ;;  %v1525_v9 = vrot.slane %v1523_v1, 4  ;;  %v1537_v21 = vshll.u32 %v1416_v54, 16  ;;  %v1543_v36 = vshll.u32 %v1417_v63, 16  ;;  %2471 = vrot.lane.b32.xlu0 %v7157_v55, %s7423_s12  ;;  %v1419_v58 = vld [vmem:[#allocation2 + $0x34] sm:$0xf] }
 0x137   : > { %v1547_v6 = vshrl.u32 %v1417_v63, 16  ;;  %v1517_v4 = vrot.slane %v1516_v2, 4  ;;  %v1531_v11 = vrot.slane %v1529_v7, 5  ;;  %v1536_v13 = vrot.slane %v1534_v5, 4 }
 0x138   : > { %1975 = vrot.lane.b32.xlu1 %v6354_v47, %s7423_s12  ;;  %v1553_v3 = vshll.u32 %v1445_v22, 16  ;;  %v1526_v8 = vor.u32 %v1525_v9, %v1521_v62  ;;  %v1539_v14 = vrot.slane %v1537_v21, 5  ;;  %v1545_v15 = vrot.slane %v1543_v36, 5 }
 0x139   : > { %v1549_v18 = vrot.slane %v1547_v6, 4  ;;  %v1522_v28 = vsel %vm7594_vm10, %v1517_v4, %v1521_v62  ;;  %v609_v34 = vmul.f32 %v7648_v35, %v7592_v33  ;;  %v607_v37 = vmul.f32 %v7592_v33, %v7651_v44 }
 0x13a   : > { %v1555_v29 = vrot.slane %v1553_v3, 5  ;;  %v1527_v12 = vrot.slane %v1526_v8, 4  ;;  %v1540_v39 = vor.u32 %v1539_v14, %v1536_v13  ;;  %v610_v43 = vmul.f32 %v7660_v52, %v7592_v33  ;;  %v1375_v3 = vld [vmem:[#allocation2 + $0x90] sm:$0xf] }
 0x13b   : > { %v1550_v31 = vor.u32 %v1549_v18, %v1545_v15  ;;  %v645_v19 = vadd.f32 %v7603_v41, %v609_v34  ;;  %v643_v46 = vadd.f32 %v7603_v41, %v607_v37  ;;  %v608_v50 = vmul.f32 %v7592_v33, %v7665_v60 }
 0x13c   : > { %v1558_v51 = vshrl.u32 %v1418_v25, 16  ;;  %v1532_v35 = vsel %vm7594_vm10, %v1527_v12, %v1531_v11  ;;  %v1541_v17 = vrot.slane %v1540_v39, 4  ;;  %v646_v44 = vadd.f32 %v7603_v41, %v610_v43  ;;  %v7158_v54 = vld [vmem:[#allocation2 + $0x6c] sm:$0xff]  }
 0x13d   : > { %v1551_v53 = vrot.slane %v1550_v31, 4  ;;  %v6355_v55 = vcombine.low %v1522_v28, %v1532_v35  ;;  %vm677_vm14 = vcmp.ge.f32.partialorder %v645_v19, 0.0  ;;  %v713_v52 = vmul.f32 %v7609_v45, %v645_v19  ;;  %2473 = vrot.lane.b32.xlu0 %v7158_v54, %s7423_s12  ;;  %v1446_v31 = vld [vmem:[#allocation2 + $0x38] sm:$0x1]  ;;  %v1420_v54 = vld [vmem:[#allocation2 + $0x3c] sm:$0xf] }
 0x13e   : > { %vm675_vm15 = vcmp.ge.f32.partialorder %v643_v46, 0.0  ;;  %v1546_v56 = vsel %vm7594_vm10, %v1541_v17, %v1545_v15  ;;  %v711_v60 = vmul.f32 %v7609_v45, %v643_v46  ;;  %vm678_vm1 = vcmp.ge.f32.partialorder %v646_v44, 0.0 }
 0x13f   : > { %v1556_v33 = vsel %vm7594_vm10, %v1551_v53, %v1555_v29  ;;  %1977 = vrot.lane.b32.xlu1 %v6355_v55, %s7423_s12  ;;  %v745_v59 = vsel %vm677_vm14, %v645_v19, %v713_v52  ;;  %v714_v62 = vmul.f32 %v7609_v45, %v646_v44  ;;  %v644_v63 = vadd.f32 %v7603_v41, %v608_v50  ;;  %v1372_v52 = vld [vmem:[#allocation2 + $0x8c] sm:$0x1] }
 0x140   : > { %v6356_v57 = vcombine.low %v1546_v56, %v1556_v33  ;;  %v6642_v0 = vpack.c.bf16 %v745_v59, %v745_v59  ;;  %v743_v61 = vsel %vm675_vm15, %v643_v46, %v711_v60  ;;  %v1560_v1 = vrot.slane %v1558_v51, 4  ;;  %v1379_v46 = vld [vmem:[#allocation2 + $0x98] sm:$0x1] }
 0x141   : > { %v1561_v22 = vshll.u32 %v1418_v25, 16  ;;  %v6640_v47 = vpack.c.bf16 %v743_v61, %v743_v61  ;;  %v746_v2 = vsel %vm678_vm1, %v646_v44, %v714_v62  ;;  %vm676_vm3 = vcmp.ge.f32.partialorder %v644_v63, 0.0  ;;  %v1368_v25 = vld [vmem:[#allocation2 + $0x84] sm:$0xf] }
 0x142   : > { %v712_v7 = vmul.f32 %v7609_v45, %v644_v63  ;;  %v1163_v5 = vshrl.u32 %v6642_v0, 16  ;;  %v1166_v9 = vshll.u32 %v6642_v0, 16  ;;  %v6643_v21 = vpack.c.bf16 %v746_v2, %v746_v2  ;;  %v1447_v61 = vld [vmem:[#allocation2 + $0x44] sm:$0x1]  ;;  %v1422_v2 = vld [vmem:[#allocation2 + $0x48] sm:$0xf] }
 0x143   : > { %v1563_v36 = vrot.slane %v1561_v22, 5  ;;  %1979 = vrot.lane.b32.xlu1 %v6356_v57, %s7423_s12  ;;  %v1146_v6 = vshrl.u32 %v6640_v47, 16  ;;  %v1149_v4 = vshll.u32 %v6640_v47, 16  ;;  %v1567_v41 = vshll.u32 %v1419_v58, 16  ;;  %v1421_v57 = vld [vmem:[#allocation2 + $0x40] sm:$0xf] }
 0x144   : > { %v744_v11 = vsel %vm676_vm3, %v644_v63, %v712_v7  ;;  %v1165_v13 = vrot.slane %v1163_v5, 7  ;;  %v1171_v8 = vshrl.u32 %v6643_v21, 16  ;;  %v1174_v14 = vshll.u32 %v6643_v21, 16 }
 0x145   : > { %v6641_v15 = vpack.c.bf16 %v744_v11, %v744_v11  ;;  %v1148_v18 = vrot.slane %v1146_v6, 7  ;;  %v1564_v28 = vor.u32 %v1563_v36, %v1560_v1  ;;  %v1569_v29 = vrot.slane %v1567_v41, 5  ;;  %v1423_v36 = vld [vmem:[#allocation2 + $0x4c] sm:$0xf] }
 0x146   : > { %v1571_v45 = vshrl.u32 %v1419_v58, 16  ;;  %v1168_v34 = vor.u32 %v1166_v9, %v1165_v13  ;;  %v1169_v37 = vrot.slane %v1165_v13, 4  ;;  %v1173_v12 = vrot.slane %v1171_v8, 7  ;;  %v7166_v13 = vld [vmem:[%s9919_s2 + $0x40] sm:$0xff]  }
 0x147   : > { %v1154_v39 = vshrl.u32 %v6641_v15, 16  ;;  %v1151_v43 = vor.u32 %v1149_v4, %v1148_v18  ;;  %v1152_v19 = vrot.slane %v1148_v18, 4  ;;  %v1157_v50 = vshll.u32 %v6641_v15, 16  ;;  %v1448_v15 = vld [vmem:[#allocation2 + $0x50] sm:$0x1]  ;;  %6671 = vmatprep.subr.bf16.mxu1 %v7166_v13 }
 0x148   : > { %v1565_v51 = vrot.slane %v1564_v28, 4  ;;  %v1376_v35 = vsel %vm7644_vm0, %v1168_v34, %v1375_v3  ;;  %v1176_v17 = vor.u32 %v1174_v14, %v1173_v12  ;;  %v1178_v53 = vrot.slane %v1173_v12, 4  ;;  %v7167_v3 = vld [vmem:[%s9919_s2] sm:$0xff]  }
 0x149   : > { %v1156_v44 = vrot.slane %v1154_v39, 7  ;;  %1377 = vst [vmem:[#allocation2 + $0x90] sm:$0xf] %v1376_v35  ;;  %v1369_v55 = vsel %vm7644_vm0, %v1151_v43, %v1368_v25  ;;  %v1573_v33 = vrot.slane %v1571_v45, 4  ;;  %v1577_v60 = vshll.u32 %v1446_v31, 16  ;;  %6672 = vmatpush3.bf16.msra.mxu1 %v7167_v3 }
 0x14a   : > { %v1570_v56 = vsel %vm7594_vm10, %v1565_v51, %v1569_v29  ;;  %1370 = vst [vmem:[#allocation2 + $0x84] sm:$0xf] %v1369_v55  ;;  %v1177_v59 = vsel %vm7655_vm5, %v1169_v37, %v1176_v17  ;;  %v1380_v62 = vsel %vm7513_vm4, %v1178_v53, %v1379_v46  ;;  %v1582_v22 = vshrl.u32 %v1420_v54, 16  ;;  %v1424_v37 = vld [vmem:[#allocation2 + $0x54] sm:$0xf] }
 0x14b   : > { %v1159_v63 = vor.u32 %v1157_v50, %v1156_v44  ;;  %v1161_v0 = vrot.slane %v1156_v44, 4  ;;  %1378 = vst.msk [vmem:[#allocation2 + $0x94] sm:$0xf] %vm884_vm7, %v1177_v59  ;;  %1381 = vst [vmem:[#allocation2 + $0x98] sm:$0x1] %v1380_v62  ;;  %v1574_v58 = vor.u32 %v1573_v33, %v1569_v29  ;;  %v1579_v1 = vrot.slane %v1577_v60, 5 }
 0x14c   : > { %v1585_v47 = vshll.u32 %v1420_v54, 16  ;;  %v1591_v9 = vshll.u32 %v1421_v57, 16  ;;  %v1595_v21 = vshrl.u32 %v1421_v57, 16  ;;  %v1584_v4 = vrot.slane %v1582_v22, 4  ;;  %v1449_v33 = vld [vmem:[#allocation2 + $0x5c] sm:$0x1] }
 0x14d   : > { %v1160_v7 = vsel %vm7655_vm5, %v1152_v19, %v1159_v63  ;;  %v1373_v5 = vsel %vm7513_vm4, %v1161_v0, %v1372_v52  ;;  %v1575_v6 = vrot.slane %v1574_v58, 4  ;;  %v1601_v41 = vshll.u32 %v1447_v61, 16  ;;  %v1425_v19 = vld [vmem:[#allocation2 + $0x58] sm:$0xf]  ;;  %v7168_v57 = vld [vmem:[%s9919_s2 + $0x48] sm:$0xff]  }
 0x14e   : > { %1371 = vst.msk [vmem:[#allocation2 + $0x88] sm:$0xf] %vm884_vm7, %v1160_v7  ;;  %1374 = vst [vmem:[#allocation2 + $0x8c] sm:$0x1] %v1373_v5  ;;  %v1587_v11 = vrot.slane %v1585_v47, 5  ;;  %v1593_v8 = vrot.slane %v1591_v9, 5  ;;  %6673 = vmatprep.subr.bf16.mxu1 %v7168_v57 }
 0x14f   : > { %v1597_v14 = vrot.slane %v1595_v21, 4  ;;  %v1606_v18 = vshrl.u32 %v1422_v2, 16  ;;  %v1609_v25 = vshll.u32 %v1422_v2, 16  ;;  %v1580_v28 = vsel %vm7594_vm10, %v1575_v6, %v1579_v1  ;;  %v1426_v47 = vld [vmem:[#allocation2 + $0x60] sm:$0xf] }
 0x150   : > { %v1588_v29 = vor.u32 %v1587_v11, %v1584_v4  ;;  %v1603_v45 = vrot.slane %v1601_v41, 5  ;;  %v1615_v34 = vshll.u32 %v1423_v36, 16  ;;  %v6357_v12 = vcombine.low %v1570_v56, %v1580_v28  ;;  %v7903_v9 = vld [vmem:[%s9921_s4] ss:$0 sm:$0xff] }
 0x151   : > { %v1598_v39 = vor.u32 %v1597_v14, %v1593_v8  ;;  %v1608_v31 = vrot.slane %v1606_v18, 4  ;;  %v1611_v43 = vrot.slane %v1609_v25, 5  ;;  %v1619_v51 = vshrl.u32 %v1423_v36, 16  ;;  %v7169_v36 = vld [vmem:[%s9919_s2 + $0x8] sm:$0xff]  }
 0x152   : > { %v1589_v46 = vrot.slane %v1588_v29, 4  ;;  %v1617_v50 = vrot.slane %v1615_v34, 5  ;;  %v1625_v35 = vshll.u32 %v1448_v15, 16  ;;  %1981 = vrot.lane.b32.xlu1 %v6357_v12, %s7423_s12  ;;  %v1630_v44 = vshrl.u32 %v1424_v37, 16  ;;  %6674 = vmatpush3.bf16.msra.mxu1 %v7169_v36  ;;  %v7170_v15 = vld [vmem:[%s9919_s2 + $0x50] sm:$0xff]  }
 0x153   : > { %v1599_v17 = vrot.slane %v1598_v39, 4  ;;  %v1612_v53 = vor.u32 %v1611_v43, %v1608_v31  ;;  %v1633_v54 = vshll.u32 %v1424_v37, 16  ;;  %v1621_v52 = vrot.slane %v1619_v51, 4  ;;  %v1427_v37 = vld [vmem:[#allocation2 + $0x64] sm:$0xf]  ;;  %6675 = vmatprep.subr.bf16.mxu1 %v7170_v15  ;;  %v7171_v12 = vld [vmem:[%s9919_s2 + $0x10] sm:$0xff]  }
 0x154   : > { %v1594_v55 = vsel %vm7594_vm10, %v1589_v46, %v1593_v8  ;;  %v1627_v56 = vrot.slane %v1625_v35, 5  ;;  %v1639_v60 = vshll.u32 %v1425_v19, 16  ;;  %v1632_v63 = vrot.slane %v1630_v44, 4  ;;  %v1382_v36 = vld [vmem:[#allocation2 + $0x9c] sm:$0xf] }
 0x155   : > { %v1604_v59 = vsel %vm7594_vm10, %v1599_v17, %v1603_v45  ;;  %v1613_v62 = vrot.slane %v1612_v53, 4  ;;  %v1635_v0 = vrot.slane %v1633_v54, 5  ;;  %v1622_v58 = vor.u32 %v1621_v52, %v1617_v50  ;;  %v7933_v45 = vld [vmem:[%s9921_s4 + $0x2] ss:$0 sm:$0xff]  ;;  %v1450_v52 = vld [vmem:[#allocation2 + $0x68] sm:$0x1] }
 0x156   : > { %v6358_v61 = vcombine.low %v1594_v55, %v1604_v59  ;;  %v1641_v1 = vrot.slane %v1639_v60, 5  ;;  %v1643_v22 = vshrl.u32 %v1425_v19, 16  ;;  %v1649_v5 = vshll.u32 %v1449_v33, 16  ;;  %6676 = vmatpush3.bf16.msra.mxu1 %v7171_v12  ;;  %v7174_v12 = vld [vmem:[%s9919_s2 + $0x60] sm:$0xff]  }
 0x157   : > { %v1618_v2 = vsel %vm7594_vm10, %v1613_v62, %v1617_v50  ;;  %v1636_v7 = vor.u32 %v1635_v0, %v1632_v63  ;;  %v613_v21 = vmul.f32 %v7903_v9, %v7687_v27  ;;  %v1623_v6 = vrot.slane %v1622_v58, 4  ;;  %v7918_v27 = vld [vmem:[%s9921_s4 + $0x1] ss:$0 sm:$0xff]  ;;  %v7172_v62 = vld [vmem:[%s9919_s2 + $0x58] sm:$0xff]  }
 0x158   : > { %1983 = vrot.lane.b32.xlu1 %v6358_v61, %s7423_s12  ;;  %v1645_v4 = vrot.slane %v1643_v22, 4  ;;  %v611_v11 = vmul.f32 %v7903_v9, %v7693_v32  ;;  %v614_v41 = vmul.f32 %v7903_v9, %v7697_v42  ;;  %v1651_v3 = vrot.slane %v1649_v5, 5  ;;  %v7173_v63 = vld [vmem:[%s9919_s2 + $0x18] sm:$0xff]   ;;  %6677 = vmatprep.subr.bf16.mxu1 %v7172_v62 }
 0x159   : > { %v1637_v13 = vrot.slane %v1636_v7, 4  ;;  %v649_v8 = vadd.f32 %v7918_v27, %v613_v21  ;;  %v1654_v14 = vshrl.u32 %v1426_v47, 16  ;;  %v1628_v32 = vsel %vm7594_vm10, %v1623_v6, %v1627_v56 }
 0x15a   : > { %v1646_v18 = vor.u32 %v1645_v4, %v1641_v1  ;;  %v647_v42 = vadd.f32 %v7918_v27, %v611_v11  ;;  %v650_v25 = vadd.f32 %v7918_v27, %v614_v41  ;;  %v6359_v28 = vcombine.low %v1618_v2, %v1628_v32  ;;  %6678 = vmatpush3.bf16.msra.mxu1 %v7173_v63 }
 0x15b   : > { %v1642_v29 = vsel %vm7594_vm10, %v1637_v13, %v1641_v1  ;;  %vm681_vm8 = vcmp.ge.f32.partialorder %v649_v8, 0.0  ;;  %v717_v34 = vmul.f32 %v7933_v45, %v649_v8  ;;  %v1656_v46 = vrot.slane %v1654_v14, 4  ;;  %v3386_v14 = vld [vmem:[#allocation2 + $0x18] sm:$0xf]  ;;  %6679 = vmatprep.subr.bf16.mxu1 %v7174_v12 }
 0x15c   : > { %v1647_v39 = vrot.slane %v1646_v18, 4  ;;  %vm679_vm9 = vcmp.ge.f32.partialorder %v647_v42, 0.0  ;;  %v715_v31 = vmul.f32 %v7933_v45, %v647_v42  ;;  %vm682_vm11 = vcmp.ge.f32.partialorder %v650_v25, 0.0  ;;  %1985 = vrot.lane.b32.xlu1 %v6359_v28, %s7423_s12  ;;  %v1393_v18 = vld [vmem:[#allocation2 + $0xb0] sm:$0x1] }
 0x15d   : > { %v749_v43 = vsel %vm681_vm8, %v649_v8, %v717_v34  ;;  %v718_v19 = vmul.f32 %v7933_v45, %v650_v25  ;;  %v1657_v50 = vshll.u32 %v1426_v47, 16  ;;  %v1663_v53 = vshll.u32 %v1427_v37, 16  ;;  %v1389_v47 = vld [vmem:[#allocation2 + $0xa8] sm:$0xf] }
 0x15e   : > { %v1652_v51 = vsel %vm7594_vm10, %v1647_v39, %v1651_v3  ;;  %v6646_v35 = vpack.c.bf16 %v749_v43, %v749_v43  ;;  %v747_v17 = vsel %vm679_vm9, %v647_v42, %v715_v31  ;;  %v1667_v1 = vshrl.u32 %v1427_v37, 16  ;;  %v3387_v37 = vld [vmem:[#allocation2 + $0x1c] sm:$0xf]  ;;  %v7175_v39 = vld [vmem:[%s9919_s2 + $0x20] sm:$0xff]  }
 0x15f   : > { %v6360_v44 = vcombine.low %v1642_v29, %v1652_v51  ;;  %v6644_v54 = vpack.c.bf16 %v747_v17, %v747_v17  ;;  %v750_v55 = vsel %vm682_vm11, %v650_v25, %v718_v19  ;;  %v1659_v56 = vrot.slane %v1657_v50, 5  ;;  %v3418_v19 = vld [vmem:[#allocation2 + $0x20] sm:$0x1]  ;;  %6680 = vmatpush3.bf16.msra.mxu1 %v7175_v39 }
 0x160   : > { %v1197_v33 = vshrl.u32 %v6646_v35, 16  ;;  %v1200_v60 = vshll.u32 %v6646_v35, 16  ;;  %v6647_v57 = vpack.c.bf16 %v750_v55, %v750_v55  ;;  %v1665_v59 = vrot.slane %v1663_v53, 5  ;;  %v7975_v53 = vld [vmem:[#allocation2 + $0x10] sm:$0xf] }
 0x161   : > { %1987 = vrot.lane.b32.xlu1 %v6360_v44, %s7423_s12  ;;  %v1180_v0 = vshrl.u32 %v6644_v54, 16  ;;  %v1183_v61 = vshll.u32 %v6644_v54, 16  ;;  %v1660_v58 = vor.u32 %v1659_v56, %v1656_v46  ;;  %vm2182_vm12 = vcmask 1042432   ;;  %v7977_v44 = vld [vmem:[#allocation2 + $0x14] sm:$0x1] }
 0x162   : > { %vm2183_vm13 = vcmask 1046532   ;;  %v1199_v22 = vrot.slane %v1197_v33, 7  ;;  %v1205_v2 = vshrl.u32 %v6647_v57, 16  ;;  %v1208_v7 = vshll.u32 %v6647_v57, 16  ;;  %v3001_v33 = vld [vmem:[#allocation2 + $0xc] sm:$0xe] }
 0x163   : > { %v1673_v5 = vshll.u32 %v1450_v52, 16  ;;  %v7951_v21 = vrot.slane %v1180_v0, 7  ;;  %v1661_v6 = vrot.slane %v1660_v58, 4  ;;  %v1669_v4 = vrot.slane %v1667_v1, 4  ;;  %v1428_v1 = vld [vmem:[#allocation2 + $0x6c] sm:$0xf]  ;;  %vm7986_vm15 = vmor %vm2182_vm12, %vm2183_vm13 }
 0x164   : > { %v612_v11 = vmul.f32 %v7903_v9, %v7701_v49  ;;  %v1202_v41 = vor.u32 %v1200_v60, %v1199_v22  ;;  %v1203_v13 = vrot.slane %v1199_v22, 4  ;;  %v1207_v3 = vrot.slane %v1205_v2, 7  ;;  %v7159_v2 = vld [vmem:[#allocation2 + $0x78] sm:$0xff]  }
 0x165   : > { %v1675_v8 = vrot.slane %v1673_v5, 5  ;;  %v1185_v15 = vor.u32 %v1183_v61, %v7951_v21  ;;  %v1186_v32 = vrot.slane %v7951_v21, 4  ;;  %v1666_v42 = vsel %vm7594_vm10, %v1661_v6, %v1665_v59 }
 0x166   : > { %v1670_v25 = vor.u32 %v1669_v4, %v1665_v59  ;;  %v1390_v28 = vsel %vm7644_vm0, %v1202_v41, %v1389_v47  ;;  %v1210_v29 = vor.u32 %v1208_v7, %v1207_v3  ;;  %v1212_v49 = vrot.slane %v1207_v3, 4  ;;  %v1386_v3 = vld [vmem:[#allocation2 + $0xa4] sm:$0x1] }
 0x167   : > { %v648_v34 = vadd.f32 %v7918_v27, %v612_v11  ;;  %1391 = vst [vmem:[#allocation2 + $0xa8] sm:$0xf] %v1390_v28  ;;  %v1383_v31 = vsel %vm7644_vm0, %v1185_v15, %v1382_v36  ;;  %v3435_v46 = vshrl.u32 %v3386_v14, 16  ;;  %v3438_v50 = vshll.u32 %v3386_v14, 16 }
 0x168   : > { %v1671_v43 = vrot.slane %v1670_v25, 4  ;;  %1384 = vst [vmem:[#allocation2 + $0x9c] sm:$0xf] %v1383_v31  ;;  %v1211_v51 = vsel %vm7655_vm5, %v1203_v13, %v1210_v29  ;;  %v1394_v35 = vsel %vm7513_vm4, %v1212_v49, %v1393_v18  ;;  %v3444_v56 = vshll.u32 %v3387_v37, 16  ;;  %v1429_v13 = vld [vmem:[#allocation2 + $0x70] sm:$0xf] }
 0x169   : > { %vm680_vm14 = vcmp.ge.f32.partialorder %v648_v34, 0.0  ;;  %v716_v17 = vmul.f32 %v7933_v45, %v648_v34  ;;  %1392 = vst.msk [vmem:[#allocation2 + $0xac] sm:$0xf] %vm884_vm7, %v1211_v51  ;;  %1395 = vst [vmem:[#allocation2 + $0xb0] sm:$0x1] %v1394_v35  ;;  %v3437_v55 = vrot.slane %v3435_v46, 4 }
 0x16a   : > { %v1676_v54 = vsel %vm7594_vm10, %v1671_v43, %v1675_v8  ;;  %v3440_v52 = vrot.slane %v3438_v50, 5  ;;  %v3448_v59 = vshrl.u32 %v3387_v37, 16  ;;  %v3454_v62 = vshll.u32 %v3418_v19, 16  ;;  %v3388_v49 = vld [vmem:[#allocation2 + $0x24] sm:$0xf]  ;;  %v7176_v51 = vld [vmem:[%s9919_s2 + $0x68] sm:$0xff]  }
 0x16b   : > { %v6361_v60 = vcombine.low %v1666_v42, %v1676_v54  ;;  %v748_v57 = vsel %vm680_vm14, %v648_v34, %v716_v17  ;;  %v3446_v61 = vrot.slane %v3444_v56, 5  ;;  %v6417_v36 = vrot.slane %v3001_v33, 9  ;;  %v1451_v46 = vld [vmem:[#allocation2 + $0x74] sm:$0x1]  ;;  %v3419_v56 = vld [vmem:[#allocation2 + $0x2c] sm:$0x1]  ;;  %6681 = vmatprep.subr.bf16.mxu1 %v7176_v51 }
 0x16c   : > { %v6645_v63 = vpack.c.bf16 %v748_v57, %v748_v57  ;;  %v3441_v0 = vor.u32 %v3440_v52, %v3437_v55  ;;  %v3450_v22 = vrot.slane %v3448_v59, 4  ;;  %v3456_v47 = vrot.slane %v3454_v62, 5  ;;  %v3389_v52 = vld [vmem:[#allocation2 + $0x28] sm:$0xf] }
 0x16d   : > { %1989 = vrot.lane.b32.xlu0 %v6361_v60, %s7423_s12  ;;  %v3067_v41 = vrot.slane %v7975_v53, 5  ;;  %v3070_v14 = vrot.slane %v7977_v44, 5  ;;  %v1678_v15 = vshrl.u32 %v1428_v1, 16  ;;  %v1681_v18 = vshll.u32 %v1428_v1, 16  ;;  %v7177_v33 = vld [vmem:[%s9919_s2 + $0x28] sm:$0xff]  }
 0x16e   : > { %v1188_v6 = vshrl.u32 %v6645_v63, 16  ;;  %v1191_v4 = vshll.u32 %v6645_v63, 16  ;;  %v3442_v11 = vrot.slane %v3441_v0, 4  ;;  %v3451_v8 = vor.u32 %v3450_v22, %v3446_v61  ;;  %v8014_v63 = vld [vmem:[#allocation2 + $0x1c] sm:$0xf]  ;;  %6682 = vmatpush3.bf16.msra.mxu1 %v7177_v33 }
 0x16f   : > { %v3068_v28 = vsel %vm7986_vm15, %v6417_v36, %v3067_v41  ;;  %v3069_v29 = vrot.slane %v3067_v41, 4  ;;  %v1680_v37 = vrot.slane %v1678_v15, 4  ;;  %v1683_v12 = vrot.slane %v1681_v18, 5  ;;  %v806_v18 = vld [vmem:[#allocation2 + $0xc0] sm:$0x1] }
 0x170   : > { %v1190_v42 = vrot.slane %v1188_v6, 7  ;;  %v3447_v25 = vsel %vm7594_vm10, %v3442_v11, %v3446_v61  ;;  %v3452_v34 = vrot.slane %v3451_v8, 4  ;;  %v1687_v39 = vshll.u32 %v1429_v13, 16  ;;  %v3002_v6 = vld [vmem:[#allocation2 + $0x18] sm:$0xe] }
 0x171   : > { %2475 = vrot.lane.b32.xlu0 %v7159_v2, %s7423_s12  ;;  %v3071_v19 = vsel %vm7986_vm15, %v3069_v29, %v3070_v14  ;;  %v1691_v50 = vshrl.u32 %v1429_v13, 16  ;;  %v1684_v54 = vor.u32 %v1683_v12, %v1680_v37  ;;  %v1697_v61 = vshll.u32 %v1451_v46, 16  ;;  %v862_v51 = vld [vmem:[#allocation2 + $0xc8] sm:$0x1] }
 0x172   : > { %v1193_v31 = vor.u32 %v1191_v4, %v1190_v42  ;;  %v1195_v43 = vrot.slane %v1190_v42, 4  ;;  %v3457_v35 = vsel %vm7594_vm10, %v3452_v34, %v3456_v47  ;;  %v6449_v17 = vcombine.low %v3068_v28, %v3071_v19  ;;  %v8017_v47 = vld [vmem:[#allocation2 + $0x20] sm:$0x1] }
 0x173   : > { %v1689_v55 = vrot.slane %v1687_v39, 5  ;;  %v6481_v59 = vcombine.low %v3447_v25, %v3457_v35  ;;  %v1693_v62 = vrot.slane %v1691_v50, 4  ;;  %v1685_v0 = vrot.slane %v1684_v54, 4  ;;  %v7179_v35 = vld [vmem:[%s9919_s2 + $0x30] sm:$0xff]  }
 0x174   : > { %v1194_v60 = vsel %vm7655_vm5, %v1186_v32, %v1193_v31  ;;  %v1387_v57 = vsel %vm7513_vm4, %v1195_v43, %v1386_v3  ;;  %v3459_v1 = vshrl.u32 %v3388_v49, 16  ;;  %v3462_v22 = vshll.u32 %v3388_v49, 16  ;;  %v7178_v49 = vld [vmem:[%s9919_s2 + $0x70] sm:$0xff]  }
 0x175   : > { %1385 = vst.msk [vmem:[#allocation2 + $0xa0] sm:$0xf] %vm884_vm7, %v1194_v60  ;;  %1388 = vst [vmem:[#allocation2 + $0xa4] sm:$0x1] %v1387_v57  ;;  %3946 = vrot.lane.b32.xlu1 %v6481_v59, %s7423_s12  ;;  %v1694_v21 = vor.u32 %v1693_v62, %v1689_v55  ;;  %v3468_v32 = vshll.u32 %v3389_v52, 16  ;;  %v3472_v2 = vshrl.u32 %v3389_v52, 16  ;;  %v1690_v4 = vsel %vm7594_vm10, %v1685_v0, %v1689_v55 }
 0x176   : > { %v3478_v36 = vshll.u32 %v3419_v56, 16  ;;  %v1699_v11 = vrot.slane %v1697_v61, 5  ;;  %v3461_v41 = vrot.slane %v3459_v1, 4  ;;  %v3464_v13 = vrot.slane %v3462_v22, 5  ;;  %v803_v31 = vld [vmem:[#allocation2 + $0xb4] sm:$0x1]  ;;  %6683 = vmatprep.subr.bf16.mxu1 %v7178_v49 }
 0x177   : > { %v1695_v3 = vrot.slane %v1694_v21, 4  ;;  %v3470_v8 = vrot.slane %v3468_v32, 5  ;;  %v3474_v14 = vrot.slane %v3472_v2, 4  ;;  %v6418_v29 = vrot.slane %v3002_v6, 9  ;;  %v7160_v56 = vld [vmem:[#allocation2 + $0x84] sm:$0xff]   ;;  %6684 = vmatpush3.bf16.msra.mxu1 %v7179_v35 }
 0x178   : > { %v3480_v15 = vrot.slane %v3478_v36, 5  ;;  %v3465_v42 = vor.u32 %v3464_v13, %v3461_v41  ;;  %v3074_v12 = vrot.slane %v8014_v63, 5  ;;  %v3077_v39 = vrot.slane %v8017_v47, 5  ;;  %v1430_v59 = vld [vmem:[#allocation2 + $0x78] sm:$0xf] }
 0x179   : > { %3273 = vrot.lane.b32.xlu1 %v6449_v17, %s7423_s12  ;;  %v1700_v34 = vsel %vm7594_vm10, %v1695_v3, %v1699_v11  ;;  %v3475_v37 = vor.u32 %v3474_v14, %v3470_v8  ;;  %v617_v46 = vmul.f32 %v7903_v9, %v7720_v16  ;;  %v807_v50 = vsel %vm7513_vm4, 0, %v806_v18  ;;  %v1431_v1 = vld [vmem:[#allocation2 + $0x7c] sm:$0xf] }
 0x17a   : > { %v6362_v43 = vcombine.low %v1690_v4, %v1700_v34  ;;  %v3466_v19 = vrot.slane %v3465_v42, 4  ;;  %v3075_v54 = vsel %vm7986_vm15, %v6418_v29, %v3074_v12  ;;  %v3076_v55 = vrot.slane %v3074_v12, 4  ;;  %808 = vst [vmem:[#allocation2 + $0xc0] sm:$0x1] %v807_v50  ;;  %v7180_v13 = vld [vmem:[%s9919_s2 + $0x78] sm:$0xff]  }
 0x17b   : > { %v3476_v17 = vrot.slane %v3475_v37, 4  ;;  %v615_v52 = vmul.f32 %v7903_v9, %v7723_v26  ;;  %v653_v33 = vadd.f32 %v7918_v27, %v617_v46  ;;  %v804_v60 = vsel %vm7513_vm4, 0, %v803_v31  ;;  %v1452_v42 = vld [vmem:[#allocation2 + $0x80] sm:$0x1]  ;;  %6685 = vmatprep.subr.bf16.mxu1 %v7180_v13 }
 0x17c   : > { %1991 = vrot.lane.b32.xlu0 %v6362_v43, %s7423_s12  ;;  %v3471_v16 = vsel %vm7594_vm10, %v3466_v19, %v3470_v8  ;;  %v618_v57 = vmul.f32 %v7903_v9, %v7730_v23  ;;  %v3078_v26 = vsel %vm7986_vm15, %v3076_v55, %v3077_v39  ;;  %805 = vst [vmem:[#allocation2 + $0xb4] sm:$0x1] %v804_v60  ;;  %v863_v61 = vsel %vm7521_vm6, 0, %v862_v51 }
 0x17d   : > { %v3481_v62 = vsel %vm7594_vm10, %v3476_v17, %v3480_v15  ;;  %v651_v0 = vadd.f32 %v7918_v27, %v615_v52  ;;  %v6450_v21 = vcombine.low %v3075_v54, %v3078_v26  ;;  %vm685_vm1 = vcmp.ge.f32.partialorder %v653_v33, 0.0  ;;  %864 = vst [vmem:[#allocation2 + $0xc8] sm:$0x1] %v863_v61  ;;  %v7181_v15 = vld [vmem:[%s9919_s2 + $0x38] sm:$0xff]  }
 0x17e   : > { %v6482_v22 = vcombine.low %v3471_v16, %v3481_v62  ;;  %v721_v23 = vmul.f32 %v7933_v45, %v653_v33  ;;  %v654_v2 = vadd.f32 %v7918_v27, %v618_v57  ;;  %v1702_v36 = vshrl.u32 %v1430_v59, 16  ;;  %6686 = vmatpush3.bf16.msra.mxu1 %v7181_v15  ;;  %v859_v52 = vld [vmem:[#allocation2 + $0xbc] sm:$0x1]  ;;  %v7182_v57 = vld [vmem:[%s9919_s2 + $0x100] sm:$0xff]  }
 0x17f   : > { %vm683_vm3 = vcmp.ge.f32.partialorder %v651_v0, 0.0  ;;  %v719_v32 = vmul.f32 %v7933_v45, %v651_v0  ;;  %v1705_v4 = vshll.u32 %v1430_v59, 16  ;;  %v1711_v11 = vshll.u32 %v1431_v1, 16  ;;  %6993 = vmatprep.subr.bf16.mxu1 %v7182_v57  ;;  %v7183_v15 = vld [vmem:[%s9919_s2 + $0xc0] sm:$0xff]  }
 0x180   : > { %3948 = vrot.lane.b32.xlu1 %v6482_v22, %s7423_s12  ;;  %2477 = vrot.lane.b32.xlu0 %v7160_v56, %s7423_s12  ;;  %v753_v6 = vsel %vm685_vm1, %v653_v33, %v721_v23  ;;  %v1715_v41 = vshrl.u32 %v1431_v1, 16  ;;  %vm686_vm8 = vcmp.ge.f32.partialorder %v654_v2, 0.0  ;;  %v722_v14 = vmul.f32 %v7933_v45, %v654_v2 }
 0x181   : > { %v6650_v3 = vpack.c.bf16 %v753_v6, %v753_v6  ;;  %v751_v8 = vsel %vm683_vm3, %v651_v0, %v719_v32  ;;  %v1704_v29 = vrot.slane %v1702_v36, 4  ;;  %v1707_v49 = vrot.slane %v1705_v4, 5  ;;  %v1403_v35 = vld [vmem:[#allocation2 + $0xc0] sm:$0xf]  ;;  %v3391_v4 = vld [vmem:[#allocation2 + $0x34] sm:$0xf]  ;;  %6783 = vmatprep.subr.bf16.mxu0 %v7183_v15 }
 0x182   : > { %v6648_v18 = vpack.c.bf16 %v751_v8, %v751_v8  ;;  %v1713_v34 = vrot.slane %v1711_v11, 5  ;;  %v754_v39 = vsel %vm686_vm8, %v654_v2, %v722_v14  ;;  %v1717_v31 = vrot.slane %v1715_v41, 4  ;;  %v3420_v8 = vld [vmem:[#allocation2 + $0x38] sm:$0x1]  ;;  %v8091_v14 = vld [vmem:[#allocation2 + $0x24] sm:$0xe] }
 0x183   : > { %v1231_v37 = vshrl.u32 %v6650_v3, 16  ;;  %v1234_v12 = vshll.u32 %v6650_v3, 16  ;;  %v6651_v46 = vpack.c.bf16 %v754_v39, %v754_v39  ;;  %v1708_v50 = vor.u32 %v1707_v49, %v1704_v29  ;;  %v1396_v26 = vld [vmem:[#allocation2 + $0xb4] sm:$0xf]  ;;  %v8100_v29 = vld [vmem:[#allocation2 + $0x28] sm:$0xf] }
 0x184   : > { %3275 = vrot.lane.b32.xlu1 %v6450_v21, %s7423_s12  ;;  %v1214_v43 = vshrl.u32 %v6648_v18, 16  ;;  %v1217_v19 = vshll.u32 %v6648_v18, 16  ;;  %v1718_v17 = vor.u32 %v1717_v31, %v1713_v34  ;;  %v1721_v54 = vshll.u32 %v1452_v42, 16  ;;  %v3390_v21 = vld [vmem:[#allocation2 + $0x30] sm:$0xf]  ;;  %v7189_v15 = vld [vmem:[%s9919_s2 + $0xd8] sm:$0xff]  }
 0x185   : > { %v1233_v51 = vrot.slane %v1231_v37, 7  ;;  %v616_v55 = vmul.f32 %v7903_v9, %v7744_v10  ;;  %v1239_v56 = vshrl.u32 %v6651_v46, 16  ;;  %v1242_v33 = vshll.u32 %v6651_v46, 16  ;;  %v1407_v32 = vld [vmem:[#allocation2 + $0xc8] sm:$0x1]  ;;  %v7161_v39 = vld [vmem:[#allocation2 + $0x90] sm:$0xff]  }
 0x186   : > { %v8073_v16 = vrot.slane %v1214_v43, 7  ;;  %v1709_v60 = vrot.slane %v1708_v50, 4  ;;  %v1719_v0 = vrot.slane %v1718_v17, 4  ;;  %v1723_v61 = vrot.slane %v1721_v54, 5  ;;  %v8107_v31 = vld [vmem:[#allocation2 + $0x2c] sm:$0x1] }
 0x187   : > { %v1236_v59 = vor.u32 %v1234_v12, %v1233_v51  ;;  %v1237_v62 = vrot.slane %v1233_v51, 4  ;;  %v1241_v10 = vrot.slane %v1239_v56, 7  ;;  %v652_v36 = vadd.f32 %v7918_v27, %v616_v55  ;;  %v7184_v27 = vld [vmem:[%s9919_s2 + $0x80] sm:$0xff]   ;;  %v7185_v50 = vld [vmem:[%s9919_s2 + $0xc8] sm:$0xff]  }
 0x188   : > { %v1219_v1 = vor.u32 %v1217_v19, %v8073_v16  ;;  %v1220_v22 = vrot.slane %v8073_v16, 4  ;;  %v1714_v9 = vsel %vm7594_vm10, %v1709_v60, %v1713_v34  ;;  %v1724_v2 = vsel %vm7594_vm10, %v1719_v0, %v1723_v61  ;;  %6784 = vmatpush3.bf16.msra.mxu0 %v7184_v27  ;;  %v7186_v51 = vld [vmem:[%s9919_s2 + $0x88] sm:$0xff]   ;;  %v3011_v55 = vld [vmem:[#allocation2 + $0x84] sm:$0xe] }
 0x189   : > { %v1404_v23 = vsel %vm7644_vm0, %v1236_v59, %v1403_v35  ;;  %v860_v6 = vsel %vm7521_vm6, 0, %v859_v52  ;;  %v1244_v41 = vor.u32 %v1242_v33, %v1241_v10  ;;  %v1246_v13 = vrot.slane %v1241_v10, 4  ;;  %v1432_v52 = vld [vmem:[#allocation2 + $0x84] sm:$0xf]  ;;  %6785 = vmatprep.subr.bf16.mxu0 %v7185_v50  ;;  %v1433_v61 = vld [vmem:[#allocation2 + $0x88] sm:$0xf] }
 0x18a   : > { %1405 = vst [vmem:[#allocation2 + $0xc0] sm:$0xf] %v1404_v23  ;;  %v1397_v11 = vsel %vm7644_vm0, %v1219_v1, %v1396_v26  ;;  %v6363_v3 = vcombine.low %v1714_v9, %v1724_v2  ;;  %861 = vst [vmem:[#allocation2 + $0xbc] sm:$0x1] %v860_v6  ;;  %vm684_vm9 = vcmp.ge.f32.partialorder %v652_v36, 0.0  ;;  %v720_v30 = vmul.f32 %v7933_v45, %v652_v36  ;;  %v7187_v1 = vld [vmem:[%s9919_s2 + $0xd0] sm:$0xff]  }
 0x18b   : > { %1398 = vst [vmem:[#allocation2 + $0xb4] sm:$0xf] %v1397_v11  ;;  %v3483_v18 = vshrl.u32 %v3390_v21, 16  ;;  %v3486_v42 = vshll.u32 %v3390_v21, 16  ;;  %v1245_v49 = vsel %vm7655_vm5, %v1237_v62, %v1244_v41  ;;  %v1408_v34 = vsel %vm7513_vm4, %v1246_v13, %v1407_v32  ;;  %v1453_v23 = vld [vmem:[#allocation2 + $0x8c] sm:$0x1] }
 0x18c   : > { %1993 = vrot.lane.b32.xlu0 %v6363_v3, %s7423_s12  ;;  %v3492_v37 = vshll.u32 %v3391_v4, 16  ;;  %v3496_v12 = vshrl.u32 %v3391_v4, 16  ;;  %1406 = vst.msk [vmem:[#allocation2 + $0xc4] sm:$0xf] %vm884_vm7, %v1245_v49  ;;  %1409 = vst [vmem:[#allocation2 + $0xc8] sm:$0x1] %v1408_v34  ;;  %v752_v45 = vsel %vm684_vm9, %v652_v36, %v720_v30  ;;  %6786 = vmatpush3.bf16.msra.mxu0 %v7186_v51 }
 0x18d   : > { %v3485_v43 = vrot.slane %v3483_v18, 4  ;;  %v3488_v19 = vrot.slane %v3486_v42, 5  ;;  %v3502_v46 = vshll.u32 %v3420_v8, 16  ;;  %v6649_v35 = vpack.c.bf16 %v752_v45, %v752_v45  ;;  %v3392_v11 = vld [vmem:[#allocation2 + $0x3c] sm:$0xf]  ;;  %6787 = vmatprep.subr.bf16.mxu0 %v7187_v1  ;;  %v7188_v41 = vld [vmem:[%s9919_s2 + $0x90] sm:$0xff]  }
 0x18e   : > { %v3494_v17 = vrot.slane %v3492_v37, 5  ;;  %v3498_v54 = vrot.slane %v3496_v12, 4  ;;  %v6419_v57 = vrot.slane %v8091_v14, 9  ;;  %v3081_v0 = vrot.slane %v8100_v29, 5  ;;  %v3393_v49 = vld [vmem:[#allocation2 + $0x40] sm:$0xf] }
 0x18f   : > { %v3489_v56 = vor.u32 %v3488_v19, %v3485_v43  ;;  %v3504_v33 = vrot.slane %v3502_v46, 5  ;;  %v1222_v59 = vshrl.u32 %v6649_v35, 16  ;;  %v1225_v62 = vshll.u32 %v6649_v35, 16  ;;  %v3421_v45 = vld [vmem:[#allocation2 + $0x44] sm:$0x1]  ;;  %v7190_v43 = vld [vmem:[%s9919_s2 + $0x98] sm:$0xff]  }
 0x190   : > { %v3499_v26 = vor.u32 %v3498_v54, %v3494_v17  ;;  %2479 = vrot.lane.b32.xlu0 %v7161_v39, %s7423_s12  ;;  %v3084_v21 = vrot.slane %v8107_v31, 5  ;;  %v1726_v32 = vshrl.u32 %v1432_v52, 16  ;;  %v1729_v2 = vshll.u32 %v1432_v52, 16  ;;  %6788 = vmatpush3.bf16.msra.mxu0 %v7188_v41  ;;  %v8148_v35 = vld [vmem:[#allocation2 + $0x34] sm:$0xf] }
 0x191   : > { %v1400_v10 = vld [vmem:[#allocation2 + $0xbc] sm:$0x1]  ;;  %v3490_v9 = vrot.slane %v3489_v56, 4  ;;  %v1224_v36 = vrot.slane %v1222_v59, 7  ;;  %v3083_v4 = vrot.slane %v3081_v0, 4  ;;  %v1735_v14 = vshll.u32 %v1433_v61, 16  ;;  %6789 = vmatprep.subr.bf16.mxu0 %v7189_v15 }
 0x192   : > { %v3500_v6 = vrot.slane %v3499_v26, 4  ;;  %v1728_v3 = vrot.slane %v1726_v32, 4  ;;  %v1731_v8 = vrot.slane %v1729_v2, 5  ;;  %v3082_v42 = vsel %vm7986_vm15, %v6419_v57, %v3081_v0  ;;  %v8152_v56 = vld [vmem:[#allocation2 + $0x38] sm:$0x1]  ;;  %v7192_v2 = vld [vmem:[%s9919_s2 + $0xa0] sm:$0xff]  }
 0x193   : > { %v3495_v13 = vsel %vm7594_vm10, %v3490_v9, %v3494_v17  ;;  %v1227_v27 = vor.u32 %v1225_v62, %v1224_v36  ;;  %v1229_v30 = vrot.slane %v1224_v36, 4  ;;  %v3085_v37 = vsel %vm7986_vm15, %v3083_v4, %v3084_v21  ;;  %v1434_v62 = vld [vmem:[#allocation2 + $0x90] sm:$0xf]  ;;  %v1435_v41 = vld [vmem:[#allocation2 + $0x94] sm:$0xf] }
 0x194   : > { %v3505_v18 = vsel %vm7594_vm10, %v3500_v6, %v3504_v33  ;;  %v1732_v12 = vor.u32 %v1731_v8, %v1728_v3  ;;  %v1737_v39 = vrot.slane %v1735_v14, 5  ;;  %v1739_v50 = vshrl.u32 %v1433_v61, 16  ;;  %6790 = vmatpush3.bf16.msra.mxu0 %v7190_v43  ;;  %v1454_v15 = vld [vmem:[#allocation2 + $0x98] sm:$0x1] }
 0x195   : > { %v6483_v34 = vcombine.low %v3495_v13, %v3505_v18  ;;  %v1228_v19 = vsel %vm7655_vm5, %v1220_v22, %v1227_v27  ;;  %v1401_v46 = vsel %vm7513_vm4, %v1229_v30, %v1400_v10  ;;  %v1745_v51 = vshll.u32 %v1453_v23, 16  ;;  %v7191_v10 = vld [vmem:[%s9919_s2 + $0xe0] sm:$0xff]   ;;  %v7193_v13 = vld [vmem:[%s9919_s2 + $0xe8] sm:$0xff]  }
 0x196   : > { %1399 = vst.msk [vmem:[#allocation2 + $0xb8] sm:$0xf] %vm884_vm7, %v1228_v19  ;;  %1402 = vst [vmem:[#allocation2 + $0xbc] sm:$0x1] %v1401_v46  ;;  %v1733_v17 = vrot.slane %v1732_v12, 4  ;;  %v3507_v54 = vshrl.u32 %v3392_v11, 16  ;;  %v6451_v22 = vcombine.low %v3082_v42, %v3085_v37  ;;  %6791 = vmatprep.subr.bf16.mxu0 %v7191_v10 }
 0x197   : > { %3950 = vrot.lane.b32.xlu1 %v6483_v34, %s7423_s12  ;;  %v3510_v52 = vshll.u32 %v3392_v11, 16  ;;  %v3516_v16 = vshll.u32 %v3393_v49, 16  ;;  %v1741_v33 = vrot.slane %v1739_v50, 4  ;;  %v3520_v57 = vshrl.u32 %v3393_v49, 16  ;;  %v3394_v30 = vld [vmem:[#allocation2 + $0x48] sm:$0xf] }
 0x198   : > { %v3526_v59 = vshll.u32 %v3421_v45, 16  ;;  %v1747_v26 = vrot.slane %v1745_v51, 5  ;;  %v3509_v0 = vrot.slane %v3507_v54, 4  ;;  %v1738_v9 = vsel %vm7594_vm10, %v1733_v17, %v1737_v39  ;;  %6792 = vmatpush3.bf16.msra.mxu0 %v7192_v2  ;;  %v7194_v37 = vld [vmem:[%s9919_s2 + $0xa8] sm:$0xff]   ;;  %v7195_v54 = vld [vmem:[%s9919_s2 + $0xf0] sm:$0xff]  }
 0x199   : > { %v3512_v61 = vrot.slane %v3510_v52, 5  ;;  %v3518_v1 = vrot.slane %v3516_v16, 5  ;;  %v1742_v21 = vor.u32 %v1741_v33, %v1737_v39  ;;  %v3522_v23 = vrot.slane %v3520_v57, 4  ;;  %6793 = vmatprep.subr.bf16.mxu0 %v7193_v13  ;;  %v3395_v17 = vld [vmem:[#allocation2 + $0x4c] sm:$0xf] }
 0x19a   : > { %v3528_v32 = vrot.slane %v3526_v59, 5  ;;  %v6420_v4 = vrot.slane %v3004_v48, 9  ;;  %v3088_v11 = vrot.slane %v8148_v35, 5  ;;  %v3091_v14 = vrot.slane %v8152_v56, 5  ;;  %v3422_v33 = vld [vmem:[#allocation2 + $0x50] sm:$0x1] }
 0x19b   : > { %3277 = vrot.lane.b32.xlu1 %v6451_v22, %s7423_s12  ;;  %v3513_v36 = vor.u32 %v3512_v61, %v3509_v0  ;;  %v1743_v3 = vrot.slane %v1742_v21, 4  ;;  %v3523_v8 = vor.u32 %v3522_v23, %v3518_v1  ;;  %v1750_v27 = vshrl.u32 %v1434_v62, 16  ;;  %v7162_v59 = vld [vmem:[#allocation2 + $0x9c] sm:$0xff]   ;;  %v8189_v23 = vld [vmem:[#allocation2 + $0x44] sm:$0x1] }
 0x19c   : > { %v3090_v49 = vrot.slane %v3088_v11, 4  ;;  %v1753_v34 = vshll.u32 %v1434_v62, 16  ;;  %v1759_v43 = vshll.u32 %v1435_v41, 16  ;;  %v3089_v50 = vsel %vm7986_vm15, %v6420_v4, %v3088_v11  ;;  %v8187_v61 = vld [vmem:[#allocation2 + $0x40] sm:$0xf]  ;;  %6794 = vmatpush3.bf16.msra.mxu0 %v7194_v37 }
 0x19d   : > { %v3514_v18 = vrot.slane %v3513_v36, 4  ;;  %v1748_v12 = vsel %vm7594_vm10, %v1743_v3, %v1747_v26  ;;  %v3524_v39 = vrot.slane %v3523_v8, 4  ;;  %v1752_v45 = vrot.slane %v1750_v27, 4  ;;  %6795 = vmatprep.subr.bf16.mxu0 %v7195_v54  ;;  %v3005_v11 = vld [vmem:[#allocation2 + $0x3c] sm:$0xe] }
 0x19e   : > { %v6364_v19 = vcombine.low %v1738_v9, %v1748_v12  ;;  %v1755_v51 = vrot.slane %v1753_v34, 5  ;;  %v3092_v16 = vsel %vm7986_vm15, %v3090_v49, %v3091_v14  ;;  %v1761_v48 = vrot.slane %v1759_v43, 5  ;;  %v1436_v14 = vld [vmem:[#allocation2 + $0x9c] sm:$0xf]  ;;  %v1437_v34 = vld [vmem:[#allocation2 + $0xa0] sm:$0xf] }
 0x19f   : > { %v3519_v46 = vsel %vm7594_vm10, %v3514_v18, %v3518_v1  ;;  %v3529_v52 = vsel %vm7594_vm10, %v3524_v39, %v3528_v32  ;;  %v1763_v22 = vshrl.u32 %v1435_v41, 16  ;;  %v1769_v26 = vshll.u32 %v1454_v15, 16  ;;  %v7196_v15 = vld [vmem:[%s9919_s2 + $0xb0] sm:$0xff]  }
 0x1a0   : > { %1995 = vrot.lane.b32.xlu0 %v6364_v19, %s7423_s12  ;;  %v6484_v57 = vcombine.low %v3519_v46, %v3529_v52  ;;  %v1756_v62 = vor.u32 %v1755_v51, %v1752_v45  ;;  %v3531_v0 = vshrl.u32 %v3394_v30, 16  ;;  %v3534_v10 = vshll.u32 %v3394_v30, 16  ;;  %6796 = vmatpush3.bf16.msra.mxu0 %v7196_v15  ;;  %v1455_v52 = vld [vmem:[#allocation2 + $0xa4] sm:$0x1]  ;;  %v8220_v15 = vld [vmem:[#allocation2 + $0x4c] sm:$0xf] }
 0x1a1   : > { %v1765_v1 = vrot.slane %v1763_v22, 4  ;;  %v3540_v9 = vshll.u32 %v3395_v17, 16  ;;  %v3544_v21 = vshrl.u32 %v3395_v17, 16  ;;  %v1771_v2 = vrot.slane %v1769_v26, 5 }
 0x1a2   : > { %3952 = vrot.lane.b32.xlu1 %v6484_v57, %s7423_s12  ;;  %v1757_v32 = vrot.slane %v1756_v62, 4  ;;  %v3533_v36 = vrot.slane %v3531_v0, 4  ;;  %v3550_v4 = vshll.u32 %v3422_v33, 16  ;;  %v3536_v13 = vrot.slane %v3534_v10, 5  ;;  %v3397_v10 = vld [vmem:[#allocation2 + $0x58] sm:$0xf] }
 0x1a3   : > { %v1766_v41 = vor.u32 %v1765_v1, %v1761_v48  ;;  %v3542_v3 = vrot.slane %v3540_v9, 5  ;;  %v3546_v8 = vrot.slane %v3544_v21, 4  ;;  %v6452_v27 = vcombine.low %v3089_v50, %v3092_v16  ;;  %v7198_v9 = vld [vmem:[%s9919_s2 + $0xf8] sm:$0xff]  }
 0x1a4   : > { %2481 = vrot.lane.b32.xlu0 %v7162_v59, %s7423_s12  ;;  %v1762_v30 = vsel %vm7594_vm10, %v1757_v32, %v1761_v48  ;;  %v3552_v18 = vrot.slane %v3550_v4, 5  ;;  %v3537_v12 = vor.u32 %v3536_v13, %v3533_v36  ;;  %v6421_v45 = vrot.slane %v3005_v11, 9  ;;  %v3396_v59 = vld [vmem:[#allocation2 + $0x54] sm:$0xf]  ;;  %v7199_v21 = vld [vmem:[%s9919_s2 + $0xb8] sm:$0xff]   ;;  %6797 = vmatprep.subr.bf16.mxu0 %v7198_v9 }
 0x1a5   : > { %v1767_v37 = vrot.slane %v1766_v41, 4  ;;  %v3547_v39 = vor.u32 %v3546_v8, %v3542_v3  ;;  %v3095_v43 = vrot.slane %v8187_v61, 5  ;;  %v3098_v19 = vrot.slane %v8189_v23, 5  ;;  %v3423_v41 = vld [vmem:[#allocation2 + $0x5c] sm:$0x1]  ;;  %6798 = vmatpush3.bf16.msra.mxu0 %v7199_v21 }
 0x1a6   : > { %3279 = vrot.lane.b32.xlu1 %v6452_v27, %s7423_s12  ;;  %v1774_v46 = vshrl.u32 %v1436_v14, 16  ;;  %v1777_v50 = vshll.u32 %v1436_v14, 16  ;;  %v3538_v17 = vrot.slane %v3537_v12, 4  ;;  %v1783_v16 = vshll.u32 %v1437_v34, 16  ;;  %v8223_v12 = vld [vmem:[#allocation2 + $0x50] sm:$0x1] }
 0x1a7   : > { %v1772_v51 = vsel %vm7594_vm10, %v1767_v37, %v1771_v2  ;;  %v3548_v54 = vrot.slane %v3547_v39, 4  ;;  %v3096_v22 = vsel %vm7986_vm15, %v6421_v45, %v3095_v43  ;;  %v3097_v33 = vrot.slane %v3095_v43, 4  ;;  %v7163_v2 = vld [vmem:[#allocation2 + $0xa8] sm:$0xff]  }
 0x1a8   : > { %v6365_v48 = vcombine.low %v1762_v30, %v1772_v51  ;;  %v1776_v57 = vrot.slane %v1774_v46, 4  ;;  %v3543_v62 = vsel %vm7594_vm10, %v3538_v17, %v3542_v3  ;;  %v1779_v0 = vrot.slane %v1777_v50, 5 }
 0x1a9   : > { %v3553_v26 = vsel %vm7594_vm10, %v3548_v54, %v3552_v18  ;;  %v1785_v1 = vrot.slane %v1783_v16, 5  ;;  %v3099_v36 = vsel %vm7986_vm15, %v3097_v33, %v3098_v19  ;;  %v1787_v4 = vshrl.u32 %v1437_v34, 16  ;;  %v3006_v19 = vld [vmem:[#allocation2 + $0x48] sm:$0xe] }
 0x1aa   : > { %1997 = vrot.lane.b32.xlu0 %v6365_v48, %s7423_s12  ;;  %v6485_v32 = vcombine.low %v3543_v62, %v3553_v26  ;;  %v1793_v11 = vshll.u32 %v1455_v52, 16  ;;  %v1780_v3 = vor.u32 %v1779_v0, %v1776_v57  ;;  %v3555_v8 = vshrl.u32 %v3396_v59, 16  ;;  %v1438_v54 = vld [vmem:[#allocation2 + $0xa8] sm:$0xf] }
 0x1ab   : > { %v3558_v14 = vshll.u32 %v3396_v59, 16  ;;  %v6453_v27 = vcombine.low %v3096_v22, %v3099_v36  ;;  %v1789_v30 = vrot.slane %v1787_v4, 4  ;;  %v3564_v18 = vshll.u32 %v3397_v10, 16  ;;  %v1456_v4 = vld [vmem:[#allocation2 + $0xb0] sm:$0x1] }
 0x1ac   : > { %3954 = vrot.lane.b32.xlu1 %v6485_v32, %s7423_s12  ;;  %v3568_v37 = vshrl.u32 %v3397_v10, 16  ;;  %v1781_v34 = vrot.slane %v1780_v3, 4  ;;  %v3557_v39 = vrot.slane %v3555_v8, 4  ;;  %v3574_v43 = vshll.u32 %v3423_v41, 16  ;;  %v1439_v10 = vld [vmem:[#allocation2 + $0xac] sm:$0xf] }
 0x1ad   : > { %v3560_v45 = vrot.slane %v3558_v14, 5  ;;  %v1790_v46 = vor.u32 %v1789_v30, %v1785_v1  ;;  %v1795_v50 = vrot.slane %v1793_v11, 5  ;;  %v3566_v51 = vrot.slane %v3564_v18, 5  ;;  %v3398_v14 = vld [vmem:[#allocation2 + $0x60] sm:$0xf] }
 0x1ae   : > { %2483 = vrot.lane.b32.xlu0 %v7163_v2, %s7423_s12  ;;  %v3570_v17 = vrot.slane %v3568_v37, 4  ;;  %v1786_v52 = vsel %vm7594_vm10, %v1781_v34, %v1785_v1  ;;  %v3576_v48 = vrot.slane %v3574_v43, 5  ;;  %v6422_v59 = vrot.slane %v3006_v19, 9  ;;  %v3399_v34 = vld [vmem:[#allocation2 + $0x64] sm:$0xf] }
 0x1af   : > { %v3561_v16 = vor.u32 %v3560_v45, %v3557_v39  ;;  %v1791_v33 = vrot.slane %v1790_v46, 4  ;;  %v3102_v62 = vrot.slane %v8220_v15, 5  ;;  %v3105_v0 = vrot.slane %v8223_v12, 5  ;;  %v7164_v45 = vld [vmem:[#allocation2 + $0xb4] sm:$0xff]  }
 0x1b0   : > { %3281 = vrot.lane.b32.xlu1 %v6453_v27, %s7423_s12  ;;  %v3571_v57 = vor.u32 %v3570_v17, %v3566_v51  ;;  %v1798_v9 = vshrl.u32 %v1438_v54, 16  ;;  %v1801_v21 = vshll.u32 %v1438_v54, 16  ;;  %v1807_v18 = vshll.u32 %v1439_v10, 16 }
 0x1b1   : > { %v3562_v26 = vrot.slane %v3561_v16, 4  ;;  %v1796_v1 = vsel %vm7594_vm10, %v1791_v33, %v1795_v50  ;;  %v3104_v36 = vrot.slane %v3102_v62, 4  ;;  %v3103_v30 = vsel %vm7986_vm15, %v6422_v59, %v3102_v62  ;;  %v3424_v50 = vld [vmem:[#allocation2 + $0x68] sm:$0x1]  ;;  %v8244_v16 = vld [vmem:[#allocation2 + $0x58] sm:$0xf] }
 0x1b2   : > { %v3572_v32 = vrot.slane %v3571_v57, 4  ;;  %v6366_v11 = vcombine.low %v1786_v52, %v1796_v1  ;;  %v1800_v3 = vrot.slane %v1798_v9, 4  ;;  %v1803_v8 = vrot.slane %v1801_v21, 5  ;;  %v8247_v62 = vld [vmem:[#allocation2 + $0x5c] sm:$0x1]  ;;  %v8249_v1 = vpop.permute.xlu0 %2457 }
 0x1b3   : > { %v3567_v41 = vsel %vm7594_vm10, %v3562_v26, %v3566_v51  ;;  %v1811_v37 = vshrl.u32 %v1439_v10, 16  ;;  %v3106_v43 = vsel %vm7986_vm15, %v3104_v36, %v3105_v0  ;;  %v1817_v46 = vshll.u32 %v1456_v4, 16  ;;  %v3007_v21 = vld [vmem:[#allocation2 + $0x54] sm:$0xe] }
 0x1b4   : > { %v3577_v27 = vsel %vm7594_vm10, %v3572_v32, %v3576_v48  ;;  %1999 = vrot.lane.b32.xlu0 %v6366_v11, %s7423_s12  ;;  %v1804_v19 = vor.u32 %v1803_v8, %v1800_v3  ;;  %v1809_v51 = vrot.slane %v1807_v18, 5  ;;  %v3579_v54 = vshrl.u32 %v3398_v14, 16 }
 0x1b5   : > { %v6486_v39 = vcombine.low %v3567_v41, %v3577_v27  ;;  %v1813_v17 = vrot.slane %v1811_v37, 4  ;;  %v3582_v52 = vshll.u32 %v3398_v14, 16  ;;  %v1819_v33 = vrot.slane %v1817_v46, 5  ;;  %v1440_v41 = vld [vmem:[#allocation2 + $0xb4] sm:$0xf] }
 0x1b6   : > { %v1805_v48 = vrot.slane %v1804_v19, 4  ;;  %v3588_v57 = vshll.u32 %v3399_v34, 16  ;;  %v3592_v59 = vshrl.u32 %v3399_v34, 16  ;;  %v3581_v10 = vrot.slane %v3579_v54, 4  ;;  %v1457_v19 = vld [vmem:[#allocation2 + $0xbc] sm:$0x1] }
 0x1b7   : > { %3956 = vrot.lane.b32.xlu1 %v6486_v39, %s7423_s12  ;;  %v1814_v26 = vor.u32 %v1813_v17, %v1809_v51  ;;  %v3584_v0 = vrot.slane %v3582_v52, 5  ;;  %v3598_v9 = vshll.u32 %v3424_v50, 16  ;;  %v6454_v32 = vcombine.low %v3103_v30, %v3106_v43  ;;  %v1441_v30 = vld [vmem:[#allocation2 + $0xb8] sm:$0xf]  ;;  %v3403_v27 = vld [vmem:[#allocation2 + $0x7c] sm:$0xf] }
 0x1b8   : > { %2485 = vrot.lane.b32.xlu0 %v7164_v45, %s7423_s12  ;;  %v1810_v36 = vsel %vm7594_vm10, %v1805_v48, %v1809_v51  ;;  %v3590_v4 = vrot.slane %v3588_v57, 5  ;;  %v3594_v11 = vrot.slane %v3592_v59, 4  ;;  %v6423_v37 = vrot.slane %v3007_v21, 9  ;;  %v3400_v48 = vld [vmem:[#allocation2 + $0x6c] sm:$0xf]  ;;  %v7165_v21 = vld [vmem:[#allocation2 + $0xc0] sm:$0xff]  }
 0x1b9   : > { %v1815_v3 = vrot.slane %v1814_v26, 4  ;;  %v3585_v8 = vor.u32 %v3584_v0, %v3581_v10  ;;  %v3600_v14 = vrot.slane %v3598_v9, 5  ;;  %v3109_v34 = vrot.slane %v8244_v16, 5  ;;  %v3401_v0 = vld [vmem:[#allocation2 + $0x70] sm:$0xf]  ;;  %v8264_v9 = vpop.permute.xlu0 %1973 }
 0x1ba   : > { %v3595_v18 = vor.u32 %v3594_v11, %v3590_v4  ;;  %v3112_v39 = vrot.slane %v8247_v62, 5  ;;  %v1822_v46 = vshrl.u32 %v1440_v41, 16  ;;  %v1825_v50 = vshll.u32 %v1440_v41, 16  ;;  %v3425_v41 = vld [vmem:[#allocation2 + $0x74] sm:$0x1] }
 0x1bb   : > { %3283 = vrot.lane.b32.xlu1 %v6454_v32, %s7423_s12  ;;  %v1820_v45 = vsel %vm7594_vm10, %v1815_v3, %v1819_v33  ;;  %v3586_v43 = vrot.slane %v3585_v8, 4  ;;  %v3110_v54 = vsel %vm7986_vm15, %v6423_v37, %v3109_v34  ;;  %v3111_v52 = vrot.slane %v3109_v34, 4  ;;  %v3402_v37 = vld [vmem:[#allocation2 + $0x78] sm:$0xf] }
 0x1bc   : > { %v6367_v51 = vcombine.low %v1810_v36, %v1820_v45  ;;  %v3596_v17 = vrot.slane %v3595_v18, 4  ;;  %v1824_v59 = vrot.slane %v1822_v46, 4  ;;  %v1827_v26 = vrot.slane %v1825_v50, 5 }
 0x1bd   : > { %v3591_v57 = vsel %vm7594_vm10, %v3586_v43, %v3590_v4  ;;  %v1831_v10 = vshll.u32 %v1441_v30, 16  ;;  %v3113_v32 = vsel %vm7986_vm15, %v3111_v52, %v3112_v39  ;;  %v1835_v36 = vshrl.u32 %v1441_v30, 16  ;;  %v8272_v39 = vpop.permute.xlu1 %2459  ;;  %v3426_v52 = vld [vmem:[#allocation2 + $0x80] sm:$0x1] }
 0x1be   : > { %2001 = vrot.lane.b32.xlu0 %v6367_v51, %s7423_s12  ;;  %v3601_v33 = vsel %vm7594_vm10, %v3596_v17, %v3600_v14  ;;  %v1841_v11 = vshll.u32 %v1457_v19, 16  ;;  %v6455_v4 = vcombine.low %v3110_v54, %v3113_v32  ;;  %v1828_v8 = vor.u32 %v1827_v26, %v1824_v59 }
 0x1bf   : > { %v6487_v3 = vcombine.low %v3591_v57, %v3601_v33  ;;  %v1833_v18 = vrot.slane %v1831_v10, 5  ;;  %v1837_v34 = vrot.slane %v1835_v36, 4  ;;  %v3603_v43 = vshrl.u32 %v3400_v48, 16  ;;  %v8277_v33 = vpop.permute.xlu0 %2461 }
 0x1c0   : > { %v1843_v45 = vrot.slane %v1841_v11, 5  ;;  %v3606_v46 = vshll.u32 %v3400_v48, 16  ;;  %v1829_v50 = vrot.slane %v1828_v8, 4  ;;  %v3612_v14 = vshll.u32 %v3401_v0, 16 }
 0x1c1   : > { %3958 = vrot.lane.b32.xlu1 %v6487_v3, %s7423_s12  ;;  %v3616_v51 = vshrl.u32 %v3401_v0, 16  ;;  %v3622_v17 = vshll.u32 %v3425_v41, 16  ;;  %v1838_v30 = vor.u32 %v1837_v34, %v1833_v18  ;;  %v3605_v19 = vrot.slane %v3603_v43, 4  ;;  %v8279_v41 = vld [vmem:[#allocation2 + $0x64] sm:$0xf] }
 0x1c2   : > { %2487 = vrot.lane.b32.xlu0 %v7165_v21, %s7423_s12  ;;  %v3608_v54 = vrot.slane %v3606_v46, 5  ;;  %v3627_v57 = vshrl.u32 %v3402_v37, 16  ;;  %v1834_v59 = vsel %vm7594_vm10, %v1829_v50, %v1833_v18  ;;  %v3614_v48 = vrot.slane %v3612_v14, 5  ;;  %9954 = vst [vmem:[#allocation4_spill] sm:$0xff] %v8279_v41  ;;  %v8282_v43 = vld [vmem:[#allocation2 + $0x68] sm:$0x1]  ;;  %v8284_v18 = vpop.permute.xlu1 %1975 }
 0x1c3   : > { %v3618_v26 = vrot.slane %v3616_v51, 4  ;;  %v3624_v10 = vrot.slane %v3622_v17, 5  ;;  %v1839_v0 = vrot.slane %v1838_v30, 4  ;;  %v3630_v11 = vshll.u32 %v3402_v37, 16  ;;  %9955 = vst [vmem:[#allocation5_spill] sm:$0xff] %v8282_v43 }
 0x1c4   : > { %v3609_v32 = vor.u32 %v3608_v54, %v3605_v19  ;;  %v3629_v36 = vrot.slane %v3627_v57, 4  ;;  %v3636_v3 = vshll.u32 %v3403_v27, 16  ;;  %v3640_v8 = vshrl.u32 %v3403_v27, 16  ;;  %v3008_v37 = vld [vmem:[#allocation2 + $0x60] sm:$0xe] }
 0x1c5   : > { %3285 = vrot.lane.b32.xlu1 %v6455_v4, %s7423_s12  ;;  %v3619_v21 = vor.u32 %v3618_v26, %v3614_v48  ;;  %v3646_v34 = vshll.u32 %v3426_v52, 16  ;;  %v1844_v50 = vsel %vm7594_vm10, %v1839_v0, %v1843_v45  ;;  %v3632_v51 = vrot.slane %v3630_v11, 5  ;;  %v3404_v54 = vld [vmem:[#allocation2 + $0x84] sm:$0xf]  ;;  %v3405_v11 = vld [vmem:[#allocation2 + $0x88] sm:$0xf] }
 0x1c6   : > { %v3610_v14 = vrot.slane %v3609_v32, 4  ;;  %v6368_v17 = vcombine.low %v1834_v59, %v1844_v50  ;;  %v3638_v19 = vrot.slane %v3636_v3, 5  ;;  %v3642_v4 = vrot.slane %v3640_v8, 4  ;;  %v3009_v26 = vld [vmem:[#allocation2 + $0x6c] sm:$0xe] }
 0x1c7   : > { %v3620_v30 = vrot.slane %v3619_v21, 4  ;;  %v3633_v52 = vor.u32 %v3632_v51, %v3629_v36  ;;  %v3648_v57 = vrot.slane %v3646_v34, 5  ;;  %v6424_v32 = vrot.slane %v3008_v37, 9  ;;  %v8296_v21 = vpop.permute.xlu0 %2463  ;;  %v3427_v36 = vld [vmem:[#allocation2 + $0x8c] sm:$0x1] }
 0x1c8   : > { %v3615_v27 = vsel %vm7594_vm10, %v3610_v14, %v3614_v48  ;;  %2003 = vrot.lane.b32.xlu0 %v6368_v17, %s7423_s12  ;;  %v3643_v0 = vor.u32 %v3642_v4, %v3638_v19  ;;  %v3116_v59 = vrot.slane %v8279_v41, 5  ;;  %v3119_v48 = vrot.slane %v8282_v43, 5 }
 0x1c9   : > { %v3625_v45 = vsel %vm7594_vm10, %v3620_v30, %v3624_v10  ;;  %v3634_v8 = vrot.slane %v3633_v52, 4  ;;  %v3651_v34 = vshrl.u32 %v3404_v54, 16  ;;  %v3654_v17 = vshll.u32 %v3404_v54, 16  ;;  %v8301_v10 = vpop.permute.xlu1 %1977  ;;  %v8306_v52 = vld [vmem:[#allocation2 + $0x70] sm:$0xf] }
 0x1ca   : > { %v6488_v3 = vcombine.low %v3615_v27, %v3625_v45  ;;  %v3644_v50 = vrot.slane %v3643_v0, 4  ;;  %v3117_v14 = vsel %vm7986_vm15, %v6424_v32, %v3116_v59  ;;  %v3118_v51 = vrot.slane %v3116_v59, 4  ;;  %9956 = vst [vmem:[#allocation6_spill] sm:$0xff] %v8306_v52  ;;  %v8312_v59 = vld [vmem:[#allocation2 + $0x74] sm:$0x1] }
 0x1cb   : > { %v3639_v37 = vsel %vm7594_vm10, %v3634_v8, %v3638_v19  ;;  %v3653_v30 = vrot.slane %v3651_v34, 4  ;;  %v3660_v4 = vshll.u32 %v3405_v11, 16  ;;  %v3664_v27 = vshrl.u32 %v3405_v11, 16  ;;  %9957 = vst [vmem:[#allocation7_spill] sm:$0xff] %v8312_v59  ;;  %v3406_v8 = vld [vmem:[#allocation2 + $0x90] sm:$0xf] }
 0x1cc   : > { %3960 = vrot.lane.b32.xlu1 %v6488_v3, %s7423_s12  ;;  %v3649_v45 = vsel %vm7594_vm10, %v3644_v50, %v3648_v57  ;;  %v3120_v0 = vsel %vm7986_vm15, %v3118_v51, %v3119_v48  ;;  %v3656_v32 = vrot.slane %v3654_v17, 5  ;;  %v3670_v54 = vshll.u32 %v3427_v36, 16  ;;  %v3407_v34 = vld [vmem:[#allocation2 + $0x94] sm:$0xf]  ;;  %v8316_v50 = vpop.permute.xlu0 %2465  ;;  %v3010_v11 = vld [vmem:[#allocation2 + $0x78] sm:$0xe] }
 0x1cd   : > { %v6489_v3 = vcombine.low %v3639_v37, %v3649_v45  ;;  %v6456_v46 = vcombine.low %v3117_v14, %v3120_v0  ;;  %v3662_v2 = vrot.slane %v3660_v4, 5  ;;  %v3666_v19 = vrot.slane %v3664_v27, 4  ;;  %v3428_v37 = vld [vmem:[#allocation2 + $0x98] sm:$0x1]  ;;  %v8322_v45 = vpop.permute.xlu1 %1979 }
 0x1ce   : > { %v3657_v22 = vor.u32 %v3656_v32, %v3653_v30  ;;  %v3672_v13 = vrot.slane %v3670_v54, 5  ;;  %v6425_v36 = vrot.slane %v3009_v26, 9  ;;  %v3123_v14 = vrot.slane %v8306_v52, 5 }
 0x1cf   : > { %3962 = vrot.lane.b32.xlu0 %v6489_v3, %s7423_s12  ;;  %v3667_v48 = vor.u32 %v3666_v19, %v3662_v2  ;;  %v3126_v51 = vrot.slane %v8312_v59, 5  ;;  %v3675_v4 = vshrl.u32 %v3406_v8, 16  ;;  %v3678_v27 = vshll.u32 %v3406_v8, 16 }
 0x1d0   : > { %3287 = vrot.lane.b32.xlu1 %v6456_v46, %s7423_s12  ;;  %v3658_v17 = vrot.slane %v3657_v22, 4  ;;  %v3684_v30 = vshll.u32 %v3407_v34, 16  ;;  %v3124_v32 = vsel %vm7986_vm15, %v6425_v36, %v3123_v14  ;;  %v3125_v54 = vrot.slane %v3123_v14, 4  ;;  %v8326_v46 = vld [vmem:[#allocation2 + $0x7c] sm:$0xf] }
 0x1d1   : > { %v3668_v0 = vrot.slane %v3667_v48, 4  ;;  %v3688_v3 = vshrl.u32 %v3407_v34, 16  ;;  %9958 = vst [vmem:[#allocation8_spill] sm:$0xff] %v8326_v46  ;;  %v3677_v19 = vrot.slane %v3675_v4, 4  ;;  %v3680_v57 = vrot.slane %v3678_v27, 5  ;;  %v8337_v4 = vpop.permute.xlu0 %2467 }
 0x1d2   : > { %v3663_v26 = vsel %vm7594_vm10, %v3658_v17, %v3662_v2  ;;  %v3686_v22 = vrot.slane %v3684_v30, 5  ;;  %v3127_v48 = vsel %vm7986_vm15, %v3125_v54, %v3126_v51  ;;  %v3694_v42 = vshll.u32 %v3428_v37, 16  ;;  %v8334_v36 = vld [vmem:[#allocation2 + $0x80] sm:$0x1]  ;;  %v3408_v34 = vld [vmem:[#allocation2 + $0x9c] sm:$0xf] }
 0x1d3   : > { %v3673_v8 = vsel %vm7594_vm10, %v3668_v0, %v3672_v13  ;;  %v3690_v49 = vrot.slane %v3688_v3, 4  ;;  %9959 = vst [vmem:[#allocation9_spill] sm:$0xff] %v8334_v36  ;;  %v6457_v60 = vcombine.low %v3124_v32, %v3127_v48  ;;  %v3681_v2 = vor.u32 %v3680_v57, %v3677_v19  ;;  %v3409_v17 = vld [vmem:[#allocation2 + $0xa0] sm:$0xf]  ;;  %v8344_v32 = vpop.permute.xlu1 %1981 }
 0x1d4   : > { %v6490_v14 = vcombine.low %v3663_v26, %v3673_v8  ;;  %v3696_v30 = vrot.slane %v3694_v42, 5  ;;  %v6426_v0 = vrot.slane %v3010_v11, 9  ;;  %v3130_v37 = vrot.slane %v8326_v46, 5  ;;  %v3429_v26 = vld [vmem:[#allocation2 + $0xa4] sm:$0x1] }
 0x1d5   : > { %v3691_v27 = vor.u32 %v3690_v49, %v3686_v22  ;;  %3289 = vrot.lane.b32.xlu1 %v6457_v60, %s7423_s12  ;;  %v3682_v51 = vrot.slane %v3681_v2, 4  ;;  %v3133_v54 = vrot.slane %v8334_v36, 5  ;;  %v3699_v3 = vshrl.u32 %v3408_v34, 16  ;;  %v8352_v2 = vld [vmem:[#allocation2 + $0x8c] sm:$0x1] }
 0x1d6   : > { %3964 = vrot.lane.b32.xlu0 %v6490_v14, %s7423_s12  ;;  %v3702_v19 = vshll.u32 %v3408_v34, 16  ;;  %v3708_v49 = vshll.u32 %v3409_v17, 16  ;;  %v3712_v42 = vshrl.u32 %v3409_v17, 16  ;;  %v3131_v8 = vsel %vm7986_vm15, %v6426_v0, %v3130_v37  ;;  %v8350_v14 = vld [vmem:[#allocation2 + $0x88] sm:$0xf]  ;;  %9961 = vst [vmem:[#allocation11_spill] sm:$0xff] %v8352_v2 }
 0x1d7   : > { %v3692_v57 = vrot.slane %v3691_v27, 4  ;;  %v3687_v11 = vsel %vm7594_vm10, %v3682_v51, %v3686_v22  ;;  %v3132_v60 = vrot.slane %v3130_v37, 4  ;;  %v3701_v48 = vrot.slane %v3699_v3, 4  ;;  %9960 = vst [vmem:[#allocation10_spill] sm:$0xff] %v8350_v14  ;;  %v3410_v51 = vld [vmem:[#allocation2 + $0xa8] sm:$0xf]  ;;  %v8359_v37 = vpop.permute.xlu0 %2469 }
 0x1d8   : > { %v3704_v27 = vrot.slane %v3702_v19, 5  ;;  %v3710_v6 = vrot.slane %v3708_v49, 5  ;;  %v3714_v34 = vrot.slane %v3712_v42, 4  ;;  %v3718_v0 = vshll.u32 %v3429_v26, 16  ;;  %v8365_v42 = vpop.permute.xlu1 %1983 }
 0x1d9   : > { %v3697_v13 = vsel %vm7594_vm10, %v3692_v57, %v3696_v30  ;;  %v3134_v22 = vsel %vm7986_vm15, %v3132_v60, %v3133_v54  ;;  %v3411_v30 = vld [vmem:[#allocation2 + $0xac] sm:$0xf]  ;;  %v6427_v19 = vrot.slane %v3011_v55, 9  ;;  %v3140_v49 = vrot.slane %v8352_v2, 5  ;;  %v3431_v2 = vld [vmem:[#allocation2 + $0xbc] sm:$0x1] }
 0x1da   : > { %v6491_v17 = vcombine.low %v3687_v11, %v3697_v13  ;;  %v6458_v3 = vcombine.low %v3131_v8, %v3134_v22  ;;  %v3705_v25 = vor.u32 %v3704_v27, %v3701_v48  ;;  %v3715_v40 = vor.u32 %v3714_v34, %v3710_v6  ;;  %v2089_v60 = vld [vmem:[#allocation2 + $0xc] sm:$0xe]  ;;  %v3430_v34 = vld [vmem:[#allocation2 + $0xb0] sm:$0x1] }
 0x1db   : > { %v3720_v57 = vrot.slane %v3718_v0, 5  ;;  %v3137_v13 = vrot.slane %v8350_v14, 5  ;;  %v3723_v11 = vshrl.u32 %v3410_v51, 16  ;;  %v3726_v8 = vshll.u32 %v3410_v51, 16  ;;  %v8378_v14 = vld [vmem:[#allocation2 + $0x98] sm:$0x1] }
 0x1dc   : > { %3966 = vrot.lane.b32.xlu0 %v6491_v17, %s7423_s12  ;;  %3291 = vrot.lane.b32.xlu1 %v6458_v3, %s7423_s12  ;;  %v3706_v54 = vrot.slane %v3705_v25, 4  ;;  %v3716_v26 = vrot.slane %v3715_v40, 4  ;;  %v3732_v17 = vshll.u32 %v3411_v30, 16  ;;  %v3736_v55 = vshrl.u32 %v3411_v30, 16  ;;  %v2090_v25 = vld [vmem:[#allocation2 + $0x10] sm:$0xf]  ;;  %v8380_v30 = vpop.permute.xlu0 %2471 }
 0x1dd   : > { %v3138_v48 = vsel %vm7986_vm15, %v6427_v19, %v3137_v13  ;;  %v3139_v27 = vrot.slane %v3137_v13, 4  ;;  %v3725_v5 = vrot.slane %v3723_v11, 4  ;;  %v3728_v3 = vrot.slane %v3726_v8, 5  ;;  %v2091_v40 = vld [vmem:[#allocation2 + $0x14] sm:$0x1]  ;;  %9963 = vst [vmem:[#allocation13_spill] sm:$0xff] %v8378_v14 }
 0x1de   : > { %v3711_v22 = vsel %vm7594_vm10, %v3706_v54, %v3710_v6  ;;  %v3721_v0 = vsel %vm7594_vm10, %v3716_v26, %v3720_v57  ;;  %v3734_v58 = vrot.slane %v3732_v17, 5  ;;  %v3738_v19 = vrot.slane %v3736_v55, 4  ;;  %v8376_v13 = vld [vmem:[#allocation2 + $0x94] sm:$0xf]  ;;  %v3012_v11 = vld [vmem:[#allocation2 + $0x90] sm:$0xe]  ;;  %v8384_v55 = vpop.permute.xlu1 %1985 }
 0x1df   : > { %v6492_v28 = vcombine.low %v3711_v22, %v3721_v0  ;;  %v3141_v51 = vsel %vm7986_vm15, %v3139_v27, %v3140_v49  ;;  %9962 = vst [vmem:[#allocation12_spill] sm:$0xff] %v8376_v13  ;;  %v3729_v57 = vor.u32 %v3728_v3, %v3725_v5  ;;  %v3742_v26 = vshll.u32 %v3430_v34, 16  ;;  %v2086_v8 = vld [vmem:[#allocation2] sm:$0xe]  ;;  %v2087_v17 = vld [vmem:[#allocation2 + $0x4] sm:$0xf] }
 0x1e0   : > { %v6459_v54 = vcombine.low %v3138_v48, %v3141_v51  ;;  %v3739_v22 = vor.u32 %v3738_v19, %v3734_v58  ;;  %vm2005_vm0 = vcmask 523264   ;;  %v6370_v49 = vrot.slane %v2089_v60, 9  ;;  %v2088_v5 = vld [vmem:[#allocation2 + $0x8] sm:$0x1] }
 0x1e1   : > { %3968 = vrot.lane.b32.xlu0 %v6492_v28, %s7423_s12  ;;  %v2194_v27 = vrot.slane %v2090_v25, 5  ;;  %v3730_v0 = vrot.slane %v3729_v57, 4  ;;  %v3744_v36 = vrot.slane %v3742_v26, 5  ;;  %v2197_v46 = vrot.slane %v2091_v40, 5  ;;  %v3412_v57 = vld [vmem:[#allocation2 + $0xb4] sm:$0xf] }
 0x1e2   : > { %3293 = vrot.lane.b32.xlu1 %v6459_v54, %s7423_s12  ;;  %v3740_v34 = vrot.slane %v3739_v22, 4  ;;  %v6428_v51 = vrot.slane %v3012_v11, 9  ;;  %v3144_v25 = vrot.slane %v8376_v13, 5  ;;  %v3147_v19 = vrot.slane %v8378_v14, 5  ;;  %v8404_v59 = vpop.permute.xlu1 %1987  ;;  %v3014_v14 = vld [vmem:[#allocation2 + $0xa8] sm:$0xe] }
 0x1e3   : > { %v2195_v3 = vsel %vm7986_vm15, %v6370_v49, %v2194_v27  ;;  %v2196_v28 = vrot.slane %v2194_v27, 4  ;;  %v3735_v60 = vsel %vm7594_vm10, %v3730_v0, %v3734_v58  ;;  %v6369_v54 = vrot.slane %v2086_v8, 9  ;;  %v3413_v49 = vld [vmem:[#allocation2 + $0xb8] sm:$0xf]  ;;  %v8398_v27 = vpop.permute.xlu0 %2473 }
 0x1e4   : > { %v3745_v40 = vsel %vm7594_vm10, %v3740_v34, %v3744_v36  ;;  %v2187_v22 = vrot.slane %v2087_v17, 5  ;;  %v2190_v48 = vrot.slane %v2088_v5, 5  ;;  %v3145_v58 = vsel %vm7986_vm15, %v6428_v51, %v3144_v25  ;;  %v3013_v51 = vld [vmem:[#allocation2 + $0x9c] sm:$0xe] }
 0x1e5   : > { %v2198_v26 = vsel %vm7986_vm15, %v2196_v28, %v2197_v46  ;;  %v6493_v11 = vcombine.low %v3735_v60, %v3745_v40  ;;  %v3146_v0 = vrot.slane %v3144_v25, 4  ;;  %v3747_v36 = vshrl.u32 %v3412_v57, 16  ;;  %v8411_v28 = vld [vmem:[#allocation2 + $0xa0] sm:$0xf]  ;;  %v8415_v40 = vld [vmem:[#allocation2 + $0xa4] sm:$0x1] }
 0x1e6   : > { %v6386_v6 = vcombine.low %v2195_v3, %v2198_v26  ;;  %v2188_v8 = vsel %vm7986_vm15, %v6369_v54, %v2187_v22  ;;  %v2189_v13 = vrot.slane %v2187_v22, 4  ;;  %v3750_v34 = vshll.u32 %v3412_v57, 16  ;;  %9964 = vst [vmem:[#allocation14_spill] sm:$0xff] %v8411_v28  ;;  %9965 = vst [vmem:[#allocation15_spill] sm:$0xff] %v8415_v40 }
 0x1e7   : > { %3970 = vrot.lane.b32.xlu0 %v6493_v11, %s7423_s12  ;;  %v3148_v17 = vsel %vm7986_vm15, %v3146_v0, %v3147_v19  ;;  %v3756_v5 = vshll.u32 %v3413_v49, 16  ;;  %v3760_v3 = vshrl.u32 %v3413_v49, 16  ;;  %v3749_v54 = vrot.slane %v3747_v36, 4  ;;  %v8437_v19 = vld [vmem:[#allocation2 + $0xac] sm:$0xf] }
 0x1e8   : > { %v2495_v46 = vsel %vm2005_vm0, %v6386_v6, %v8272_v39  ;;  %v6460_v60 = vcombine.low %v3145_v58, %v3148_v17  ;;  %v2191_v25 = vsel %vm7986_vm15, %v2189_v13, %v2190_v48  ;;  %v3752_v57 = vrot.slane %v3750_v34, 5  ;;  %v3414_v6 = vld [vmem:[#allocation2 + $0xc0] sm:$0xf]  ;;  %v8420_v17 = vpop.permute.xlu0 %1989  ;;  %v3415_v34 = vld [vmem:[#allocation2 + $0xc4] sm:$0xf]  ;;  %9966 = vst [vmem:[#allocation16_spill] sm:$0xff] %v8437_v19 }
 0x1e9   : > { %v6385_v26 = vcombine.low %v2188_v8, %v2191_v25  ;;  %v3758_v22 = vrot.slane %v3756_v5, 5  ;;  %v3762_v11 = vrot.slane %v3760_v3, 4  ;;  %v3766_v39 = vshll.u32 %v3431_v2, 16  ;;  %v7333_v3 = vld [vmem:[#allocation2] sm:$0xf] }
 0x1ea   : > { %3295 = vrot.lane.b32.xlu1 %v6460_v60, %s7423_s12  ;;  %v3753_v49 = vor.u32 %v3752_v57, %v3749_v54  ;;  %v6429_v58 = vrot.slane %v3013_v51, 9  ;;  %v3151_v8 = vrot.slane %v8411_v28, 5  ;;  %v3154_v5 = vrot.slane %v8415_v40, 5  ;;  %v7334_v25 = vld [vmem:[#allocation2 + $0x4] sm:$0xf]  ;;  %v8426_v57 = vpop.permute.xlu1 %3946 }
 0x1eb   : > { %v2491_v13 = vsel %vm2005_vm0, %v6385_v26, %v8249_v1  ;;  %v3763_v48 = vor.u32 %v3762_v11, %v3758_v22  ;;  %v3768_v36 = vrot.slane %v3766_v39, 5  ;;  %v6337_v60 = vcombine.low %v7333_v3, %v7334_v25  ;;  %v3432_v26 = vld [vmem:[#allocation2 + $0xc8] sm:$0x1]  ;;  %v8443_v28 = vld [vmem:[#allocation2 + $0xb0] sm:$0x1] }
 0x1ec   : > { %v3754_v2 = vrot.slane %v3753_v49, 4  ;;  %v3771_v54 = vshrl.u32 %v3414_v6, 16  ;;  %4794 = vmatprep.mubr.bf16.mxu1 %v2491_v13  ;;  %v3152_v0 = vsel %vm7986_vm15, %v6429_v58, %v3151_v8  ;;  %v3153_v1 = vrot.slane %v3151_v8, 4  ;;  %v7197_v39 = vld [vmem:[%s9919_s2 + $0x108] sm:$0xff]   ;;  %9967 = vst [vmem:[#allocation17_spill] sm:$0xff] %v8443_v28 }
 0x1ed   : > { %v3764_v51 = vrot.slane %v3763_v48, 4  ;;  %v3774_v11 = vshll.u32 %v3414_v6, 16  ;;  %v2008_v3 = vsel %vm2005_vm0, %v6337_v60, %v8264_v9  ;;  %v3780_v25 = vshll.u32 %v3415_v34, 16  ;;  %v2093_v60 = vld [vmem:[#allocation2 + $0x1c] sm:$0xf] }
 0x1ee   : > { %v3759_v49 = vsel %vm7594_vm10, %v3754_v2, %v3758_v22  ;;  %v3773_v13 = vrot.slane %v3771_v54, 4  ;;  %v3155_v6 = vsel %vm7986_vm15, %v3153_v1, %v3154_v5  ;;  %v3784_v8 = vshrl.u32 %v3415_v34, 16  ;;  %4795 = vmatmul.mubr.bf16.vlgmr.msra.gmra.mrb[16].mxu1 %v2008_v3  ;;  %v7335_v54 = vld [vmem:[%s9919_s2 + $0x100] sm:$0xff]   ;;  %v2096_v40 = vld [vmem:[#allocation2 + $0x28] sm:$0xf] }
 0x1ef   : > { %v3769_v58 = vsel %vm7594_vm10, %v3764_v51, %v3768_v36  ;;  %v3776_v48 = vrot.slane %v3774_v11, 5  ;;  %v6461_v2 = vcombine.low %v3152_v0, %v3155_v6  ;;  %v3782_v52 = vrot.slane %v3780_v25, 5  ;;  %6994 = vmatpush3.bf16.msra.mxu1 %v7335_v54  ;;  %4802 = vmatprep.mubr.bf16.mxu1 %v2495_v46  ;;  %v8448_v36 = vpop.permute.xlu0 %2475  ;;  %v2092_v11 = vld [vmem:[#allocation2 + $0x18] sm:$0xe]  ;;  %v7200_v0 = vld [vmem:[%s9919_s2 + $0x110] sm:$0xff]   ;;  %v8460_v25 = vpop.permute.xlu1 %3273 }
 0x1f0   : > { %v6494_v22 = vcombine.low %v3759_v49, %v3769_v58  ;;  %v3790_v9 = vshll.u32 %v3432_v26, 16  ;;  %v3786_v51 = vrot.slane %v3784_v8, 4  ;;  %6995 = vmatprep.subr.bf16.mxu1 %v7197_v39  ;;  %v6430_v26 = vrot.slane %v3014_v14, 9  ;;  %v8462_v54 = vld [vmem:[#allocation2 + $0xb8] sm:$0xf] }
 0x1f1   : > { %v3777_v34 = vor.u32 %v3776_v48, %v3773_v13  ;;  %3297 = vrot.lane.b32.xlu1 %v6461_v2, %s7423_s12  ;;  %v3158_v49 = vrot.slane %v8437_v19, 5  ;;  %v3161_v3 = vrot.slane %v8443_v28, 5  ;;  %v2094_v13 = vld [vmem:[#allocation2 + $0x20] sm:$0x1]  ;;  %v2201_v8 = vrot.slane %v2093_v60, 5  ;;  %9968 = vst [vmem:[#allocation18_spill] sm:$0xff] %v8462_v54 }
 0x1f2   : > { %3972 = vrot.lane.b32.xlu0 %v6494_v22, %s7423_s12  ;;  %v3787_v6 = vor.u32 %v3786_v51, %v3782_v52  ;;  %v3792_v48 = vrot.slane %v3790_v9, 5  ;;  %v6371_v1 = vrot.slane %v2092_v11, 9  ;;  %v7336_v46 = vld [vmem:[#allocation2 + $0xc] sm:$0xf]  ;;  %v7337_v14 = vld [vmem:[#allocation2 + $0x10] sm:$0xf] }
 0x1f3   : > { %v3778_v58 = vrot.slane %v3777_v34, 4  ;;  %v3159_v22 = vsel %vm7986_vm15, %v6430_v26, %v3158_v49  ;;  %v3160_v2 = vrot.slane %v3158_v49, 4  ;;  %v6338_v5 = vcombine.low %v7336_v46, %v7337_v14  ;;  %v3015_v19 = vld [vmem:[#allocation2 + $0xb4] sm:$0xe]  ;;  %6996 = vmatpush3.bf16.msra.mxu1 %v7197_v39  ;;  %v8468_v60 = vld [vmem:[#allocation2 + $0xbc] sm:$0x1]  ;;  %v8492_v41 = vpop.permute.xlu1 %3948 }
 0x1f4   : > { %v3788_v34 = vrot.slane %v3787_v6, 4  ;;  %v2203_v51 = vrot.slane %v2201_v8, 4  ;;  %v2204_v9 = vrot.slane %v2094_v13, 5  ;;  %9969 = vst [vmem:[#allocation19_spill] sm:$0xff] %v8468_v60  ;;  %6997 = vmatprep.subr.bf16.mxu1 %v7200_v0  ;;  %v7201_v26 = vld [vmem:[%s9919_s2 + $0x118] sm:$0xff]   ;;  %v2202_v46 = vsel %vm7986_vm15, %v6371_v1, %v2201_v8 }
 0x1f5   : > { %v3783_v28 = vsel %vm7594_vm10, %v3778_v58, %v3782_v52  ;;  %v3162_v11 = vsel %vm7986_vm15, %v3160_v2, %v3161_v3  ;;  %v2012_v39 = vsel %vm2005_vm0, %v6338_v5, %v8284_v18  ;;  %v2095_v49 = vld [vmem:[#allocation2 + $0x24] sm:$0xe]  ;;  %v2097_v13 = vld [vmem:[#allocation2 + $0x2c] sm:$0x1]  ;;  %v8480_v58 = vpop.permute.xlu0 %1991  ;;  %v6431_v3 = vrot.slane %v3015_v19, 9 }
 0x1f6   : > { %v3793_v6 = vsel %vm7594_vm10, %v3788_v34, %v3792_v48  ;;  %v6462_v14 = vcombine.low %v3159_v22, %v3162_v11  ;;  %v2205_v43 = vsel %vm7986_vm15, %v2203_v51, %v2204_v9  ;;  %4803 = vmatmul.mubr.bf16.gmra.mrb[20].mxu1 %v2012_v39  ;;  %v3165_v8 = vrot.slane %v8462_v54, 5  ;;  %v8488_v5 = vld [vmem:[#allocation2 + $0xc4] sm:$0xf]  ;;  %v8490_v52 = vld [vmem:[#allocation2 + $0xc8] sm:$0x1] }
 0x1f7   : > { %v6495_v2 = vcombine.low %v3783_v28, %v3793_v6  ;;  %v6387_v1 = vcombine.low %v2202_v46, %v2205_v43  ;;  %v3168_v18 = vrot.slane %v8468_v60, 5  ;;  %9970 = vst [vmem:[#allocation20_spill] sm:$0xff] %v8488_v5  ;;  %6998 = vmatpush3.bf16.msra.mxu1 %v7200_v0  ;;  %v6372_v48 = vrot.slane %v2095_v49, 9  ;;  %v7338_v19 = vld [vmem:[#allocation2 + $0x18] sm:$0xf] }
 0x1f8   : > { %3299 = vrot.lane.b32.xlu1 %v6462_v14, %s7423_s12  ;;  %v2211_v22 = vrot.slane %v2097_v13, 5  ;;  %v2208_v34 = vrot.slane %v2096_v40, 5  ;;  %v7339_v51 = vld [vmem:[#allocation2 + $0x1c] sm:$0xf]  ;;  %v3016_v43 = vld [vmem:[#allocation2 + $0xc0] sm:$0xe]  ;;  %6999 = vmatprep.subr.bf16.mxu1 %v7201_v26  ;;  %v3166_v0 = vsel %vm7986_vm15, %v6431_v3, %v3165_v8 }
 0x1f9   : > { %v6339_v28 = vcombine.low %v7338_v19, %v7339_v51  ;;  %3974 = vrot.lane.b32.xlu0 %v6495_v2, %s7423_s12  ;;  %v2499_v9 = vsel %vm2005_vm0, %v6387_v1, %v8277_v33  ;;  %v3167_v46 = vrot.slane %v3165_v8, 4  ;;  %v2098_v39 = vld [vmem:[#allocation2 + $0x30] sm:$0xe]  ;;  %v2099_v49 = vld [vmem:[#allocation2 + $0x34] sm:$0xf]  ;;  %v6432_v1 = vrot.slane %v3016_v43, 9  ;;  %v8510_v51 = vpop.permute.xlu0 %2477 }
 0x1fa   : > { %v2209_v40 = vsel %vm7986_vm15, %v6372_v48, %v2208_v34  ;;  %v2210_v13 = vrot.slane %v2208_v34, 4  ;;  %v2100_v2 = vld [vmem:[#allocation2 + $0x38] sm:$0x1]  ;;  %4810 = vmatprep.mubr.bf16.mxu1 %v2499_v9  ;;  %v3172_v3 = vrot.slane %v8488_v5, 5  ;;  %v3175_v8 = vrot.slane %v8490_v52, 5  ;;  %v8516_v5 = vpop.permute.xlu1 %3275 }
 0x1fb   : > { %v2016_v6 = vsel %vm2005_vm0, %v6339_v28, %v8301_v10  ;;  %v3169_v33 = vsel %vm7986_vm15, %v3167_v46, %v3168_v18  ;;  %v2101_v19 = vld [vmem:[#allocation2 + $0x3c] sm:$0xe]  ;;  %7000 = vmatpush3.bf16.msra.mxu1 %v7201_v26  ;;  %v6373_v34 = vrot.slane %v2098_v39, 9  ;;  %v2215_v28 = vrot.slane %v2099_v49, 5  ;;  %v2103_v14 = vld [vmem:[#allocation2 + $0x44] sm:$0x1] }
 0x1fc   : > { %v6463_v48 = vcombine.low %v3166_v0, %v3169_v33  ;;  %v2212_v10 = vsel %vm7986_vm15, %v2210_v13, %v2211_v22  ;;  %v2102_v9 = vld [vmem:[#allocation2 + $0x40] sm:$0xf]  ;;  %v3173_v18 = vsel %vm7986_vm15, %v6432_v1, %v3172_v3  ;;  %v3174_v43 = vrot.slane %v3172_v3, 4  ;;  %v7340_v33 = vld [vmem:[#allocation2 + $0x24] sm:$0xf] }
 0x1fd   : > { %v6388_v11 = vcombine.low %v2209_v40, %v2212_v10  ;;  %v2218_v46 = vrot.slane %v2100_v2, 5  ;;  %v2216_v26 = vsel %vm7986_vm15, %v6373_v34, %v2215_v28  ;;  %v2217_v0 = vrot.slane %v2215_v28, 4  ;;  %v7341_v22 = vld [vmem:[#allocation2 + $0x28] sm:$0xf]  ;;  %v2105_v10 = vld [vmem:[#allocation2 + $0x4c] sm:$0xf] }
 0x1fe   : > { %3301 = vrot.lane.b32.xlu1 %v6463_v48, %s7423_s12  ;;  %v6340_v39 = vcombine.low %v7340_v33, %v7341_v22  ;;  %v6374_v49 = vrot.slane %v2101_v19, 9  ;;  %v2104_v13 = vld [vmem:[#allocation2 + $0x48] sm:$0xe]  ;;  %4811 = vmatmul.mubr.bf16.gmra.mrb[24].mxu1 %v2016_v6  ;;  %v3176_v2 = vsel %vm7986_vm15, %v3174_v43, %v3175_v8  ;;  %v2225_v1 = vrot.slane %v2103_v14, 5  ;;  %v2106_v48 = vld [vmem:[#allocation2 + $0x50] sm:$0x1] }
 0x1ff   : > { %v2503_v40 = vsel %vm2005_vm0, %v6388_v11, %v8296_v21  ;;  %v2222_v3 = vrot.slane %v2102_v9, 5  ;;  %v6464_v60 = vcombine.low %v3173_v18, %v3176_v2  ;;  %v2219_v34 = vsel %vm7986_vm15, %v2217_v0, %v2218_v46  ;;  %v7342_v19 = vld [vmem:[#allocation2 + $0x30] sm:$0xf]  ;;  %v7343_v33 = vld [vmem:[#allocation2 + $0x34] sm:$0xf]  ;;  %v8531_v18 = vpop.permute.xlu0 %1993 }
 0x200   : > { %v2020_v28 = vsel %vm2005_vm0, %v6340_v39, %v8322_v45  ;;  %v6341_v6 = vcombine.low %v7342_v19, %v7343_v33  ;;  %v2107_v22 = vld [vmem:[#allocation2 + $0x54] sm:$0xe]  ;;  %v2109_v54 = vld [vmem:[#allocation2 + $0x5c] sm:$0x1]  ;;  %4818 = vmatprep.mubr.bf16.mxu1 %v2503_v40  ;;  %v6389_v21 = vcombine.low %v2216_v26, %v2219_v34  ;;  %v6375_v8 = vrot.slane %v2104_v13, 9 }
 0x201   : > { %v2223_v11 = vsel %vm7986_vm15, %v6374_v49, %v2222_v3  ;;  %v2224_v14 = vrot.slane %v2222_v3, 4  ;;  %v2108_v9 = vld [vmem:[#allocation2 + $0x58] sm:$0xf]  ;;  %v2229_v43 = vrot.slane %v2105_v10, 5  ;;  %v2232_v46 = vrot.slane %v2106_v48, 5 }
 0x202   : > { %3303 = vrot.lane.b32.xlu1 %v6464_v60, %s7423_s12  ;;  %v8536_v45 = vsel %vm2005_vm0, %v6341_v6, %v8344_v32  ;;  %v7344_v0 = vld [vmem:[#allocation2 + $0x3c] sm:$0xf]  ;;  %v7345_v39 = vld [vmem:[#allocation2 + $0x40] sm:$0xf]  ;;  %v2111_v2 = vld [vmem:[#allocation2 + $0x64] sm:$0xf]  ;;  %v2507_v49 = vsel %vm2005_vm0, %v6389_v21, %v8316_v50 }
 0x203   : > { %v6342_v40 = vcombine.low %v7344_v0, %v7345_v39  ;;  %v2110_v26 = vld [vmem:[#allocation2 + $0x60] sm:$0xe]  ;;  %v2226_v13 = vsel %vm7986_vm15, %v2224_v14, %v2225_v1  ;;  %v6376_v3 = vrot.slane %v2107_v22, 9  ;;  %v2239_v34 = vrot.slane %v2109_v54, 5  ;;  %v2112_v60 = vld [vmem:[#allocation2 + $0x68] sm:$0x1] }
 0x204   : > { %v6390_v32 = vcombine.low %v2223_v11, %v2226_v13  ;;  %v2230_v10 = vsel %vm7986_vm15, %v6375_v8, %v2229_v43  ;;  %v2231_v48 = vrot.slane %v2229_v43, 4  ;;  %v2236_v6 = vrot.slane %v2108_v9, 5  ;;  %v7346_v0 = vld [vmem:[#allocation2 + $0x48] sm:$0xf]  ;;  %v7347_v50 = vld [vmem:[#allocation2 + $0x4c] sm:$0xf] }
 0x205   : > { %v8548_v33 = vsel %vm2005_vm0, %v6342_v40, %v8365_v42  ;;  %v6343_v21 = vcombine.low %v7346_v0, %v7347_v50  ;;  %v6377_v39 = vrot.slane %v2110_v26, 9  ;;  %v2243_v1 = vrot.slane %v2111_v2, 5  ;;  %v7348_v14 = vld [vmem:[#allocation2 + $0x54] sm:$0xf]  ;;  %v7349_v8 = vld [vmem:[#allocation2 + $0x58] sm:$0xf]  ;;  %v8562_v2 = vpop.permute.xlu0 %2479 }
 0x206   : > { %v8552_v54 = vsel %vm2005_vm0, %v6390_v32, %v8337_v4  ;;  %v2233_v22 = vsel %vm7986_vm15, %v2231_v48, %v2232_v46  ;;  %v2246_v11 = vrot.slane %v2112_v60, 5  ;;  %v6344_v43 = vcombine.low %v7348_v14, %v7349_v8  ;;  %4819 = vmatmul.mubr.bf16.gmra.mrb[28].mxu1 %v2020_v28  ;;  %v2113_v42 = vld [vmem:[#allocation2 + $0x6c] sm:$0xe]  ;;  %v2114_v4 = vld [vmem:[#allocation2 + $0x70] sm:$0xf] }
 0x207   : > { %v6391_v40 = vcombine.low %v2230_v10, %v2233_v22  ;;  %v2237_v9 = vsel %vm7986_vm15, %v6376_v3, %v2236_v6  ;;  %v2238_v13 = vrot.slane %v2236_v6, 4  ;;  %v8560_v26 = vsel %vm2005_vm0, %v6343_v21, %v8384_v55  ;;  %4826 = vmatprep.mubr.bf16.mxu1 %v2507_v49  ;;  %v7350_v32 = vld [vmem:[#allocation2 + $0x60] sm:$0xf]  ;;  %v7351_v10 = vld [vmem:[#allocation2 + $0x64] sm:$0xf] }
 0x208   : > { %v2244_v46 = vsel %vm7986_vm15, %v6377_v39, %v2243_v1  ;;  %v2245_v60 = vrot.slane %v2243_v1, 4  ;;  %v8568_v28 = vsel %vm2005_vm0, %v6344_v43, %v8404_v59  ;;  %v6345_v3 = vcombine.low %v7350_v32, %v7351_v10  ;;  %v2115_v48 = vld [vmem:[#allocation2 + $0x74] sm:$0x1]  ;;  %v2569_v6 = vld [vmem:[#allocation2 + $0xc] sm:$0xf] }
 0x209   : > { %v8542_v19 = vpop.permute.xlu1 %3950  ;;  %v8572_v55 = vsel %vm2005_vm0, %v6391_v40, %v8359_v37  ;;  %v2240_v49 = vsel %vm7986_vm15, %v2238_v13, %v2239_v34  ;;  %v7352_v0 = vld [vmem:[#allocation2 + $0x18] sm:$0xf]  ;;  %v7353_v50 = vld [vmem:[#allocation2 + $0x1c] sm:$0xf]  ;;  %v6378_v39 = vrot.slane %v2113_v42, 9  ;;  %v2250_v8 = vrot.slane %v2114_v4, 5 }
 0x20a   : > { %v6465_v21 = vcombine.low %v7352_v0, %v7353_v50  ;;  %v6392_v59 = vcombine.low %v2237_v9, %v2240_v49  ;;  %v2247_v22 = vsel %vm7986_vm15, %v2245_v60, %v2246_v11  ;;  %v8582_v14 = vsel %vm2005_vm0, %v6345_v3, %v8420_v17  ;;  %v809_v60 = vld [vmem:[#allocation2 + $0xcc] sm:$0x1]  ;;  %v865_v32 = vld [vmem:[#allocation2 + $0xd4] sm:$0x1] }
 0x20b   : > { %v6393_v37 = vcombine.low %v2244_v46, %v2247_v22  ;;  %v2253_v34 = vrot.slane %v2115_v48, 5  ;;  %v2618_v40 = vshrl.u32 %v2569_v6, 16  ;;  %v2251_v9 = vsel %vm7986_vm15, %v6378_v39, %v2250_v8  ;;  %v7356_v39 = vld [vmem:[#allocation2 + $0x70] sm:$0xf] }
 0x20c   : > { %v3980_v43 = vsel %vm2005_vm0, %v6465_v21, %v8426_v57  ;;  %v8588_v42 = vsel %vm2005_vm0, %v6392_v59, %v8380_v30  ;;  %v2252_v13 = vrot.slane %v2250_v8, 4  ;;  %v2621_v11 = vshll.u32 %v2569_v6, 16  ;;  %v7354_v57 = vld [vmem:[#allocation2 + $0x10] sm:$0xf]  ;;  %v7355_v21 = vld [vmem:[#allocation2 + $0x6c] sm:$0xf] }
 0x20d   : > { %v8576_v1 = vpop.permute.xlu1 %3277  ;;  %4955 = vmatprep.mubr.bf16.mxu0 %v3980_v43  ;;  %v8594_v17 = vsel %vm2005_vm0, %v6393_v37, %v8398_v27  ;;  %v2620_v4 = vrot.slane %v2618_v40, 4  ;;  %v2627_v46 = vshll.u32 %v7354_v57, 16  ;;  %v9971_v10 = vshrl.u32 %v7975_v53, 16  ;;  %v3417_v30 = vld [vmem:[#allocation2 + $0xd0] sm:$0xf] }
 0x20e   : > { %v2254_v49 = vsel %vm7986_vm15, %v2252_v13, %v2253_v34  ;;  %v2623_v6 = vrot.slane %v2621_v11, 5  ;;  %v9972_v0 = vshll.u32 %v7977_v44, 16  ;;  %v6346_v27 = vcombine.low %v7355_v21, %v7356_v39  ;;  %4827 = vmatmul.mubr.bf16.gmra.mrb[32].mxu1 %v8536_v45  ;;  %v7357_v8 = vld [vmem:[#allocation2 + $0x24] sm:$0xf]  ;;  %v7358_v53 = vld [vmem:[#allocation2 + $0x28] sm:$0xf] }
 0x20f   : > { %v2633_v3 = vrot.slane %v9971_v10, 4  ;;  %v6394_v59 = vcombine.low %v2251_v9, %v2254_v49  ;;  %v2629_v22 = vrot.slane %v2627_v46, 5  ;;  %v6466_v37 = vcombine.low %v7357_v8, %v7358_v53  ;;  %4834 = vmatprep.mubr.bf16.mxu1 %v8552_v54  ;;  %v2116_v34 = vld [vmem:[#allocation2 + $0x78] sm:$0xe]  ;;  %v2117_v40 = vld [vmem:[#allocation2 + $0x7c] sm:$0xf] }
 0x210   : > { %v2639_v50 = vrot.slane %v9972_v0, 5  ;;  %v810_v43 = vsel %vm7513_vm4, 0, %v809_v60  ;;  %v2624_v44 = vor.u32 %v2623_v6, %v2620_v4  ;;  %v8612_v11 = vsel %vm2005_vm0, %v6346_v27, %v8480_v58  ;;  %v2118_v57 = vld [vmem:[#allocation2 + $0x80] sm:$0x1]  ;;  %v2572_v46 = vld [vmem:[#allocation2 + $0x18] sm:$0xf] }
 0x211   : > { %811 = vst [vmem:[#allocation2 + $0xcc] sm:$0x1] %v810_v43  ;;  %v866_v45 = vsel %vm7521_vm6, 0, %v865_v32  ;;  %v3804_v9 = vshll.u32 %v3417_v30, 16  ;;  %v8618_v20 = vsel %vm2005_vm0, %v6394_v59, %v8448_v36  ;;  %v2634_v54 = vor.u32 %v2633_v3, %v2629_v22  ;;  %v7359_v43 = vld [vmem:[#allocation2 + $0x1c] sm:$0xf] }
 0x212   : > { %v8598_v48 = vpop.permute.xlu0 %1995  ;;  %v3984_v60 = vsel %vm2005_vm0, %v6466_v37, %v8492_v41  ;;  %867 = vst [vmem:[#allocation2 + $0xd4] sm:$0x1] %v866_v45  ;;  %v9973_v4 = vmov 0   ;;  %v3808_v58 = vshrl.u32 %v3417_v30, 16  ;;  %v2625_v24 = vrot.slane %v2624_v44, 4 }
 0x213   : > { %890 = vst.msk [vmem:[#allocation2 + $0xcc] sm:$0xf] %vm884_vm7, %v9973_v4  ;;  %v8628_v32 = vrot.slane %v3804_v9, 5  ;;  %v6379_v49 = vrot.slane %v2116_v34, 9  ;;  %v2257_v36 = vrot.slane %v2117_v40, 5  ;;  %v2635_v6 = vrot.slane %v2634_v54, 4 }
 0x214   : > { %v8608_v13 = vpop.permute.xlu1 %3952  ;;  %892 = vst.msk [vmem:[#allocation2 + $0xd4] sm:$0x1] %vm755_vm2, %v9973_v4  ;;  %v3810_v3 = vrot.slane %v3808_v58, 4  ;;  %v2260_v0 = vrot.slane %v2118_v57, 5  ;;  %v2642_v21 = vshrl.u32 %v2572_v46, 16  ;;  %v2630_v39 = vsel %vm7594_vm10, %v2625_v24, %v2629_v22 }
 0x215   : > { %v2258_v30 = vsel %vm7986_vm15, %v6379_v49, %v2257_v36  ;;  %v2259_v27 = vrot.slane %v2257_v36, 4  ;;  %v2645_v59 = vshll.u32 %v2572_v46, 16  ;;  %v2640_v8 = vsel %vm7594_vm10, %v2635_v6, %v2639_v50  ;;  %v7361_v6 = vld [vmem:[#allocation2 + $0x7c] sm:$0xf] }
 0x216   : > { %v8624_v10 = vpop.permute.xlu0 %2481  ;;  %v3811_v53 = vor.u32 %v3810_v3, %v8628_v32  ;;  %v2644_v37 = vrot.slane %v2642_v21, 4  ;;  %v2651_v34 = vshll.u32 %v7359_v43, 16  ;;  %v6433_v40 = vcombine.low %v2630_v39, %v2640_v8  ;;  %4835 = vmatmul.mubr.bf16.gmra.mrb[36].mxu1 %v8548_v33  ;;  %v7362_v33 = vld [vmem:[#allocation2 + $0x30] sm:$0xf]  ;;  %v2119_v39 = vld [vmem:[#allocation2 + $0x84] sm:$0xe] }
 0x217   : > { %v2261_v44 = vsel %vm7986_vm15, %v2259_v27, %v2260_v0  ;;  %v2647_v45 = vrot.slane %v2645_v59, 5  ;;  %v9974_v22 = vshrl.u32 %v8014_v63, 16  ;;  %v9975_v50 = vshll.u32 %v8017_v47, 16  ;;  %4842 = vmatprep.mubr.bf16.mxu1 %v8572_v55  ;;  %v7360_v63 = vld [vmem:[#allocation2 + $0x78] sm:$0xf] }
 0x218   : > { %v8630_v41 = vpop.permute.xlu1 %3279  ;;  %v8644_v57 = vrot.slane %v3811_v53, 4  ;;  %v6395_v46 = vcombine.low %v2258_v30, %v2261_v44  ;;  %v2653_v54 = vrot.slane %v2651_v34, 5  ;;  %v3307_v24 = vsel %vm2005_vm0, %v6433_v40, %v8460_v25  ;;  %v7363_v0 = vld [vmem:[#allocation2 + $0x34] sm:$0xf]  ;;  %v2120_v30 = vld [vmem:[#allocation2 + $0x88] sm:$0xf] }
 0x219   : > { %v2657_v9 = vrot.slane %v9974_v22, 4  ;;  %v2663_v4 = vrot.slane %v9975_v50, 5  ;;  %v2648_v36 = vor.u32 %v2647_v45, %v2644_v37  ;;  %v6347_v3 = vcombine.low %v7360_v63, %v7361_v6  ;;  %4956 = vmatmul.mubr.bf16.vlgmr.msra.gmra.mrb[16].mxu0 %v3307_v24  ;;  %v2121_v25 = vld [vmem:[#allocation2 + $0x8c] sm:$0x1]  ;;  %v2575_v44 = vld [vmem:[#allocation2 + $0x24] sm:$0xf] }
 0x21a   : > { %v3416_v49 = vld [vmem:[#allocation2 + $0xcc] sm:$0xf]  ;;  %v6467_v21 = vcombine.low %v7362_v33, %v7363_v0  ;;  %v8655_v55 = vsel %vm2005_vm0, %v6395_v46, %v8510_v51  ;;  %4963 = vmatprep.mubr.bf16.mxu0 %v3984_v60  ;;  %v6380_v46 = vrot.slane %v2119_v39, 9  ;;  %v2264_v24 = vrot.slane %v2120_v30, 5  ;;  %v7364_v30 = vld [vmem:[#allocation2 + $0x28] sm:$0xf] }
 0x21b   : > { %v3433_v27 = vld [vmem:[#allocation2 + $0xd4] sm:$0x1]  ;;  %v3795_v47 = vshrl.u32 %v3416_v49, 16  ;;  %v3798_v59 = vshll.u32 %v3416_v49, 16  ;;  %v2658_v8 = vor.u32 %v2657_v9, %v2653_v54  ;;  %v2649_v43 = vrot.slane %v2648_v36, 4 }
 0x21c   : > { %v8649_v58 = vpop.permute.xlu0 %1997  ;;  %v3814_v37 = vshll.u32 %v3433_v27, 16  ;;  %v8661_v34 = vsel %vm2005_vm0, %v6347_v3, %v8531_v18  ;;  %v3988_v40 = vsel %vm2005_vm0, %v6467_v21, %v8542_v19  ;;  %v2267_v49 = vrot.slane %v2121_v25, 5 }
 0x21d   : > { %v3797_v45 = vrot.slane %v3795_v47, 4  ;;  %v3800_v22 = vrot.slane %v3798_v59, 5  ;;  %v2659_v51 = vrot.slane %v2658_v8, 4  ;;  %v2654_v50 = vsel %vm7594_vm10, %v2649_v43, %v2653_v54  ;;  %v2123_v43 = vld [vmem:[#allocation2 + $0x94] sm:$0xf] }
 0x21e   : > { %v8657_v53 = vpop.permute.xlu1 %3954  ;;  %v3816_v9 = vrot.slane %v3814_v37, 5  ;;  %v2666_v6 = vshrl.u32 %v2575_v44, 16  ;;  %v2669_v19 = vshll.u32 %v2575_v44, 16  ;;  %v2265_v33 = vsel %vm7986_vm15, %v6380_v46, %v2264_v24  ;;  %4843 = vmatmul.mubr.bf16.gmra.mrb[40].mxu1 %v8560_v26 }
 0x21f   : > { %v3801_v63 = vor.u32 %v3800_v22, %v3797_v45  ;;  %v2664_v18 = vsel %vm7594_vm10, %v2659_v51, %v2663_v4  ;;  %v2266_v0 = vrot.slane %v2264_v24, 4  ;;  %v2675_v27 = vshll.u32 %v7364_v30, 16  ;;  %4850 = vmatprep.mubr.bf16.mxu1 %v8588_v42  ;;  %v2122_v4 = vld [vmem:[#allocation2 + $0x90] sm:$0xe]  ;;  %v2124_v51 = vld [vmem:[#allocation2 + $0x98] sm:$0x1] }
 0x220   : > { %v8667_v36 = vpop.permute.xlu0 %2483  ;;  %v3817_v60 = vsel %vm7594_vm10, %v8644_v57, %v3816_v9  ;;  %v6434_v3 = vcombine.low %v2654_v50, %v2664_v18  ;;  %v2668_v21 = vrot.slane %v2666_v6, 4  ;;  %v2671_v39 = vrot.slane %v2669_v19, 5  ;;  %v7365_v9 = vld [vmem:[#allocation2 + $0x84] sm:$0xf]  ;;  %v7366_v50 = vld [vmem:[#allocation2 + $0x88] sm:$0xf] }
 0x221   : > { %v3802_v54 = vrot.slane %v3801_v63, 4  ;;  %v2268_v59 = vsel %vm7986_vm15, %v2266_v0, %v2267_v49  ;;  %v9976_v8 = vshrl.u32 %v8100_v29, 16  ;;  %v9977_v26 = vshll.u32 %v8107_v31, 16  ;;  %v7367_v29 = vld [vmem:[#allocation2 + $0x3c] sm:$0xf] }
 0x222   : > { %v8678_v47 = vpop.permute.xlu1 %3281  ;;  %v3311_v57 = vsel %vm2005_vm0, %v6434_v3, %v8516_v5  ;;  %v6396_v44 = vcombine.low %v2265_v33, %v2268_v59  ;;  %v2672_v45 = vor.u32 %v2671_v39, %v2668_v21  ;;  %v2677_v22 = vrot.slane %v2675_v27, 5  ;;  %v2578_v5 = vld [vmem:[#allocation2 + $0x30] sm:$0xf]  ;;  %v7368_v49 = vld [vmem:[#allocation2 + $0x40] sm:$0xf] }
 0x223   : > { %v2681_v25 = vrot.slane %v9976_v8, 4  ;;  %v2687_v37 = vrot.slane %v9977_v26, 5  ;;  %v3807_v42 = vsel %vm7594_vm10, %v3802_v54, %v8628_v32  ;;  %4964 = vmatmul.mubr.bf16.gmra.mrb[20].mxu0 %v3311_v57  ;;  %v6348_v24 = vcombine.low %v7365_v9, %v7366_v50  ;;  %v2125_v30 = vld [vmem:[#allocation2 + $0x9c] sm:$0xe]  ;;  %v2127_v50 = vld [vmem:[#allocation2 + $0xa4] sm:$0x1] }
 0x224   : > { %v6496_v46 = vcombine.low %v3807_v42, %v3817_v60  ;;  %v6468_v63 = vcombine.low %v7367_v29, %v7368_v49  ;;  %4971 = vmatprep.mubr.bf16.mxu0 %v3988_v40  ;;  %v6381_v31 = vrot.slane %v2122_v4, 9  ;;  %v8695_v32 = vsel %vm2005_vm0, %v6396_v44, %v8562_v2  ;;  %v7373_v29 = vld [vmem:[#allocation2 + $0x4c] sm:$0xf] }
 0x225   : > { %v2673_v6 = vrot.slane %v2672_v45, 4  ;;  %v2682_v19 = vor.u32 %v2681_v25, %v2677_v22  ;;  %v2271_v3 = vrot.slane %v2123_v43, 5  ;;  %v8700_v60 = vsel %vm2005_vm0, %v6348_v24, %v8598_v48  ;;  %v7369_v48 = vld [vmem:[#allocation2 + $0x34] sm:$0xf]  ;;  %v2126_v25 = vld [vmem:[#allocation2 + $0xa0] sm:$0xf] }
 0x226   : > { %v8691_v18 = vpop.permute.xlu0 %1999  ;;  %3976 = vrot.lane.b32.xlu0 %v6496_v46, %s7423_s12  ;;  %v3992_v33 = vsel %vm2005_vm0, %v6468_v63, %v8608_v13  ;;  %v2274_v40 = vrot.slane %v2124_v51, 5  ;;  %v2690_v0 = vshrl.u32 %v2578_v5, 16  ;;  %v2693_v57 = vshll.u32 %v2578_v5, 16  ;;  %4851 = vmatmul.mubr.bf16.gmra.mrb[44].mxu1 %v8568_v28  ;;  %v7371_v51 = vld [vmem:[#allocation2 + $0x94] sm:$0xf] }
 0x227   : > { %v2678_v54 = vsel %vm7594_vm10, %v2673_v6, %v2677_v22  ;;  %v2683_v21 = vrot.slane %v2682_v19, 4  ;;  %v2272_v2 = vsel %vm7986_vm15, %v6381_v31, %v2271_v3  ;;  %v2273_v39 = vrot.slane %v2271_v3, 4  ;;  %v7370_v22 = vld [vmem:[#allocation2 + $0x90] sm:$0xf]  ;;  %4858 = vmatprep.mubr.bf16.mxu1 %v8594_v17  ;;  %v2581_v31 = vld [vmem:[#allocation2 + $0x3c] sm:$0xf] }
 0x228   : > { %v2692_v4 = vrot.slane %v2690_v0, 4  ;;  %v2699_v59 = vshll.u32 %v7369_v48, 16  ;;  %v9978_v8 = vshrl.u32 %v8148_v35, 16  ;;  %v9979_v44 = vshll.u32 %v8152_v56, 16  ;;  %v7374_v48 = vld [vmem:[#allocation2 + $0x40] sm:$0xf] }
 0x229   : > { %v8708_v27 = vpop.permute.xlu1 %3956  ;;  %v2688_v43 = vsel %vm7594_vm10, %v2683_v21, %v2687_v37  ;;  %v2275_v42 = vsel %vm7986_vm15, %v2273_v39, %v2274_v40  ;;  %v6349_v5 = vcombine.low %v7370_v22, %v7371_v51  ;;  %v2695_v28 = vrot.slane %v2693_v57, 5  ;;  %v7372_v37 = vld [vmem:[#allocation2 + $0x48] sm:$0xf] }
 0x22a   : > { %v2705_v13 = vrot.slane %v9978_v8, 4  ;;  %v8713_v26 = vpop.permute.xlu0 %2485  ;;  %v2711_v45 = vrot.slane %v9979_v44, 5  ;;  %v6435_v35 = vcombine.low %v2678_v54, %v2688_v43  ;;  %v6397_v46 = vcombine.low %v2272_v2, %v2275_v42  ;;  %v2129_v43 = vld [vmem:[#allocation2 + $0xac] sm:$0xf] }
 0x22b   : > { %v2701_v9 = vrot.slane %v2699_v59, 5  ;;  %v8724_v24 = vsel %vm2005_vm0, %v6349_v5, %v8649_v58  ;;  %v6469_v49 = vcombine.low %v7372_v37, %v7373_v29  ;;  %v6382_v63 = vrot.slane %v2125_v30, 9  ;;  %v7378_v37 = vld [vmem:[#allocation2 + $0x58] sm:$0xf] }
 0x22c   : > { %v2278_v56 = vrot.slane %v2126_v25, 5  ;;  %v3315_v6 = vsel %vm2005_vm0, %v6435_v35, %v8576_v1  ;;  %v8730_v17 = vsel %vm2005_vm0, %v6397_v46, %v8624_v10  ;;  %v2696_v19 = vor.u32 %v2695_v28, %v2692_v4  ;;  %v2128_v10 = vld [vmem:[#allocation2 + $0xa8] sm:$0xe]  ;;  %v7375_v46 = vld [vmem:[#allocation2 + $0x9c] sm:$0xf] }
 0x22d   : > { %v2706_v3 = vor.u32 %v2705_v13, %v2701_v9  ;;  %4972 = vmatmul.mubr.bf16.gmra.mrb[24].mxu0 %v3315_v6  ;;  %v3996_v58 = vsel %vm2005_vm0, %v6469_v49, %v8657_v53  ;;  %v2281_v54 = vrot.slane %v2127_v50, 5  ;;  %v8736_v21 = vpop.permute.xlu1 %3283  ;;  %v2714_v1 = vshrl.u32 %v2581_v31, 16 }
 0x22e   : > { %v2279_v40 = vsel %vm7986_vm15, %v6382_v63, %v2278_v56  ;;  %v2280_v0 = vrot.slane %v2278_v56, 4  ;;  %v2697_v2 = vrot.slane %v2696_v19, 4  ;;  %4979 = vmatprep.mubr.bf16.mxu0 %v3992_v33  ;;  %v2717_v30 = vshll.u32 %v2581_v31, 16  ;;  %4859 = vmatmul.mubr.bf16.gmra.mrb[48].mxu1 %v8582_v14  ;;  %v2584_v63 = vld [vmem:[#allocation2 + $0x48] sm:$0xf] }
 0x22f   : > { %v2707_v39 = vrot.slane %v2706_v3, 4  ;;  %v2723_v53 = vshll.u32 %v7374_v48, 16  ;;  %v9980_v59 = vshrl.u32 %v8187_v61, 16  ;;  %v9981_v13 = vshll.u32 %v8189_v23, 16  ;;  %v7376_v61 = vld [vmem:[#allocation2 + $0xa0] sm:$0xf]  ;;  %4866 = vmatprep.mubr.bf16.mxu1 %v8618_v20 }
 0x230   : > { %v8738_v57 = vpop.permute.xlu0 %2001  ;;  %v2282_v4 = vsel %vm7986_vm15, %v2280_v0, %v2281_v54  ;;  %v2702_v33 = vsel %vm7594_vm10, %v2697_v2, %v2701_v9  ;;  %v2716_v22 = vrot.slane %v2714_v1, 4  ;;  %v2719_v5 = vrot.slane %v2717_v30, 5  ;;  %v2130_v23 = vld [vmem:[#allocation2 + $0xb0] sm:$0x1]  ;;  %v7377_v9 = vld [vmem:[#allocation2 + $0x54] sm:$0xf] }
 0x231   : > { %v2729_v8 = vrot.slane %v9980_v59, 4  ;;  %v2735_v25 = vrot.slane %v9981_v13, 5  ;;  %v2712_v42 = vsel %vm7594_vm10, %v2707_v39, %v2711_v45  ;;  %v6398_v44 = vcombine.low %v2279_v40, %v2282_v4  ;;  %v2131_v1 = vld [vmem:[#allocation2 + $0xb4] sm:$0xe]  ;;  %v7379_v30 = vld [vmem:[#allocation2 + $0x4c] sm:$0xf] }
 0x232   : > { %v6436_v51 = vcombine.low %v2702_v33, %v2712_v42  ;;  %v2725_v35 = vrot.slane %v2723_v53, 5  ;;  %v6350_v28 = vcombine.low %v7375_v46, %v7376_v61  ;;  %v6470_v45 = vcombine.low %v7377_v9, %v7378_v37  ;;  %v2132_v59 = vld [vmem:[#allocation2 + $0xb8] sm:$0xf]  ;;  %v7382_v46 = vld [vmem:[#allocation2 + $0x60] sm:$0xf] }
 0x233   : > { %v8754_v50 = vsel %vm2005_vm0, %v6398_v44, %v8667_v36  ;;  %v6383_v29 = vrot.slane %v2128_v10, 9  ;;  %v2285_v49 = vrot.slane %v2129_v43, 5  ;;  %v2720_v56 = vor.u32 %v2719_v5, %v2716_v22  ;;  %v3959_v20 = vpop.permute.xlu1 %3958  ;;  %v7380_v22 = vld [vmem:[#allocation2 + $0xa8] sm:$0xf] }
 0x234   : > { %v3319_v14 = vsel %vm2005_vm0, %v6436_v51, %v8630_v41  ;;  %v2730_v31 = vor.u32 %v2729_v8, %v2725_v35  ;;  %v8760_v6 = vsel %vm2005_vm0, %v6350_v28, %v8691_v18  ;;  %v4000_v36 = vsel %vm2005_vm0, %v6470_v45, %v8708_v27  ;;  %v8766_v0 = vpop.permute.xlu0 %2487  ;;  %v7381_v51 = vld [vmem:[#allocation2 + $0xac] sm:$0xf] }
 0x235   : > { %v2286_v19 = vsel %vm7986_vm15, %v6383_v29, %v2285_v49  ;;  %v2287_v3 = vrot.slane %v2285_v49, 4  ;;  %v2288_v40 = vrot.slane %v2130_v23, 5  ;;  %v2721_v54 = vrot.slane %v2720_v56, 4  ;;  %4980 = vmatmul.mubr.bf16.gmra.mrb[28].mxu0 %v3319_v14  ;;  %v2587_v23 = vld [vmem:[#allocation2 + $0x54] sm:$0xf] }
 0x236   : > { %v2731_v2 = vrot.slane %v2730_v31, 4  ;;  %v2738_v41 = vshrl.u32 %v2584_v63, 16  ;;  %v2741_v39 = vshll.u32 %v2584_v63, 16  ;;  %4987 = vmatprep.mubr.bf16.mxu0 %v3996_v58  ;;  %v2747_v10 = vshll.u32 %v7379_v30, 16  ;;  %4867 = vmatmul.mubr.bf16.gmra.mrb[52].mxu1 %v8612_v11 }
 0x237   : > { %v2289_v18 = vsel %vm7986_vm15, %v2287_v3, %v2288_v40  ;;  %v9982_v27 = vshrl.u32 %v8220_v15, 16  ;;  %v9983_v48 = vshll.u32 %v8223_v12, 16  ;;  %v2726_v8 = vsel %vm7594_vm10, %v2721_v54, %v2725_v35  ;;  %v2133_v15 = vld [vmem:[#allocation2 + $0xbc] sm:$0x1]  ;;  %v7383_v35 = vld [vmem:[#allocation2 + $0x64] sm:$0xf]  ;;  %4874 = vmatprep.mubr.bf16.mxu1 %v8655_v55  ;;  %v8784_v9 = vpop.permute.xlu1 %3285 }
 0x238   : > { %v2736_v13 = vsel %vm7594_vm10, %v2731_v2, %v2735_v25  ;;  %v6399_v43 = vcombine.low %v2286_v19, %v2289_v18  ;;  %v2740_v58 = vrot.slane %v2738_v41, 4  ;;  %v2743_v42 = vrot.slane %v2741_v39, 5  ;;  %v7384_v40 = vld [vmem:[#allocation2 + $0x58] sm:$0xf]  ;;  %v2590_v39 = vld [vmem:[#allocation2 + $0x60] sm:$0xf] }
 0x239   : > { %v2753_v4 = vrot.slane %v9982_v27, 4  ;;  %v2759_v53 = vrot.slane %v9983_v48, 5  ;;  %v6437_v33 = vcombine.low %v2726_v8, %v2736_v13  ;;  %v2749_v44 = vrot.slane %v2747_v10, 5  ;;  %v7386_v8 = vld [vmem:[#allocation2 + $0xb8] sm:$0xf] }
 0x23a   : > { %v6351_v5 = vcombine.low %v7380_v22, %v7381_v51  ;;  %v8781_v12 = vsel %vm2005_vm0, %v6399_v43, %v8713_v26  ;;  %v6471_v61 = vcombine.low %v7382_v46, %v7383_v35  ;;  %v6384_v25 = vrot.slane %v2131_v1, 9  ;;  %v2004_v26 = vpop.permute.xlu0 %2003  ;;  %v7387_v43 = vld [vmem:[#allocation2 + $0x6c] sm:$0xf] }
 0x23b   : > { %v2292_v28 = vrot.slane %v2132_v59, 5  ;;  %v3323_v37 = vsel %vm2005_vm0, %v6437_v33, %v8678_v47  ;;  %v2744_v45 = vor.u32 %v2743_v42, %v2740_v58  ;;  %v2754_v11 = vor.u32 %v2753_v4, %v2749_v44  ;;  %v7385_v59 = vld [vmem:[#allocation2 + $0xb4] sm:$0xf]  ;;  %v7388_v58 = vld [vmem:[#allocation2 + $0x70] sm:$0xf] }
 0x23c   : > { %v8790_v29 = vsel %vm2005_vm0, %v6351_v5, %v8738_v57  ;;  %v8793_v49 = vsel %vm2005_vm0, %v6471_v61, %v3959_v20  ;;  %v2295_v14 = vrot.slane %v2133_v15, 5  ;;  %v2762_v19 = vshrl.u32 %v2587_v23, 16 }
 0x23d   : > { %v2293_v55 = vsel %vm7986_vm15, %v6384_v25, %v2292_v28  ;;  %v2294_v63 = vrot.slane %v2292_v28, 4  ;;  %v2745_v56 = vrot.slane %v2744_v45, 4  ;;  %v2755_v31 = vrot.slane %v2754_v11, 4  ;;  %4988 = vmatmul.mubr.bf16.gmra.mrb[32].mxu0 %v3323_v37  ;;  %v7391_v37 = vld [vmem:[#allocation2 + $0x64] sm:$0xf]  ;;  %v9986_v45 = vld [vmem:[#allocation4_spill] sm:$0xff] }
 0x23e   : > { %v2765_v3 = vshll.u32 %v2587_v23, 16  ;;  %v2771_v57 = vshll.u32 %v7384_v40, 16  ;;  %v9984_v54 = vshrl.u32 %v8244_v16, 16  ;;  %v9985_v20 = vshll.u32 %v8247_v62, 16  ;;  %4995 = vmatprep.mubr.bf16.mxu0 %v4000_v36  ;;  %v3961_v13 = vpop.permute.xlu1 %3960  ;;  %4875 = vmatmul.mubr.bf16.gmra.mrb[56].mxu1 %v8661_v34  ;;  %v7390_v36 = vld [vmem:[#allocation2 + $0x7c] sm:$0xf] }
 0x23f   : > { %v2296_v47 = vsel %vm7986_vm15, %v2294_v63, %v2295_v14  ;;  %v2750_v1 = vsel %vm7594_vm10, %v2745_v56, %v2749_v44  ;;  %v2760_v18 = vsel %vm7594_vm10, %v2755_v31, %v2759_v53  ;;  %v2764_v10 = vrot.slane %v2762_v19, 4  ;;  %v7389_v53 = vld [vmem:[#allocation2 + $0x78] sm:$0xf]  ;;  %4882 = vmatprep.mubr.bf16.mxu1 %v8695_v32  ;;  %v9988_v63 = vld [vmem:[#allocation5_spill] sm:$0xff]  ;;  %v7393_v31 = vld [vmem:[#allocation2 + $0x88] sm:$0xf] }
 0x240   : > { %v2777_v2 = vrot.slane %v9984_v54, 4  ;;  %v2783_v41 = vrot.slane %v9985_v20, 5  ;;  %v6400_v30 = vcombine.low %v2293_v55, %v2296_v47  ;;  %v6438_v27 = vcombine.low %v2750_v1, %v2760_v18  ;;  %v7392_v56 = vld [vmem:[#allocation2 + $0x84] sm:$0xf]  ;;  %v7394_v18 = vld [vmem:[#allocation2 + $0x70] sm:$0xf] }
 0x241   : > { %v2767_v4 = vrot.slane %v2765_v3, 5  ;;  %v2773_v48 = vrot.slane %v2771_v57, 5  ;;  %v6352_v16 = vcombine.low %v7385_v59, %v7386_v8  ;;  %v6472_v33 = vcombine.low %v7387_v43, %v7388_v58  ;;  %v3963_v44 = vpop.permute.xlu0 %3962  ;;  %v9990_v8 = vld [vmem:[#allocation6_spill] sm:$0xff] }
 0x242   : > { %v8809_v62 = vsel %vm2005_vm0, %v6400_v30, %v8766_v0  ;;  %v6473_v42 = vcombine.low %v7389_v53, %v7390_v36  ;;  %v2786_v22 = vshrl.u32 %v2590_v39, 16  ;;  %v3327_v51 = vsel %vm2005_vm0, %v6438_v27, %v8736_v21  ;;  %v2593_v0 = vld [vmem:[#allocation2 + $0x6c] sm:$0xf]  ;;  %v3288_v54 = vpop.permute.xlu1 %3287 }
 0x243   : > { %v2768_v5 = vor.u32 %v2767_v4, %v2764_v10  ;;  %v2778_v15 = vor.u32 %v2777_v2, %v2773_v48  ;;  %v8815_v46 = vsel %vm2005_vm0, %v6352_v16, %v2004_v26  ;;  %v8819_v35 = vsel %vm2005_vm0, %v6472_v33, %v3961_v13  ;;  %v2596_v10 = vld [vmem:[#allocation2 + $0x78] sm:$0xf]  ;;  %v9992_v13 = vld [vmem:[#allocation7_spill] sm:$0xff] }
 0x244   : > { %v8822_v34 = vsel %vm2005_vm0, %v6473_v42, %v3963_v44  ;;  %v2788_v61 = vrot.slane %v2786_v22, 4  ;;  %v2789_v25 = vshll.u32 %v2590_v39, 16  ;;  %v2795_v21 = vshll.u32 %v7391_v37, 16  ;;  %v7395_v44 = vld [vmem:[#allocation2 + $0x90] sm:$0xf] }
 0x245   : > { %v2769_v28 = vrot.slane %v2768_v5, 4  ;;  %v2779_v23 = vrot.slane %v2778_v15, 4  ;;  %v9987_v11 = vshrl.u32 %v9986_v45, 16  ;;  %v9989_v14 = vshll.u32 %v9988_v63, 16  ;;  %4996 = vmatmul.mubr.bf16.gmra.mrb[36].mxu0 %v3327_v51  ;;  %v7396_v22 = vld [vmem:[#allocation2 + $0x94] sm:$0xf] }
 0x246   : > { %v2791_v26 = vrot.slane %v2789_v25, 5  ;;  %v6474_v19 = vcombine.low %v7392_v56, %v7393_v31  ;;  %v2810_v3 = vshrl.u32 %v2593_v0, 16  ;;  %v2797_v57 = vrot.slane %v2795_v21, 5  ;;  %5003 = vmatprep.mubr.bf16.mxu0 %v8793_v49  ;;  %4883 = vmatmul.mubr.bf16.gmra.mrb[60].mxu1 %v8700_v60  ;;  %v9994_v45 = vld [vmem:[#allocation8_spill] sm:$0xff] }
 0x247   : > { %v2801_v55 = vrot.slane %v9987_v11, 4  ;;  %v2807_v32 = vrot.slane %v9989_v14, 5  ;;  %v2774_v47 = vsel %vm7594_vm10, %v2769_v28, %v2773_v48  ;;  %v2784_v40 = vsel %vm7594_vm10, %v2779_v23, %v2783_v41  ;;  %4890 = vmatprep.mubr.bf16.mxu1 %v8730_v17  ;;  %v2599_v28 = vld [vmem:[#allocation2 + $0x84] sm:$0xf]  ;;  %v3290_v37 = vpop.permute.xlu1 %3289 }
 0x248   : > { %v2813_v2 = vshll.u32 %v2593_v0, 16  ;;  %v6439_v20 = vcombine.low %v2774_v47, %v2784_v40  ;;  %v2792_v39 = vor.u32 %v2791_v26, %v2788_v61  ;;  %v2812_v1 = vrot.slane %v2810_v3, 4  ;;  %v3965_v4 = vpop.permute.xlu0 %3964  ;;  %v7397_v61 = vld [vmem:[#allocation2 + $0x7c] sm:$0xf]  ;;  %v9996_v3 = vld [vmem:[#allocation9_spill] sm:$0xff] }
 0x249   : > { %v2819_v30 = vshll.u32 %v7394_v18, 16  ;;  %v2802_v27 = vor.u32 %v2801_v55, %v2797_v57  ;;  %v9991_v48 = vshrl.u32 %v9990_v8, 16  ;;  %v9993_v41 = vshll.u32 %v9992_v13, 16  ;;  %v7399_v8 = vld [vmem:[#allocation2 + $0xa0] sm:$0xf]  ;;  %v9998_v13 = vld [vmem:[#allocation10_spill] sm:$0xff] }
 0x24a   : > { %v2815_v59 = vrot.slane %v2813_v2, 5  ;;  %v3331_v58 = vsel %vm2005_vm0, %v6439_v20, %v8784_v9  ;;  %v2793_v33 = vrot.slane %v2792_v39, 4  ;;  %v8840_v49 = vsel %vm2005_vm0, %v6474_v19, %v3965_v4 }
 0x24b   : > { %v2825_v16 = vrot.slane %v9991_v48, 4  ;;  %v2831_v43 = vrot.slane %v9993_v41, 5  ;;  %v2821_v53 = vrot.slane %v2819_v30, 5  ;;  %v2803_v36 = vrot.slane %v2802_v27, 4  ;;  %v2602_v27 = vld [vmem:[#allocation2 + $0x90] sm:$0xf] }
 0x24c   : > { %v2816_v42 = vor.u32 %v2815_v59, %v2812_v1  ;;  %v6475_v51 = vcombine.low %v7395_v44, %v7396_v22  ;;  %v2834_v5 = vshrl.u32 %v2596_v10, 16  ;;  %v2798_v15 = vsel %vm7594_vm10, %v2793_v33, %v2797_v57  ;;  %v7398_v59 = vld [vmem:[#allocation2 + $0x9c] sm:$0xf] }
 0x24d   : > { %v2826_v0 = vor.u32 %v2825_v16, %v2821_v53  ;;  %v2837_v9 = vshll.u32 %v2596_v10, 16  ;;  %v2843_v25 = vshll.u32 %v7397_v61, 16  ;;  %v2808_v23 = vsel %vm7594_vm10, %v2803_v36, %v2807_v32  ;;  %5004 = vmatmul.mubr.bf16.gmra.mrb[40].mxu0 %v3331_v58  ;;  %v7400_v16 = vld [vmem:[#allocation2 + $0x88] sm:$0xf]  ;;  %v10000_v36 = vld [vmem:[#allocation11_spill] sm:$0xff] }
 0x24e   : > { %v2817_v60 = vrot.slane %v2816_v42, 4  ;;  %v2836_v21 = vrot.slane %v2834_v5, 4  ;;  %v9995_v17 = vshrl.u32 %v9994_v45, 16  ;;  %v6440_v55 = vcombine.low %v2798_v15, %v2808_v23  ;;  %v3967_v19 = vpop.permute.xlu0 %3966  ;;  %5011 = vmatprep.mubr.bf16.mxu0 %v8819_v35  ;;  %4891 = vmatmul.mubr.bf16.gmra.mrb[64].mxu1 %v8724_v24  ;;  %v3292_v33 = vpop.permute.xlu1 %3291  ;;  %v7401_v61 = vld [vmem:[#allocation2 + $0x94] sm:$0xf] }
 0x24f   : > { %v2827_v26 = vrot.slane %v2826_v0, 4  ;;  %v2839_v63 = vrot.slane %v2837_v9, 5  ;;  %v2845_v14 = vrot.slane %v2843_v25, 5  ;;  %v2997_v56 = vshll.u32 %v8490_v52, 16  ;;  %4898 = vmatprep.mubr.bf16.mxu1 %v8754_v50  ;;  %v4068_v52 = vld [vmem:[#allocation2 + $0x40] sm:$0xf] }
 0x250   : > { %v2849_v11 = vrot.slane %v9995_v17, 4  ;;  %v2822_v31 = vsel %vm7594_vm10, %v2817_v60, %v2821_v53  ;;  %v9997_v47 = vshll.u32 %v9996_v3, 16  ;;  %v2858_v40 = vshrl.u32 %v2599_v28, 16 }
 0x251   : > { %v3335_v57 = vsel %vm2005_vm0, %v6440_v55, %v3288_v54  ;;  %v2832_v2 = vsel %vm7594_vm10, %v2827_v26, %v2831_v43  ;;  %v8860_v20 = vsel %vm2005_vm0, %v6475_v51, %v3967_v19  ;;  %v2840_v39 = vor.u32 %v2839_v63, %v2836_v21  ;;  %v7402_v55 = vld [vmem:[#allocation2 + $0xa8] sm:$0xf]  ;;  %v7403_v26 = vld [vmem:[#allocation2 + $0xac] sm:$0xf] }
 0x252   : > { %v2855_v32 = vrot.slane %v9997_v47, 5  ;;  %v6441_v1 = vcombine.low %v2822_v31, %v2832_v2  ;;  %v2850_v18 = vor.u32 %v2849_v11, %v2845_v14  ;;  %v2860_v30 = vrot.slane %v2858_v40, 4  ;;  %v10004_v47 = vld [vmem:[#allocation13_spill] sm:$0xff] }
 0x253   : > { %v2861_v10 = vshll.u32 %v2599_v28, 16  ;;  %v2841_v4 = vrot.slane %v2840_v39, 4  ;;  %v6476_v48 = vcombine.low %v7398_v59, %v7399_v8  ;;  %v2867_v54 = vshll.u32 %v7400_v16, 16  ;;  %v3969_v0 = vpop.permute.xlu0 %3968  ;;  %v10002_v28 = vld [vmem:[#allocation12_spill] sm:$0xff]  ;;  %v7404_v59 = vld [vmem:[#allocation2 + $0xa0] sm:$0xf] }
 0x254   : > { %v9999_v41 = vshrl.u32 %v9998_v13, 16  ;;  %v8866_v35 = vsel %vm2005_vm0, %v6441_v1, %v3290_v37  ;;  %v2851_v58 = vrot.slane %v2850_v18, 4  ;;  %v10001_v42 = vshll.u32 %v10000_v36, 16  ;;  %v2605_v37 = vld [vmem:[#allocation2 + $0x9c] sm:$0xf] }
 0x255   : > { %v2863_v53 = vrot.slane %v2861_v10, 5  ;;  %v2846_v22 = vsel %vm7594_vm10, %v2841_v4, %v2845_v14  ;;  %v2869_v51 = vrot.slane %v2867_v54, 5  ;;  %v2882_v5 = vshrl.u32 %v2602_v27, 16  ;;  %5012 = vmatmul.mubr.bf16.gmra.mrb[44].mxu0 %v3335_v57  ;;  %v3294_v57 = vpop.permute.xlu1 %3293  ;;  %v2608_v10 = vld [vmem:[#allocation2 + $0xa8] sm:$0xf] }
 0x256   : > { %v2873_v43 = vrot.slane %v9999_v41, 4  ;;  %v2879_v44 = vrot.slane %v10001_v42, 5  ;;  %v2885_v15 = vshll.u32 %v2602_v27, 16  ;;  %v2856_v24 = vsel %vm7594_vm10, %v2851_v58, %v2855_v32  ;;  %5019 = vmatprep.mubr.bf16.mxu0 %v8822_v34  ;;  %v10006_v34 = vld [vmem:[#allocation14_spill] sm:$0xff]  ;;  %4899 = vmatmul.mubr.bf16.gmra.mrb[68].mxu1 %v8760_v6 }
 0x257   : > { %v2864_v9 = vor.u32 %v2863_v53, %v2860_v30  ;;  %v2891_v25 = vshll.u32 %v7401_v61, 16  ;;  %v10003_v23 = vshrl.u32 %v10002_v28, 16  ;;  %v6442_v21 = vcombine.low %v2846_v22, %v2856_v24  ;;  %4906 = vmatprep.mubr.bf16.mxu1 %v8781_v12  ;;  %v8896_v53 = vld [vmem:[#allocation2 + $0xb8] sm:$0xf] }
 0x258   : > { %v8878_v50 = vsel %vm2005_vm0, %v6476_v48, %v3969_v0  ;;  %v2874_v45 = vor.u32 %v2873_v43, %v2869_v51  ;;  %v2884_v17 = vrot.slane %v2882_v5, 4  ;;  %v6477_v63 = vcombine.low %v7402_v55, %v7403_v26  ;;  %v2611_v0 = vld [vmem:[#allocation2 + $0xb4] sm:$0xf]  ;;  %v10012_v55 = vld [vmem:[#allocation17_spill] sm:$0xff] }
 0x259   : > { %v2897_v60 = vrot.slane %v10003_v23, 4  ;;  %v2865_v11 = vrot.slane %v2864_v9, 4  ;;  %v2887_v14 = vrot.slane %v2885_v15, 5  ;;  %v2893_v31 = vrot.slane %v2891_v25, 5  ;;  %v3971_v58 = vpop.permute.xlu0 %3970 }
 0x25a   : > { %v8881_v19 = vsel %vm2005_vm0, %v6442_v21, %v3292_v33  ;;  %v2875_v3 = vrot.slane %v2874_v45, 4  ;;  %v10005_v32 = vshll.u32 %v10004_v47, 16  ;;  %v2906_v2 = vshrl.u32 %v2605_v37, 16  ;;  %v8894_v33 = vld [vmem:[#allocation2 + $0xb4] sm:$0xf]  ;;  %v10010_v45 = vld [vmem:[#allocation16_spill] sm:$0xff] }
 0x25b   : > { %v2870_v39 = vsel %vm7594_vm10, %v2865_v11, %v2869_v51  ;;  %v2888_v1 = vor.u32 %v2887_v14, %v2884_v17  ;;  %v2898_v18 = vor.u32 %v2897_v60, %v2893_v31  ;;  %v2909_v30 = vshll.u32 %v2605_v37, 16  ;;  %v7407_v37 = vld [vmem:[#allocation2 + $0xac] sm:$0xf] }
 0x25c   : > { %v2903_v40 = vrot.slane %v10005_v32, 5  ;;  %v2880_v27 = vsel %vm7594_vm10, %v2875_v3, %v2879_v44  ;;  %v2908_v4 = vrot.slane %v2906_v2, 4  ;;  %v2915_v8 = vshll.u32 %v7404_v59, 16  ;;  %v10008_v44 = vld [vmem:[#allocation15_spill] sm:$0xff]  ;;  %v3296_v23 = vpop.permute.xlu1 %3295  ;;  %v7408_v2 = vld [vmem:[#allocation2 + $0xb8] sm:$0xf] }
 0x25d   : > { %v10007_v48 = vshrl.u32 %v10006_v34, 16  ;;  %v6443_v54 = vcombine.low %v2870_v39, %v2880_v27  ;;  %v2889_v13 = vrot.slane %v2888_v1, 4  ;;  %v2899_v41 = vrot.slane %v2898_v18, 4  ;;  %5020 = vmatmul.mubr.bf16.gmra.mrb[48].mxu0 %v8866_v35 }
 0x25e   : > { %v2911_v43 = vrot.slane %v2909_v30, 5  ;;  %v6478_v36 = vcombine.low %v8894_v33, %v8896_v53  ;;  %v2917_v42 = vrot.slane %v2915_v8, 5  ;;  %v10009_v22 = vshll.u32 %v10008_v44, 16  ;;  %5027 = vmatprep.mubr.bf16.mxu0 %v8840_v49  ;;  %4907 = vmatmul.mubr.bf16.gmra.mrb[72].mxu1 %v8790_v29  ;;  %v4062_v53 = vld [vmem:[#allocation2 + $0x28] sm:$0xf] }
 0x25f   : > { %v2921_v16 = vrot.slane %v10007_v48, 4  ;;  %v2930_v5 = vshrl.u32 %v2608_v10, 16  ;;  %v8903_v6 = vsel %vm2005_vm0, %v6443_v54, %v3294_v57  ;;  %v8906_v15 = vsel %vm2005_vm0, %v6477_v63, %v3971_v58  ;;  %v2614_v57 = vld [vmem:[#allocation2 + $0xc0] sm:$0xf]  ;;  %4914 = vmatprep.mubr.bf16.mxu1 %v8809_v62 }
 0x260   : > { %v2927_v51 = vrot.slane %v10009_v22, 5  ;;  %v2894_v12 = vsel %vm7594_vm10, %v2889_v13, %v2893_v31  ;;  %v2904_v24 = vsel %vm7594_vm10, %v2899_v41, %v2903_v40  ;;  %v2912_v61 = vor.u32 %v2911_v43, %v2908_v4  ;;  %v7409_v22 = vld [vmem:[#allocation2 + $0xc4] sm:$0xf] }
 0x261   : > { %v6444_v9 = vcombine.low %v2894_v12, %v2904_v24  ;;  %v2922_v25 = vor.u32 %v2921_v16, %v2917_v42  ;;  %v2932_v28 = vrot.slane %v2930_v5, 4  ;;  %v2933_v60 = vshll.u32 %v2608_v10, 16  ;;  %v10014_v10 = vld [vmem:[#allocation18_spill] sm:$0xff]  ;;  %v10016_v16 = vld [vmem:[#allocation19_spill] sm:$0xff]  ;;  %v10018_v24 = vld [vmem:[#allocation20_spill] sm:$0xff] }
 0x262   : > { %v2939_v21 = vshll.u32 %v7407_v37, 16  ;;  %v10011_v17 = vshrl.u32 %v10010_v45, 16  ;;  %v10013_v26 = vshll.u32 %v10012_v55, 16  ;;  %v2913_v31 = vrot.slane %v2912_v61, 4  ;;  %v4058_v37 = vld [vmem:[#allocation2 + $0x18] sm:$0xe] }
 0x263   : > { %v8918_v14 = vsel %vm2005_vm0, %v6444_v9, %v3296_v23  ;;  %v2923_v3 = vrot.slane %v2922_v25, 4  ;;  %v2954_v47 = vshrl.u32 %v2611_v0, 16  ;;  %v2935_v32 = vrot.slane %v2933_v60, 5  ;;  %v3298_v25 = vpop.permute.xlu1 %3297  ;;  %v7411_v55 = vld [vmem:[#allocation2 + $0xc4] sm:$0xf] }
 0x264   : > { %v2945_v11 = vrot.slane %v10011_v17, 4  ;;  %v2951_v63 = vrot.slane %v10013_v26, 5  ;;  %v2941_v40 = vrot.slane %v2939_v21, 5  ;;  %v2957_v35 = vshll.u32 %v2611_v0, 16  ;;  %v3973_v61 = vpop.permute.xlu0 %3972  ;;  %v4059_v21 = vld [vmem:[#allocation2 + $0x1c] sm:$0xf] }
 0x265   : > { %v2963_v39 = vshll.u32 %v7408_v2, 16  ;;  %v2918_v1 = vsel %vm7594_vm10, %v2913_v31, %v2917_v42  ;;  %v2928_v18 = vsel %vm7594_vm10, %v2923_v3, %v2927_v51  ;;  %v2956_v30 = vrot.slane %v2954_v47, 4  ;;  %5028 = vmatmul.mubr.bf16.gmra.mrb[52].mxu0 %v8881_v19  ;;  %v4061_v31 = vld [vmem:[#allocation2 + $0x24] sm:$0xe] }
 0x266   : > { %v10015_v27 = vshrl.u32 %v10014_v10, 16  ;;  %v6445_v49 = vcombine.low %v2918_v1, %v2928_v18  ;;  %v2936_v59 = vor.u32 %v2935_v32, %v2932_v28  ;;  %v2946_v8 = vor.u32 %v2945_v11, %v2941_v40  ;;  %v7410_v11 = vld [vmem:[#allocation2 + $0xc0] sm:$0xf]  ;;  %5035 = vmatprep.mubr.bf16.mxu0 %v8860_v20  ;;  %4915 = vmatmul.mubr.bf16.gmra.mrb[76].mxu1 %v8815_v46 }
 0x267   : > { %v2959_v34 = vrot.slane %v2957_v35, 5  ;;  %v2965_v48 = vrot.slane %v2963_v39, 5  ;;  %v10017_v54 = vshll.u32 %v10016_v16, 16  ;;  %v2978_v41 = vshrl.u32 %v2614_v57, 16 }
 0x268   : > { %v2969_v4 = vrot.slane %v10015_v27, 4  ;;  %v2981_v43 = vshll.u32 %v2614_v57, 16  ;;  %v2937_v58 = vrot.slane %v2936_v59, 4  ;;  %v2947_v42 = vrot.slane %v2946_v8, 4  ;;  %v4065_v57 = vld [vmem:[#allocation2 + $0x34] sm:$0xf] }
 0x269   : > { %v2975_v13 = vrot.slane %v10017_v54, 5  ;;  %v2960_v44 = vor.u32 %v2959_v34, %v2956_v30  ;;  %v2987_v51 = vshll.u32 %v7409_v22, 16  ;;  %v2980_v12 = vrot.slane %v2978_v41, 4  ;;  %v4066_v27 = vld [vmem:[#allocation2 + $0x38] sm:$0x1] }
 0x26a   : > { %v2970_v5 = vor.u32 %v2969_v4, %v2965_v48  ;;  %v2983_v29 = vrot.slane %v2981_v43, 5  ;;  %v10019_v0 = vshrl.u32 %v10018_v24, 16  ;;  %v2942_v62 = vsel %vm7594_vm10, %v2937_v58, %v2941_v40  ;;  %v4064_v40 = vld [vmem:[#allocation2 + $0x30] sm:$0xe]  ;;  %v4067_v4 = vld [vmem:[#allocation2 + $0x3c] sm:$0xe]  ;;  %v3300_v41 = vpop.permute.xlu1 %3299 }
 0x26b   : > { %v2952_v28 = vsel %vm7594_vm10, %v2947_v42, %v2951_v63  ;;  %v2961_v23 = vrot.slane %v2960_v44, 4  ;;  %v8938_v60 = vrot.slane %v2987_v51, 5  ;;  %v8944_v45 = vsel %vm2005_vm0, %v6478_v36, %v3973_v61  ;;  %v4060_v63 = vld [vmem:[#allocation2 + $0x20] sm:$0x1]  ;;  %v4063_v36 = vld [vmem:[#allocation2 + $0x2c] sm:$0x1] }
 0x26c   : > { %v2993_v9 = vrot.slane %v10019_v0, 4  ;;  %v8947_v17 = vsel %vm2005_vm0, %v6445_v49, %v3298_v25  ;;  %v6479_v26 = vcombine.low %v7410_v11, %v7411_v55  ;;  %v2971_v19 = vrot.slane %v2970_v5, 4  ;;  %v4069_v54 = vld [vmem:[#allocation2 + $0x44] sm:$0x1]  ;;  %v4071_v22 = vld [vmem:[#allocation2 + $0x4c] sm:$0xf]  ;;  %v3975_v5 = vpop.permute.xlu0 %3974 }
 0x26d   : > { %v6446_v3 = vcombine.low %v2942_v62, %v2952_v28  ;;  %v2966_v47 = vsel %vm7594_vm10, %v2961_v23, %v2965_v48  ;;  %v2984_v32 = vor.u32 %v2983_v29, %v2980_v12  ;;  %v8957_v2 = vrot.slane %v2997_v56, 5  ;;  %v4072_v51 = vld [vmem:[#allocation2 + $0x50] sm:$0x1]  ;;  %5036 = vmatmul.mubr.bf16.gmra.mrb[56].mxu0 %v8903_v6  ;;  %v4074_v61 = vld [vmem:[#allocation2 + $0x58] sm:$0xf] }
 0x26e   : > { %v2994_v33 = vor.u32 %v2993_v9, %v8938_v60  ;;  %v2976_v35 = vsel %vm7594_vm10, %v2971_v19, %v2975_v13  ;;  %v6497_v20 = vrot.slane %v4058_v37, 9  ;;  %v4156_v39 = vrot.slane %v4059_v21, 5  ;;  %v4070_v13 = vld [vmem:[#allocation2 + $0x48] sm:$0xe]  ;;  %v4073_v9 = vld [vmem:[#allocation2 + $0x54] sm:$0xe]  ;;  %5043 = vmatprep.mubr.bf16.mxu0 %v8878_v50 }
 0x26f   : > { %v8960_v1 = vrot.slane %v2984_v32, 4  ;;  %v4159_v30 = vrot.slane %v4060_v63, 5  ;;  %v6498_v10 = vrot.slane %v4061_v31, 9  ;;  %v6447_v49 = vcombine.low %v2966_v47, %v2976_v35  ;;  %v4075_v37 = vld [vmem:[#allocation2 + $0x5c] sm:$0x1] }
 0x270   : > { %v8962_v18 = vrot.slane %v2994_v33, 4  ;;  %v4158_v59 = vrot.slane %v4156_v39, 4  ;;  %v4163_v8 = vrot.slane %v4062_v53, 5  ;;  %v4166_v34 = vrot.slane %v4063_v36, 5  ;;  %v4076_v21 = vld [vmem:[#allocation2 + $0x60] sm:$0xe] }
 0x271   : > { %v2990_v46 = vsel %vm7594_vm10, %v8960_v1, %v8938_v60  ;;  %v4157_v56 = vsel %vm7986_vm15, %v6497_v20, %v4156_v39  ;;  %v6499_v48 = vrot.slane %v4064_v40, 9  ;;  %v4170_v16 = vrot.slane %v4065_v57, 5  ;;  %v4077_v63 = vld [vmem:[#allocation2 + $0x64] sm:$0xf]  ;;  %v4078_v47 = vld [vmem:[#allocation2 + $0x68] sm:$0x1] }
 0x272   : > { %v3000_v43 = vsel %vm7594_vm10, %v8962_v18, %v8957_v2  ;;  %v4160_v58 = vsel %vm7986_vm15, %v4158_v59, %v4159_v30  ;;  %v4164_v42 = vsel %vm7986_vm15, %v6498_v10, %v4163_v8  ;;  %v4165_v44 = vrot.slane %v4163_v8, 4  ;;  %v4079_v40 = vld [vmem:[#allocation2 + $0x6c] sm:$0xe]  ;;  %v4080_v35 = vld [vmem:[#allocation2 + $0x70] sm:$0xf]  ;;  %v3302_v2 = vpop.permute.xlu1 %3301 }
 0x273   : > { %v8979_v12 = vsel %vm2005_vm0, %v6446_v3, %v3300_v41  ;;  %v6513_v29 = vcombine.low %v4157_v56, %v4160_v58  ;;  %v4171_v24 = vsel %vm7986_vm15, %v6499_v48, %v4170_v16  ;;  %v4172_v0 = vrot.slane %v4170_v16, 4  ;;  %v4081_v30 = vld [vmem:[#allocation2 + $0x74] sm:$0x1]  ;;  %v4082_v8 = vld [vmem:[#allocation2 + $0x78] sm:$0xe] }
 0x274   : > { %v8985_v25 = vsel %vm2005_vm0, %v6479_v26, %v3975_v5  ;;  %v4167_v62 = vsel %vm7986_vm15, %v4165_v44, %v4166_v34  ;;  %v4173_v28 = vrot.slane %v4066_v27, 5  ;;  %v6500_v23 = vrot.slane %v4067_v4, 9  ;;  %v4083_v34 = vld [vmem:[#allocation2 + $0x7c] sm:$0xf]  ;;  %v4086_v44 = vld [vmem:[#allocation2 + $0x88] sm:$0xf] }
 0x275   : > { %4330 = vst.msk [vmem:[#allocation3 + $0x20] sm:$0xff] %vm2005_vm0, %v6513_v29  ;;  %v6514_v6 = vcombine.low %v4164_v42, %v4167_v62  ;;  %v4177_v11 = vrot.slane %v4068_v52, 5  ;;  %v4180_v55 = vrot.slane %v4069_v54, 5  ;;  %v6501_v19 = vrot.slane %v4070_v13, 9  ;;  %v4084_v54 = vld [vmem:[#allocation2 + $0x80] sm:$0x1]  ;;  %5044 = vmatmul.mubr.bf16.gmra.mrb[60].mxu0 %v8918_v14 }
 0x276   : > { %v4174_v26 = vsel %vm7986_vm15, %v4172_v0, %v4173_v28  ;;  %v4184_v31 = vrot.slane %v4071_v22, 5  ;;  %v4187_v3 = vrot.slane %v4072_v51, 5  ;;  %v6502_v50 = vrot.slane %v4073_v9, 9  ;;  %v9016_v22 = vld [vmem:[#allocation2 + $0x8c] sm:$0x1]  ;;  %v3304_v5 = vpop.permute.xlu1 %3303  ;;  %5051 = vmatprep.mubr.bf16.mxu0 %v8906_v15 }
 0x277   : > { %4331 = vst.msk [vmem:[#allocation3 + $0x48] sm:$0xff] %vm2005_vm0, %v6514_v6  ;;  %v6515_v32 = vcombine.low %v4171_v24, %v4174_v26  ;;  %v4178_v33 = vsel %vm7986_vm15, %v6500_v23, %v4177_v11  ;;  %v4179_v53 = vrot.slane %v4177_v11, 4  ;;  %v4191_v36 = vrot.slane %v4074_v61, 5  ;;  %v4088_v51 = vld [vmem:[#allocation2 + $0x90] sm:$0xe] }
 0x278   : > { %v4185_v20 = vsel %vm7986_vm15, %v6501_v19, %v4184_v31  ;;  %v4186_v39 = vrot.slane %v4184_v31, 4  ;;  %v4194_v57 = vrot.slane %v4075_v37, 5  ;;  %v6503_v18 = vrot.slane %v4076_v21, 9  ;;  %v4091_v61 = vld [vmem:[#allocation2 + $0x9c] sm:$0xe] }
 0x279   : > { %v8999_v10 = vsel %vm2005_vm0, %v6447_v49, %v3302_v2  ;;  %4332 = vst.msk [vmem:[#allocation3 + $0x70] sm:$0xff] %vm2005_vm0, %v6515_v32  ;;  %v4181_v27 = vsel %vm7986_vm15, %v4179_v53, %v4180_v55  ;;  %v4192_v4 = vsel %vm7986_vm15, %v6502_v50, %v4191_v36  ;;  %v4193_v59 = vrot.slane %v4191_v36, 4  ;;  %v4085_v49 = vld [vmem:[#allocation2 + $0x84] sm:$0xe]  ;;  %v4092_v6 = vld [vmem:[#allocation2 + $0xa0] sm:$0xf] }
 0x27a   : > { %v6516_v52 = vcombine.low %v4178_v33, %v4181_v27  ;;  %v4188_v56 = vsel %vm7986_vm15, %v4186_v39, %v4187_v3  ;;  %v4198_v48 = vrot.slane %v4077_v63, 5  ;;  %v4201_v16 = vrot.slane %v4078_v47, 5  ;;  %v4093_v26 = vld [vmem:[#allocation2 + $0xa4] sm:$0x1]  ;;  %v4094_v31 = vld [vmem:[#allocation2 + $0xa8] sm:$0xe] }
 0x27b   : > { %v6448_v13 = vcombine.low %v2990_v46, %v3000_v43  ;;  %v6517_v41 = vcombine.low %v4185_v20, %v4188_v56  ;;  %v4195_v58 = vsel %vm7986_vm15, %v4193_v59, %v4194_v57  ;;  %v6504_v42 = vrot.slane %v4079_v40, 9  ;;  %v4089_v46 = vld [vmem:[#allocation2 + $0x94] sm:$0xf]  ;;  %v4090_v43 = vld [vmem:[#allocation2 + $0x98] sm:$0x1] }
 0x27c   : > { %v4350_v29 = vld [vmem:[#allocation3 + $0x20] sm:$0xff]  ;;  %4333 = vst.msk [vmem:[#allocation3 + $0x98] sm:$0xff] %vm2005_vm0, %v6516_v52  ;;  %v6518_v38 = vcombine.low %v4192_v4, %v4195_v58  ;;  %v4199_v60 = vsel %vm7986_vm15, %v6503_v18, %v4198_v48  ;;  %v4200_v14 = vrot.slane %v4198_v48, 4  ;;  %v4205_v1 = vrot.slane %v4080_v35, 5  ;;  %v4095_v53 = vld [vmem:[#allocation2 + $0xac] sm:$0xf] }
 0x27d   : > { %v9023_v24 = vsel %vm2005_vm0, %v6448_v13, %v3304_v5  ;;  %7001 = vmatprep.mubr.msk.bf16.mxu1 %vm2005_vm0, %v4350_v29  ;;  %4334 = vst.msk [vmem:[#allocation3 + $0xc0] sm:$0xff] %vm2005_vm0, %v6517_v41  ;;  %v4208_v0 = vrot.slane %v4081_v30, 5  ;;  %v6505_v9 = vrot.slane %v4082_v8, 9  ;;  %v4212_v15 = vrot.slane %v4083_v34, 5  ;;  %v4096_v20 = vld [vmem:[#allocation2 + $0xb0] sm:$0x1]  ;;  %5052 = vmatmul.mubr.bf16.gmra.mrb[64].mxu0 %v8947_v17 }
 0x27e   : > { %v4355_v62 = vld [vmem:[#allocation3 + $0x48] sm:$0xff]  ;;  %4335 = vst.msk [vmem:[#allocation3 + $0xe8] sm:$0xff] %vm2005_vm0, %v6518_v38  ;;  %v4202_v28 = vsel %vm7986_vm15, %v4200_v14, %v4201_v16  ;;  %v4206_v23 = vsel %vm7986_vm15, %v6504_v42, %v4205_v1  ;;  %v4207_v37 = vrot.slane %v4205_v1, 4  ;;  %v4215_v21 = vrot.slane %v4084_v54, 5  ;;  %v4097_v39 = vld [vmem:[#allocation2 + $0xb4] sm:$0xe]  ;;  %5059 = vmatprep.mubr.bf16.mxu0 %v8944_v45 }
 0x27f   : > { %7002 = vmatmul.mubr.msk.bf16.vlgmr.msra.gmra.mrb[80].mxu1 %vm2005_vm0, %v4355_v62  ;;  %v6519_v11 = vcombine.low %v4199_v60, %v4202_v28  ;;  %v4213_v55 = vsel %vm7986_vm15, %v6505_v9, %v4212_v15  ;;  %v4214_v19 = vrot.slane %v4212_v15, 4  ;;  %v6506_v63 = vrot.slane %v4085_v49, 9  ;;  %v4098_v4 = vld [vmem:[#allocation2 + $0xb8] sm:$0xf]  ;;  %v4099_v59 = vld [vmem:[#allocation2 + $0xbc] sm:$0x1] }
 0x280   : > { %v4360_v3 = vld [vmem:[#allocation3 + $0x70] sm:$0xff]  ;;  %v4209_v50 = vsel %vm7986_vm15, %v4207_v37, %v4208_v0  ;;  %v4219_v47 = vrot.slane %v4086_v44, 5  ;;  %v4222_v32 = vrot.slane %v9016_v22, 5  ;;  %v6507_v33 = vrot.slane %v4088_v51, 9  ;;  %v4100_v8 = vld [vmem:[#allocation2 + $0xc0] sm:$0xe] }
 0x281   : > { %7005 = vmatprep.mubr.msk.bf16.mxu1 %vm2005_vm0, %v4360_v3  ;;  %4336 = vst.msk [vmem:[#allocation3 + $0x110] sm:$0xff] %vm2005_vm0, %v6519_v11  ;;  %v6520_v36 = vcombine.low %v4206_v23, %v4209_v50  ;;  %v4216_v40 = vsel %vm7986_vm15, %v4214_v19, %v4215_v21  ;;  %v4226_v35 = vrot.slane %v4089_v46, 5  ;;  %v4229_v2 = vrot.slane %v4090_v43, 5  ;;  %v4101_v16 = vld [vmem:[#allocation2 + $0xc4] sm:$0xf]  ;;  %v5418_v21 = vld [vmem:[%s9920_s3 + $0x8] sm:$0xff] }
 0x282   : > { %v6521_v57 = vcombine.low %v4213_v55, %v4216_v40  ;;  %v4220_v18 = vsel %vm7986_vm15, %v6506_v63, %v4219_v47  ;;  %v4221_v30 = vrot.slane %v4219_v47, 4  ;;  %v6508_v27 = vrot.slane %v4091_v61, 9  ;;  %v4102_v17 = vld [vmem:[#allocation2 + $0xc8] sm:$0x1]  ;;  %v4103_v51 = vld [vmem:[#allocation2 + $0xcc] sm:$0xe] }
 0x283   : > { %4337 = vst.msk [vmem:[#allocation3 + $0x138] sm:$0xff] %vm2005_vm0, %v6520_v36  ;;  %v4227_v34 = vsel %vm7986_vm15, %v6507_v33, %v4226_v35  ;;  %v4228_v52 = vrot.slane %v4226_v35, 4  ;;  %v4233_v56 = vrot.slane %v4092_v6, 5  ;;  %v4236_v48 = vrot.slane %v4093_v26, 5  ;;  %v4104_v5 = vld [vmem:[#allocation2 + $0xd0] sm:$0xf] }
 0x284   : > { %4338 = vst.msk [vmem:[#allocation3 + $0x160] sm:$0xff] %vm2005_vm0, %v6521_v57  ;;  %v4223_v54 = vsel %vm7986_vm15, %v4221_v30, %v4222_v32  ;;  %v6509_v49 = vrot.slane %v4094_v31, 9  ;;  %v4240_v13 = vrot.slane %v4095_v53, 5  ;;  %v4243_v41 = vrot.slane %v4096_v20, 5  ;;  %v4365_v45 = vld [vmem:[#allocation3 + $0x98] sm:$0xff]  ;;  %v4370_v46 = vld [vmem:[#allocation3 + $0xc0] sm:$0xff] }
 0x285   : > { %v6522_v58 = vcombine.low %v4220_v18, %v4223_v54  ;;  %v4230_v42 = vsel %vm7986_vm15, %v4228_v52, %v4229_v2  ;;  %v4234_v44 = vsel %vm7986_vm15, %v6508_v27, %v4233_v56  ;;  %v4235_v22 = vrot.slane %v4233_v56, 4  ;;  %v4105_v1 = vld [vmem:[#allocation2 + $0xd4] sm:$0x1]  ;;  %v5417_v61 = vld [vmem:[%s9920_s3] sm:$0xff]  ;;  %v5420_v11 = vld [vmem:[%s9920_s3 + $0x18] sm:$0xff]  ;;  %5060 = vmatmul.mubr.bf16.gmra.mrb[68].mxu0 %v8979_v12 }
 0x286   : > { %v6523_v29 = vcombine.low %v4227_v34, %v4230_v42  ;;  %v4241_v38 = vsel %vm7986_vm15, %v6509_v49, %v4240_v13  ;;  %v4242_v60 = vrot.slane %v4240_v13, 4  ;;  %v6510_v14 = vrot.slane %v4097_v39, 9  ;;  %v5419_v6 = vld [vmem:[%s9920_s3 + $0x10] sm:$0xff]  ;;  %5067 = vmatprep.mubr.bf16.mxu0 %v8985_v25  ;;  %v4375_v12 = vld [vmem:[#allocation3 + $0xe8] sm:$0xff]  ;;  %v5422_v27 = vld [vmem:[%s9920_s3 + $0x28] sm:$0xff] }
 0x287   : > { %7006 = vmatmul.mubr.msk.bf16.gmra.mrb[84].mxu1 %vm2005_vm0, %v4365_v45  ;;  %4339 = vst.msk [vmem:[#allocation3 + $0x188] sm:$0xff] %vm2005_vm0, %v6522_v58  ;;  %v4237_v43 = vsel %vm7986_vm15, %v4235_v22, %v4236_v48  ;;  %v4247_v0 = vrot.slane %v4098_v4, 5  ;;  %v4250_v9 = vrot.slane %v4099_v59, 5  ;;  %v6511_v15 = vrot.slane %v4100_v8, 9  ;;  %v5421_v30 = vld [vmem:[%s9920_s3 + $0x20] sm:$0xff] }
 0x288   : > { %7009 = vmatprep.mubr.msk.bf16.mxu1 %vm2005_vm0, %v4370_v46  ;;  %4340 = vst.msk [vmem:[#allocation3 + $0x1b0] sm:$0xff] %vm2005_vm0, %v6523_v29  ;;  %v6524_v62 = vcombine.low %v4234_v44, %v4237_v43  ;;  %v4244_v28 = vsel %vm7986_vm15, %v4242_v60, %v4243_v41  ;;  %v4254_v23 = vrot.slane %v4101_v16, 5  ;;  %v4257_v37 = vrot.slane %v4102_v17, 5  ;;  %v4380_v25 = vld [vmem:[#allocation3 + $0x110] sm:$0xff]  ;;  %v7412_v4 = vld [vmem:[#allocation2 + $0xd0] sm:$0xf] }
 0x289   : > { %v6525_v55 = vcombine.low %v4241_v38, %v4244_v28  ;;  %v4248_v19 = vsel %vm7986_vm15, %v6510_v14, %v4247_v0  ;;  %v4249_v63 = vrot.slane %v4247_v0, 4  ;;  %v6512_v26 = vrot.slane %v4103_v51, 9  ;;  %v7413_v59 = vld [vmem:[#allocation2 + $0xcc] sm:$0xf]  ;;  %v5423_v17 = vld [vmem:[%s9920_s3 + $0x30] sm:$0xff] }
 0x28a   : > { %4341 = vst.msk [vmem:[#allocation3 + $0x1d8] sm:$0xff] %vm2005_vm0, %v6524_v62  ;;  %v4255_v31 = vsel %vm7986_vm15, %v6511_v15, %v4254_v23  ;;  %v4256_v3 = vrot.slane %v4254_v23, 4  ;;  %v4261_v50 = vrot.slane %v4104_v5, 5  ;;  %v4264_v47 = vrot.slane %v4105_v1, 5  ;;  %v4385_v18 = vld [vmem:[#allocation3 + $0x138] sm:$0xff] }
 0x28b   : > { %4342 = vst.msk [vmem:[#allocation3 + $0x200] sm:$0xff] %vm2005_vm0, %v6525_v55  ;;  %v4251_v32 = vsel %vm7986_vm15, %v4249_v63, %v4250_v9  ;;  %v7097_v33 = vpack.c.bf16 %v5418_v21, %v5417_v61  ;;  %v7101_v53 = vpack.c.bf16 %v5420_v11, %v5419_v6  ;;  %v4390_v7 = vld [vmem:[#allocation3 + $0x160] sm:$0xff]  ;;  %v6480_v8 = vcombine.low %v7413_v59, %v7412_v4 }
 0x28c   : > { %v6526_v36 = vcombine.low %v4248_v19, %v4251_v32  ;;  %v4258_v40 = vsel %vm7986_vm15, %v4256_v3, %v4257_v37  ;;  %v4262_v35 = vsel %vm7986_vm15, %v6512_v26, %v4261_v50  ;;  %v4263_v2 = vrot.slane %v4261_v50, 4 }
 0x28d   : > { %v6527_v20 = vcombine.low %v4255_v31, %v4258_v40  ;;  %7098 = vmatprep.subr.bf16.mxu0 %v7097_v33  ;;  %5068 = vmatmul.mubr.bf16.gmra.mrb[72].mxu0 %v8999_v10  ;;  %v7105_v34 = vpack.c.bf16 %v5422_v27, %v5421_v30 }
 0x28e   : > { %4343 = vst.msk [vmem:[#allocation3 + $0x228] sm:$0xff] %vm2005_vm0, %v6526_v36  ;;  %v4265_v39 = vsel %vm7986_vm15, %v4263_v2, %v4264_v47  ;;  %7100 = vmatpush3.bf16.msra.mxu0 %v7097_v33  ;;  %v4395_v52 = vld [vmem:[#allocation3 + $0x188] sm:$0xff] }
 0x28f   : > { %7010 = vmatmul.mubr.msk.bf16.gmra.mrb[88].mxu1 %vm2005_vm0, %v4375_v12  ;;  %4344 = vst.msk [vmem:[#allocation3 + $0x250] sm:$0xff] %vm2005_vm0, %v6527_v20  ;;  %v6528_v57 = vcombine.low %v4262_v35, %v4265_v39  ;;  %7102 = vmatprep.subr.bf16.mxu0 %v7101_v53  ;;  %v4400_v48 = vld [vmem:[#allocation3 + $0x1b0] sm:$0xff] }
 0x290   : > { %7013 = vmatprep.mubr.msk.bf16.mxu1 %vm2005_vm0, %v4380_v25 }
 0x291   : > { %4345 = vst.msk [vmem:[#allocation3 + $0x278] sm:$0xff] %vm2005_vm0, %v6528_v57  ;;  %v4405_v16 = vld [vmem:[#allocation3 + $0x1d8] sm:$0xff] }
 0x292   : > { %7104 = vmatpush3.bf16.msra.mxu0 %v7101_v53  ;;  %v4410_v54 = vld [vmem:[#allocation3 + $0x200] sm:$0xff] }
 0x293   : > { %7106 = vmatprep.subr.bf16.mxu0 %v7105_v34 }
 0x295   : > { %v4415_v49 = vld [vmem:[#allocation3 + $0x228] sm:$0xff] }
 0x296   : > { %7108 = vmatpush3.bf16.msra.mxu0 %v7105_v34  ;;  %v4420_v13 = vld [vmem:[#allocation3 + $0x250] sm:$0xff] }
 0x297   : > { %7014 = vmatmul.mubr.msk.bf16.gmra.mrb[92].mxu1 %vm2005_vm0, %v4385_v18 }
 0x298   : > { %7017 = vmatprep.mubr.msk.bf16.mxu1 %vm2005_vm0, %v4390_v7  ;;  %v3977_v10 = vpop.permute.xlu0 %3976  ;;  %v4425_v41 = vld [vmem:[#allocation3 + $0x278] sm:$0xff] }
 0x299   : > { %v4040_v56 = vsel %vm2005_vm0, %v6480_v8, %v3977_v10 }
 0x29a   : > { %5075 = vmatprep.mubr.bf16.mxu0 %v4040_v56 }
 0x29b   : > { %5076 = vmatmul.mubr.bf16.gmra.mrb[76].mxu0 %v9023_v24  ;;  %v5424_v24 = vld [vmem:[%s9920_s3 + $0x38] sm:$0xff] }
 0x29c   : > { %v7109_v58 = vpack.c.bf16 %v5424_v24, %v5423_v17 }
 0x29e   : > { %7110 = vmatprep.subr.bf16.mxu0 %v7109_v58 }
 0x29f   : > { %7018 = vmatmul.mubr.msk.bf16.gmra.mrb[96].mxu1 %vm2005_vm0, %v4395_v52  ;;  %7112 = vmatpush3.bf16.msra.mxu0 %v7109_v58 }
 0x2a0   : > { %7021 = vmatprep.mubr.msk.bf16.mxu1 %vm2005_vm0, %v4400_v48 }
 0x2a7   : > { %7022 = vmatmul.mubr.msk.bf16.gmra.mrb[100].mxu1 %vm2005_vm0, %v4405_v16 }
 0x2a8   : > { %7025 = vmatprep.mubr.msk.bf16.mxu1 %vm2005_vm0, %v4410_v54 }
 0x2af   : > { %7026 = vmatmul.mubr.msk.bf16.gmra.mrb[104].mxu1 %vm2005_vm0, %v4415_v49 }
 0x2b0   : > { %7029 = vmatprep.mubr.msk.bf16.mxu1 %vm2005_vm0, %v4420_v13 }
 0x2b7   : > { %7030 = vmatmul.mubr.msk.bf16.gmra.mrb[108].mxu1 %vm2005_vm0, %v4425_v41 }
 0x2c1   : > { %v6687_v42 = vpop.f32.mrb[16].mxu1 }
 0x2c2   : > { %v6688_v44 = vpop.f32.mrb[17].mxu1 }
 0x2c3   : > { %v6689_v22 = vadd.f32 %v6688_v44, %v6687_v42  ;;  %v6690_v51 = vpop.f32.mrb[18].mxu1 }
 0x2c4   : > { %v6691_v5 = vpop.f32.mrb[19].mxu1 }
 0x2c5   : > { %v6692_v45 = vadd.f32 %v6691_v5, %v6690_v51 }
 0x2c9   : > { %v6693_v29 = vpop.f32.mrb[20].mxu1 }
 0x2ca   : > { %v6694_v38 = vpop.f32.mrb[21].mxu1 }
 0x2cb   : > { %v6695_v60 = vadd.f32 %v6694_v38, %v6693_v29  ;;  %v6696_v14 = vpop.f32.mrb[22].mxu1 }
 0x2cc   : > { %v6697_v1 = vpop.f32.mrb[23].mxu1 }
 0x2cd   : > { %v6698_v46 = vadd.f32 %v6697_v1, %v6696_v14 }
 0x2d1   : > { %v6699_v43 = vpop.f32.mrb[24].mxu1 }
 0x2d2   : > { %v6700_v0 = vpop.f32.mrb[25].mxu1 }
 0x2d3   : > { %v6701_v9 = vadd.f32 %v6700_v0, %v6699_v43  ;;  %v6702_v15 = vpop.f32.mrb[26].mxu1 }
 0x2d4   : > { %v6703_v61 = vpop.f32.mrb[27].mxu1 }
 0x2d5   : > { %v6704_v62 = vadd.f32 %v6703_v61, %v6702_v15 }
 0x2d9   : > { %v6705_v28 = vpop.f32.mrb[28].mxu1 }
 0x2da   : > { %v6706_v23 = vpop.f32.mrb[29].mxu1 }
 0x2db   : > { %v9123_v37 = vadd.f32 %v6706_v23, %v6705_v28  ;;  %v6708_v21 = vpop.f32.mrb[30].mxu1 }
 0x2dc   : > { %v6709_v6 = vpop.f32.mrb[31].mxu1 }
 0x2dd   : > { %v9125_v11 = vadd.f32 %v6709_v6, %v6708_v21 }
 0x2e1   : > { %v6711_v55 = vpop.f32.mrb[32].mxu1 }
 0x2e2   : > { %v6712_v19 = vpop.f32.mrb[33].mxu1 }
 0x2e3   : > { %v9127_v63 = vadd.f32 %v6712_v19, %v6711_v55  ;;  %v6714_v26 = vpop.f32.mrb[34].mxu1 }
 0x2e4   : > { %v6715_v31 = vpop.f32.mrb[35].mxu1 }
 0x2e5   : > { %v9129_v3 = vadd.f32 %v6715_v31, %v6714_v26 }
 0x2e9   : > { %v6717_v50 = vpop.f32.mrb[36].mxu1 }
 0x2ea   : > { %v6718_v47 = vpop.f32.mrb[37].mxu1 }
 0x2eb   : > { %v9131_v32 = vadd.f32 %v6718_v47, %v6717_v50  ;;  %v6720_v33 = vpop.f32.mrb[38].mxu1 }
 0x2ec   : > { %v6799_v53 = vpop.f32.mrb[16].mxu0  ;;  %v6721_v36 = vpop.f32.mrb[39].mxu1 }
 0x2ed   : > { %v6800_v40 = vpop.f32.mrb[17].mxu0  ;;  %v9133_v35 = vadd.f32 %v6721_v36, %v6720_v33 }
 0x2ee   : > { %v6801_v2 = vadd.f32 %v6800_v40, %v6799_v53  ;;  %v6802_v20 = vpop.f32.mrb[18].mxu0 }
 0x2ef   : > { %v6803_v12 = vpop.f32.mrb[19].mxu0 }
 0x2f0   : > { %v6804_v39 = vadd.f32 %v6803_v12, %v6802_v20  ;;  %v9135_v25 = vadd.f32 %v6801_v2, %v6689_v22 }
 0x2f1   : > { %v6723_v57 = vpop.f32.mrb[40].mxu1 }
 0x2f2   : > { %v6724_v18 = vpop.f32.mrb[41].mxu1  ;;  %v9137_v7 = vadd.f32 %v6804_v39, %v6692_v45 }
 0x2f3   : > { %v9139_v30 = vadd.f32 %v6724_v18, %v6723_v57  ;;  %v6726_v27 = vpop.f32.mrb[42].mxu1 }
 0x2f4   : > { %v6727_v59 = vpop.f32.mrb[43].mxu1 }
 0x2f5   : > { %v9141_v34 = vadd.f32 %v6727_v59, %v6726_v27 }
 0x2f6   : > { %v6805_v4 = vpop.f32.mrb[20].mxu0 }
 0x2f7   : > { %v6806_v8 = vpop.f32.mrb[21].mxu0 }
 0x2f8   : > { %v6807_v10 = vadd.f32 %v6806_v8, %v6805_v4  ;;  %v6808_v52 = vpop.f32.mrb[22].mxu0 }
 0x2f9   : > { %v6809_v56 = vpop.f32.mrb[23].mxu0  ;;  %v6729_v54 = vpop.f32.mrb[44].mxu1 }
 0x2fa   : > { %v6810_v48 = vadd.f32 %v6809_v56, %v6808_v52  ;;  %v9143_v16 = vadd.f32 %v6807_v10, %v6695_v60  ;;  %v6730_v49 = vpop.f32.mrb[45].mxu1 }
 0x2fb   : > { %v9147_v41 = vadd.f32 %v6730_v49, %v6729_v54  ;;  %v6732_v17 = vpop.f32.mrb[46].mxu1 }
 0x2fc   : > { %v9145_v13 = vadd.f32 %v6810_v48, %v6698_v46  ;;  %v6733_v24 = vpop.f32.mrb[47].mxu1 }
 0x2fd   : > { %v9149_v58 = vadd.f32 %v6733_v24, %v6732_v17 }
 0x300   : > { %v6811_v42 = vpop.f32.mrb[24].mxu0 }
 0x301   : > { %v6812_v44 = vpop.f32.mrb[25].mxu0  ;;  %v6735_v45 = vpop.f32.mrb[48].mxu1 }
 0x302   : > { %v6813_v22 = vadd.f32 %v6812_v44, %v6811_v42  ;;  %v6814_v51 = vpop.f32.mrb[26].mxu0  ;;  %v6736_v38 = vpop.f32.mrb[49].mxu1 }
 0x303   : > { %v6815_v5 = vpop.f32.mrb[27].mxu0  ;;  %v9153_v14 = vadd.f32 %v6736_v38, %v6735_v45  ;;  %v6738_v1 = vpop.f32.mrb[50].mxu1 }
 0x304   : > { %v6816_v29 = vadd.f32 %v6815_v5, %v6814_v51  ;;  %v9151_v60 = vadd.f32 %v6813_v22, %v6701_v9  ;;  %v6739_v46 = vpop.f32.mrb[51].mxu1 }
 0x305   : > { %v9157_v0 = vadd.f32 %v6739_v46, %v6738_v1 }
 0x306   : > { %v9155_v43 = vadd.f32 %v6816_v29, %v6704_v62 }
 0x308   : > { %v6817_v15 = vpop.f32.mrb[28].mxu0 }
 0x309   : > { %v6818_v61 = vpop.f32.mrb[29].mxu0  ;;  %v6741_v6 = vpop.f32.mrb[52].mxu1 }
 0x30a   : > { %v6819_v28 = vadd.f32 %v6818_v61, %v6817_v15  ;;  %v6820_v23 = vpop.f32.mrb[30].mxu0  ;;  %v6742_v19 = vpop.f32.mrb[53].mxu1 }
 0x30b   : > { %v6821_v21 = vpop.f32.mrb[31].mxu0  ;;  %v9162_v9 = vadd.f32 %v6742_v19, %v6741_v6  ;;  %v6744_v31 = vpop.f32.mrb[54].mxu1 }
 0x30c   : > { %v6822_v55 = vadd.f32 %v6821_v21, %v6820_v23  ;;  %v9160_v26 = vadd.f32 %v6819_v28, %v9123_v37  ;;  %v6745_v50 = vpop.f32.mrb[55].mxu1 }
 0x30d   : > { %v9167_v47 = vadd.f32 %v6745_v50, %v6744_v31 }
 0x30e   : > { %v9165_v62 = vadd.f32 %v6822_v55, %v9125_v11 }
 0x310   : > { %v6823_v33 = vpop.f32.mrb[32].mxu0 }
 0x311   : > { %v6824_v53 = vpop.f32.mrb[33].mxu0  ;;  %v6747_v20 = vpop.f32.mrb[56].mxu1 }
 0x312   : > { %v6825_v36 = vadd.f32 %v6824_v53, %v6823_v33  ;;  %v6826_v40 = vpop.f32.mrb[34].mxu0  ;;  %v6748_v39 = vpop.f32.mrb[57].mxu1 }
 0x313   : > { %v6827_v2 = vpop.f32.mrb[35].mxu0  ;;  %v9172_v57 = vadd.f32 %v6748_v39, %v6747_v20  ;;  %v6750_v18 = vpop.f32.mrb[58].mxu1 }
 0x314   : > { %v6828_v12 = vadd.f32 %v6827_v2, %v6826_v40  ;;  %v9170_v37 = vadd.f32 %v6825_v36, %v9127_v63  ;;  %v6751_v27 = vpop.f32.mrb[59].mxu1 }
 0x315   : > { %v9177_v4 = vadd.f32 %v6751_v27, %v6750_v18 }
 0x316   : > { %v9175_v11 = vadd.f32 %v6828_v12, %v9129_v3 }
 0x318   : > { %v6829_v59 = vpop.f32.mrb[36].mxu0 }
 0x319   : > { %v6830_v8 = vpop.f32.mrb[37].mxu0  ;;  %v6753_v48 = vpop.f32.mrb[60].mxu1 }
 0x31a   : > { %v6831_v10 = vadd.f32 %v6830_v8, %v6829_v59  ;;  %v6832_v52 = vpop.f32.mrb[38].mxu0  ;;  %v6754_v49 = vpop.f32.mrb[61].mxu1 }
 0x31b   : > { %v6833_v56 = vpop.f32.mrb[39].mxu0  ;;  %v9182_v17 = vadd.f32 %v6754_v49, %v6753_v48  ;;  %v6756_v24 = vpop.f32.mrb[62].mxu1 }
 0x31c   : > { %v6834_v54 = vadd.f32 %v6833_v56, %v6832_v52  ;;  %v9180_v63 = vadd.f32 %v6831_v10, %v9131_v32  ;;  %v6757_v42 = vpop.f32.mrb[63].mxu1 }
 0x31d   : > { %v9187_v44 = vadd.f32 %v6757_v42, %v6756_v24 }
 0x31e   : > { %v9185_v3 = vadd.f32 %v6834_v54, %v9133_v35 }
 0x320   : > { %v6835_v22 = vpop.f32.mrb[40].mxu0 }
 0x321   : > { %v6836_v51 = vpop.f32.mrb[41].mxu0  ;;  %v6759_v38 = vpop.f32.mrb[64].mxu1 }
 0x322   : > { %v6837_v5 = vadd.f32 %v6836_v51, %v6835_v22  ;;  %v6838_v45 = vpop.f32.mrb[42].mxu0  ;;  %v6760_v46 = vpop.f32.mrb[65].mxu1 }
 0x323   : > { %v6839_v29 = vpop.f32.mrb[43].mxu0  ;;  %v9192_v15 = vadd.f32 %v6760_v46, %v6759_v38  ;;  %v6762_v61 = vpop.f32.mrb[66].mxu1 }
 0x324   : > { %v6840_v1 = vadd.f32 %v6839_v29, %v6838_v45  ;;  %v9190_v32 = vadd.f32 %v6837_v5, %v9139_v30  ;;  %v6763_v28 = vpop.f32.mrb[67].mxu1 }
 0x325   : > { %v9197_v23 = vadd.f32 %v6763_v28, %v6762_v61 }
 0x326   : > { %v9195_v35 = vadd.f32 %v6840_v1, %v9141_v34 }
 0x328   : > { %v6841_v21 = vpop.f32.mrb[44].mxu0 }
 0x329   : > { %v6842_v6 = vpop.f32.mrb[45].mxu0  ;;  %v6765_v50 = vpop.f32.mrb[68].mxu1 }
 0x32a   : > { %v6843_v55 = vadd.f32 %v6842_v6, %v6841_v21  ;;  %v6844_v19 = vpop.f32.mrb[46].mxu0  ;;  %v6766_v53 = vpop.f32.mrb[69].mxu1 }
 0x32b   : > { %v6845_v31 = vpop.f32.mrb[47].mxu0  ;;  %v9202_v36 = vadd.f32 %v6766_v53, %v6765_v50  ;;  %v6768_v40 = vpop.f32.mrb[70].mxu1 }
 0x32c   : > { %v6846_v33 = vadd.f32 %v6845_v31, %v6844_v19  ;;  %v9200_v30 = vadd.f32 %v6843_v55, %v9147_v41  ;;  %v6769_v2 = vpop.f32.mrb[71].mxu1 }
 0x32d   : > { %v9207_v20 = vadd.f32 %v6769_v2, %v6768_v40 }
 0x32e   : > { %v9205_v34 = vadd.f32 %v6846_v33, %v9149_v58 }
 0x330   : > { %v6847_v12 = vpop.f32.mrb[48].mxu0 }
 0x331   : > { %v6848_v39 = vpop.f32.mrb[49].mxu0  ;;  %v6771_v8 = vpop.f32.mrb[72].mxu1 }
 0x332   : > { %v6849_v18 = vadd.f32 %v6848_v39, %v6847_v12  ;;  %v6850_v27 = vpop.f32.mrb[50].mxu0  ;;  %v6772_v52 = vpop.f32.mrb[73].mxu1 }
 0x333   : > { %v6851_v59 = vpop.f32.mrb[51].mxu0  ;;  %v9212_v56 = vadd.f32 %v6772_v52, %v6771_v8  ;;  %v6774_v48 = vpop.f32.mrb[74].mxu1 }
 0x334   : > { %v6852_v10 = vadd.f32 %v6851_v59, %v6850_v27  ;;  %v9210_v41 = vadd.f32 %v6849_v18, %v9153_v14  ;;  %v6775_v54 = vpop.f32.mrb[75].mxu1  ;;  %v9238_v18 = vld [vmem:[%s9921_s4 + $0x3] ss:$0 sm:$0xff] }
 0x335   : > { %v9217_v49 = vadd.f32 %v6775_v54, %v6774_v48 }
 0x336   : > { %v9215_v58 = vadd.f32 %v6852_v10, %v9157_v0 }
 0x338   : > { %v6853_v24 = vpop.f32.mrb[52].mxu0 }
 0x339   : > { %v6854_v42 = vpop.f32.mrb[53].mxu0  ;;  %v6777_v45 = vpop.f32.mrb[76].mxu1 }
 0x33a   : > { %v6855_v22 = vadd.f32 %v6854_v42, %v6853_v24  ;;  %v6856_v51 = vpop.f32.mrb[54].mxu0  ;;  %v6778_v38 = vpop.f32.mrb[77].mxu1 }
 0x33b   : > { %v6857_v5 = vpop.f32.mrb[55].mxu0  ;;  %v9222_v1 = vadd.f32 %v6778_v38, %v6777_v45  ;;  %v6780_v46 = vpop.f32.mrb[78].mxu1 }
 0x33c   : > { %v6858_v29 = vadd.f32 %v6857_v5, %v6856_v51  ;;  %v9220_v14 = vadd.f32 %v6855_v22, %v9162_v9  ;;  %v6781_v61 = vpop.f32.mrb[79].mxu1 }
 0x33d   : > { %v9227_v28 = vadd.f32 %v6781_v61, %v6780_v46 }
 0x33e   : > { %v9225_v0 = vadd.f32 %v6858_v29, %v9167_v47 }
 0x340   : > { %v6859_v21 = vpop.f32.mrb[56].mxu0 }
 0x341   : > { %v6860_v6 = vpop.f32.mrb[57].mxu0 }
 0x342   : > { %v6861_v55 = vadd.f32 %v6860_v6, %v6859_v21  ;;  %v6862_v19 = vpop.f32.mrb[58].mxu0 }
 0x343   : > { %v6863_v31 = vpop.f32.mrb[59].mxu0 }
 0x344   : > { %v6864_v50 = vadd.f32 %v6863_v31, %v6862_v19  ;;  %v9230_v33 = vadd.f32 %v6861_v55, %v9172_v57 }
 0x346   : > { %v9233_v9 = vadd.f32 %v6864_v50, %v9177_v4  ;;  %v9247_v4 = vld [vmem:[%s9921_s4 + $0x4] ss:$0 sm:$0xff] }
 0x348   : > { %v6865_v53 = vpop.f32.mrb[60].mxu0 }
 0x349   : > { %v6866_v40 = vpop.f32.mrb[61].mxu0 }
 0x34a   : > { %v6867_v2 = vadd.f32 %v6866_v40, %v6865_v53  ;;  %v6868_v12 = vpop.f32.mrb[62].mxu0 }
 0x34b   : > { %v6869_v47 = vpop.f32.mrb[63].mxu0 }
 0x34c   : > { %v6870_v39 = vadd.f32 %v6869_v47, %v6868_v12  ;;  %v9241_v59 = vadd.f32 %v6867_v2, %v9182_v17 }
 0x34e   : > { %v9251_v48 = vadd.f32 %v6870_v39, %v9187_v44 }
 0x350   : > { %v6871_v22 = vpop.f32.mrb[64].mxu0 }
 0x351   : > { %v6872_v44 = vpop.f32.mrb[65].mxu0 }
 0x352   : > { %v7003_v27 = vpop.f32.mrb[80].mxu1  ;;  %v6873_v29 = vadd.f32 %v6872_v44, %v6871_v22  ;;  %v6874_v38 = vpop.f32.mrb[66].mxu0 }
 0x353   : > { %v5127_v57 = vadd.f32 %v7003_v27, %v9143_v16  ;;  %v5118_v8 = vpop.f32.mrb[81].mxu1 }
 0x354   : > { %v5119_v10 = vadd.f32 %v5118_v8, %v9135_v25  ;;  %v7004_v52 = vpop.f32.mrb[82].mxu1  ;;  %v9262_v25 = vld [vmem:[%s9921_s4 + $0x5] ss:$0 sm:$0xff] }
 0x355   : > { %v5251_v54 = vmul.f32 %v9238_v18, %v5127_v57  ;;  %v5130_v24 = vadd.f32 %v7004_v52, %v9145_v13  ;;  %v5121_v17 = vpop.f32.mrb[83].mxu1  ;;  %v9278_v57 = vadd.f32 %v6873_v29, %v9192_v15 }
 0x356   : > { %v5249_v42 = vmul.f32 %v9238_v18, %v5119_v10  ;;  %v5122_v16 = vadd.f32 %v5121_v17, %v9137_v7  ;;  %v6875_v7 = vpop.f32.mrb[67].mxu0 }
 0x357   : > { %v5287_v51 = vadd.f32 %v9247_v4, %v5251_v54  ;;  %v5252_v5 = vmul.f32 %v9238_v18, %v5130_v24  ;;  %v6876_v21 = vadd.f32 %v6875_v7, %v6874_v38 }
 0x358   : > { %v5285_v45 = vadd.f32 %v9247_v4, %v5249_v42  ;;  %v5250_v13 = vmul.f32 %v9238_v18, %v5122_v16  ;;  %v6877_v52 = vpop.f32.mrb[68].mxu0 }
 0x359   : > { %v5288_v46 = vadd.f32 %v9247_v4, %v5252_v5  ;;  %vm5319_vm4 = vcmp.ge.f32.partialorder %v5287_v51, 0.0  ;;  %v5355_v50 = vmul.f32 %v9262_v25, %v5287_v51  ;;  %v9283_v54 = vadd.f32 %v6876_v21, %v9197_v23  ;;  %v6878_v17 = vpop.f32.mrb[69].mxu0 }
 0x35a   : > { %v5286_v61 = vadd.f32 %v9247_v4, %v5250_v13  ;;  %v7007_v6 = vpop.f32.mrb[84].mxu1  ;;  %vm5317_vm2 = vcmp.ge.f32.partialorder %v5285_v45, 0.0  ;;  %v5353_v55 = vmul.f32 %v9262_v25, %v5285_v45  ;;  %v6879_v22 = vadd.f32 %v6878_v17, %v6877_v52 }
 0x35b   : > { %v5143_v19 = vadd.f32 %v7007_v6, %v9160_v26  ;;  %v5134_v31 = vpop.f32.mrb[85].mxu1  ;;  %vm5320_vm6 = vcmp.ge.f32.partialorder %v5288_v46, 0.0  ;;  %v5356_v26 = vmul.f32 %v9262_v25, %v5288_v46  ;;  %v5387_v42 = vsel %vm5319_vm4, %v5287_v51, %v5355_v50 }
 0x35c   : > { %vm5318_vm7 = vcmp.ge.f32.partialorder %v5286_v61, 0.0  ;;  %v5354_v53 = vmul.f32 %v9262_v25, %v5286_v61  ;;  %v5135_v40 = vadd.f32 %v5134_v31, %v9151_v60  ;;  %v7008_v2 = vpop.f32.mrb[86].mxu1  ;;  %v5385_v12 = vsel %vm5317_vm2, %v5285_v45, %v5353_v55 }
 0x35d   : > { %v5255_v47 = vmul.f32 %v9238_v18, %v5143_v19  ;;  %v5146_v39 = vadd.f32 %v7008_v2, %v9165_v62  ;;  %v5137_v27 = vpop.f32.mrb[87].mxu1  ;;  %7049 = vmatprep.mubr.msk.f32.mxu0 %vm2005_vm0, %v5385_v12  ;;  %v5388_v44 = vsel %vm5320_vm6, %v5288_v46, %v5356_v26 }
 0x35e   : > { %v5253_v8 = vmul.f32 %v9238_v18, %v5135_v40  ;;  %v5138_v10 = vadd.f32 %v5137_v27, %v9155_v43  ;;  %v5386_v60 = vsel %vm5318_vm7, %v5286_v61, %v5354_v53  ;;  %v6880_v43 = vpop.f32.mrb[70].mxu0  ;;  %v9306_v53 = vadd.f32 %v6879_v22, %v9202_v36 }
 0x35f   : > { %v5291_v24 = vadd.f32 %v9247_v4, %v5255_v47  ;;  %v5256_v62 = vmul.f32 %v9238_v18, %v5146_v39  ;;  %7050 = vmatmul.mubr.msk.f32.vlgmr.msra.gmra.mrb[80].mxu0 %vm2005_vm0, %v5386_v60  ;;  %v6881_v5 = vpop.f32.mrb[71].mxu0 }
 0x360   : > { %v5289_v15 = vadd.f32 %v9247_v4, %v5253_v8  ;;  %v5254_v16 = vmul.f32 %v9238_v18, %v5138_v10  ;;  %7052 = vmatprep.mubr.msk.f32.mxu0 %vm2005_vm0, %v5387_v42  ;;  %v6882_v13 = vadd.f32 %v6881_v5, %v6880_v43  ;;  %v6883_v2 = vpop.f32.mrb[72].mxu0 }
 0x361   : > { %v5292_v23 = vadd.f32 %v9247_v4, %v5256_v62  ;;  %vm5323_vm5 = vcmp.ge.f32.partialorder %v5291_v24, 0.0  ;;  %v5359_v61 = vmul.f32 %v9262_v25, %v5291_v24  ;;  %v6884_v27 = vpop.f32.mrb[73].mxu0 }
 0x362   : > { %v5290_v45 = vadd.f32 %v9247_v4, %v5254_v16  ;;  %v7011_v29 = vpop.f32.mrb[88].mxu1  ;;  %vm5321_vm10 = vcmp.ge.f32.partialorder %v5289_v15, 0.0  ;;  %v5357_v51 = vmul.f32 %v9262_v25, %v5289_v15  ;;  %v9311_v47 = vadd.f32 %v6882_v13, %v9207_v20 }
 0x363   : > { %v5159_v38 = vadd.f32 %v7011_v29, %v9180_v63  ;;  %v5150_v7 = vpop.f32.mrb[89].mxu1  ;;  %7053 = vmatmul.mubr.msk.f32.gmra.mrb[82].mxu0 %vm2005_vm0, %v5388_v44  ;;  %vm5324_vm11 = vcmp.ge.f32.partialorder %v5292_v23, 0.0  ;;  %v5360_v63 = vmul.f32 %v9262_v25, %v5292_v23  ;;  %v5391_v26 = vsel %vm5323_vm5, %v5291_v24, %v5359_v61 }
 0x364   : > { %v5151_v21 = vadd.f32 %v5150_v7, %v9170_v37  ;;  %v7012_v6 = vpop.f32.mrb[90].mxu1  ;;  %v5389_v46 = vsel %vm5321_vm10, %v5289_v15, %v5357_v51  ;;  %vm5322_vm12 = vcmp.ge.f32.partialorder %v5290_v45, 0.0  ;;  %v5358_v55 = vmul.f32 %v9262_v25, %v5290_v45 }
 0x365   : > { %v5259_v19 = vmul.f32 %v9238_v18, %v5159_v38  ;;  %v5162_v31 = vadd.f32 %v7012_v6, %v9185_v3  ;;  %v5153_v50 = vpop.f32.mrb[91].mxu1  ;;  %7055 = vmatprep.mubr.msk.f32.mxu0 %vm2005_vm0, %v5389_v46  ;;  %v6885_v10 = vadd.f32 %v6884_v27, %v6883_v2  ;;  %v5392_v60 = vsel %vm5324_vm11, %v5292_v23, %v5360_v63 }
 0x366   : > { %v5257_v40 = vmul.f32 %v9238_v18, %v5151_v21  ;;  %v5154_v37 = vadd.f32 %v5153_v50, %v9175_v11  ;;  %v5390_v12 = vsel %vm5322_vm12, %v5290_v45, %v5358_v55  ;;  %v6886_v11 = vpop.f32.mrb[74].mxu0 }
 0x367   : > { %v5295_v39 = vadd.f32 %v9247_v4, %v5259_v19  ;;  %v5260_v3 = vmul.f32 %v9238_v18, %v5162_v31  ;;  %7056 = vmatmul.mubr.msk.f32.gmra.mrb[84].mxu0 %vm2005_vm0, %v5390_v12  ;;  %v6887_v52 = vpop.f32.mrb[75].mxu0  ;;  %v9334_v51 = vadd.f32 %v6885_v10, %v9212_v56 }
 0x368   : > { %v5293_v36 = vadd.f32 %v9247_v4, %v5257_v40  ;;  %v5258_v8 = vmul.f32 %v9238_v18, %v5154_v37  ;;  %7058 = vmatprep.mubr.msk.f32.mxu0 %vm2005_vm0, %v5391_v26  ;;  %v6888_v17 = vadd.f32 %v6887_v52, %v6886_v11 }
 0x369   : > { %v5296_v20 = vadd.f32 %v9247_v4, %v5260_v3  ;;  %vm5327_vm14 = vcmp.ge.f32.partialorder %v5295_v39, 0.0  ;;  %v5363_v22 = vmul.f32 %v9262_v25, %v5295_v39 }
 0x36a   : > { %v5294_v62 = vadd.f32 %v9247_v4, %v5258_v8  ;;  %v7015_v42 = vpop.f32.mrb[92].mxu1  ;;  %vm5325_vm13 = vcmp.ge.f32.partialorder %v5293_v36, 0.0  ;;  %v5361_v24 = vmul.f32 %v9262_v25, %v5293_v36  ;;  %v9339_v61 = vadd.f32 %v6888_v17, %v9217_v49 }
 0x36b   : > { %v5175_v15 = vadd.f32 %v7015_v42, %v9200_v30  ;;  %v5166_v16 = vpop.f32.mrb[93].mxu1  ;;  %7059 = vmatmul.mubr.msk.f32.gmra.mrb[86].mxu0 %vm2005_vm0, %v5392_v60  ;;  %v5364_v30 = vmul.f32 %v9262_v25, %v5296_v20  ;;  %v5395_v6 = vsel %vm5327_vm14, %v5295_v39, %v5363_v22  ;;  %vm5328_vm1 = vcmp.ge.f32.partialorder %v5296_v20, 0.0 }
 0x36c   : > { %v5167_v43 = vadd.f32 %v5166_v16, %v9190_v32  ;;  %v7016_v5 = vpop.f32.mrb[94].mxu1  ;;  %v5393_v44 = vsel %vm5325_vm13, %v5293_v36, %v5361_v24  ;;  %vm5326_vm15 = vcmp.ge.f32.partialorder %v5294_v62, 0.0  ;;  %v5362_v23 = vmul.f32 %v9262_v25, %v5294_v62 }
 0x36d   : > { %v5263_v45 = vmul.f32 %v9238_v18, %v5175_v15  ;;  %v5178_v13 = vadd.f32 %v7016_v5, %v9205_v34  ;;  %v5169_v29 = vpop.f32.mrb[95].mxu1  ;;  %7061 = vmatprep.mubr.msk.f32.mxu0 %vm2005_vm0, %v5393_v44  ;;  %v5396_v19 = vsel %vm5328_vm1, %v5296_v20, %v5364_v30 }
 0x36e   : > { %v5261_v38 = vmul.f32 %v9238_v18, %v5167_v43  ;;  %v5170_v32 = vadd.f32 %v5169_v29, %v9195_v35  ;;  %v5394_v7 = vsel %vm5326_vm15, %v5294_v62, %v5362_v23  ;;  %v6889_v37 = vpop.f32.mrb[76].mxu0 }
 0x36f   : > { %v5299_v21 = vadd.f32 %v9247_v4, %v5263_v45  ;;  %v5264_v34 = vmul.f32 %v9238_v18, %v5178_v13  ;;  %7062 = vmatmul.mubr.msk.f32.gmra.mrb[88].mxu0 %vm2005_vm0, %v5394_v7  ;;  %v6890_v27 = vpop.f32.mrb[77].mxu0 }
 0x370   : > { %v5297_v56 = vadd.f32 %v9247_v4, %v5261_v38  ;;  %v5262_v46 = vmul.f32 %v9238_v18, %v5170_v32  ;;  %7064 = vmatprep.mubr.msk.f32.mxu0 %vm2005_vm0, %v5395_v6  ;;  %v6891_v10 = vadd.f32 %v6890_v27, %v6889_v37  ;;  %v6892_v11 = vpop.f32.mrb[78].mxu0 }
 0x371   : > { %v5300_v35 = vadd.f32 %v9247_v4, %v5264_v34  ;;  %vm5331_vm8 = vcmp.ge.f32.partialorder %v5299_v21, 0.0  ;;  %v5367_v40 = vmul.f32 %v9262_v25, %v5299_v21  ;;  %v6893_v60 = vpop.f32.mrb[79].mxu0 }
 0x372   : > { %v5298_v49 = vadd.f32 %v9247_v4, %v5262_v46  ;;  %v7019_v55 = vpop.f32.mrb[96].mxu1  ;;  %vm5329_vm3 = vcmp.ge.f32.partialorder %v5297_v56, 0.0  ;;  %v5365_v31 = vmul.f32 %v9262_v25, %v5297_v56  ;;  %v6894_v42 = vadd.f32 %v6893_v60, %v6892_v11 }
 0x373   : > { %v5191_v50 = vadd.f32 %v7019_v55, %v9220_v14  ;;  %v5182_v63 = vpop.f32.mrb[97].mxu1  ;;  %7065 = vmatmul.mubr.msk.f32.gmra.mrb[90].mxu0 %vm2005_vm0, %v5396_v19  ;;  %vm5332_vm2 = vcmp.ge.f32.partialorder %v5300_v35, 0.0  ;;  %v5368_v8 = vmul.f32 %v9262_v25, %v5300_v35  ;;  %v9370_v16 = vadd.f32 %v6891_v10, %v9222_v1 }
 0x374   : > { %v5183_v2 = vadd.f32 %v5182_v63, %v9210_v41  ;;  %v7020_v12 = vpop.f32.mrb[98].mxu1  ;;  %v5397_v39 = vsel %vm5329_vm3, %v5297_v56, %v5365_v31  ;;  %vm5330_vm9 = vcmp.ge.f32.partialorder %v5298_v49, 0.0  ;;  %v5366_v3 = vmul.f32 %v9262_v25, %v5298_v49 }
 0x375   : > { %v5267_v26 = vmul.f32 %v9238_v18, %v5191_v50  ;;  %v5194_v36 = vadd.f32 %v7020_v12, %v9225_v0  ;;  %v5185_v14 = vpop.f32.mrb[99].mxu1  ;;  %7067 = vmatprep.mubr.msk.f32.mxu0 %vm2005_vm0, %v5397_v39  ;;  %v5399_v0 = vsel %vm5331_vm8, %v5299_v21, %v5367_v40  ;;  %v5400_v22 = vsel %vm5332_vm2, %v5300_v35, %v5368_v8 }
 0x376   : > { %v5265_v41 = vmul.f32 %v9238_v18, %v5183_v2  ;;  %v5186_v20 = vadd.f32 %v5185_v14, %v9215_v58  ;;  %v5398_v52 = vsel %vm5330_vm9, %v5298_v49, %v5366_v3  ;;  %v9377_v23 = vadd.f32 %v6894_v42, %v9227_v28 }
 0x377   : > { %v5303_v62 = vadd.f32 %v9247_v4, %v5267_v26  ;;  %v5268_v17 = vmul.f32 %v9238_v18, %v5194_v36  ;;  %7068 = vmatmul.mubr.msk.f32.gmra.mrb[92].mxu0 %vm2005_vm0, %v5398_v52 }
 0x378   : > { %v5301_v24 = vadd.f32 %v9247_v4, %v5265_v41  ;;  %v5266_v15 = vmul.f32 %v9238_v18, %v5186_v20  ;;  %7070 = vmatprep.mubr.msk.f32.mxu0 %vm2005_vm0, %v5399_v0 }
 0x379   : > { %v5304_v58 = vadd.f32 %v9247_v4, %v5268_v17  ;;  %vm5335_vm6 = vcmp.ge.f32.partialorder %v5303_v62, 0.0  ;;  %v5371_v1 = vmul.f32 %v9262_v25, %v5303_v62 }
 0x37a   : > { %v5302_v43 = vadd.f32 %v9247_v4, %v5266_v15  ;;  %v7023_v5 = vpop.f32.mrb[100].mxu1  ;;  %vm5333_vm4 = vcmp.ge.f32.partialorder %v5301_v24, 0.0  ;;  %v5369_v44 = vmul.f32 %v9262_v25, %v5301_v24 }
 0x37b   : > { %v5207_v45 = vadd.f32 %v7023_v5, %v9241_v59  ;;  %v5198_v13 = vpop.f32.mrb[101].mxu1  ;;  %7071 = vmatmul.mubr.msk.f32.gmra.mrb[94].mxu0 %vm2005_vm0, %v5400_v22  ;;  %v5372_v59 = vmul.f32 %v9262_v25, %v5304_v58  ;;  %vm5336_vm10 = vcmp.ge.f32.partialorder %v5304_v58, 0.0  ;;  %v5403_v35 = vsel %vm5335_vm6, %v5303_v62, %v5371_v1 }
 0x37c   : > { %v5199_v29 = vadd.f32 %v5198_v13, %v9230_v33  ;;  %v7024_v30 = vpop.f32.mrb[102].mxu1  ;;  %v5401_v38 = vsel %vm5333_vm4, %v5301_v24, %v5369_v44  ;;  %vm5334_vm7 = vcmp.ge.f32.partialorder %v5302_v43, 0.0  ;;  %v5370_v32 = vmul.f32 %v9262_v25, %v5302_v43 }
 0x37d   : > { %v5271_v7 = vmul.f32 %v9238_v18, %v5207_v45  ;;  %v5210_v28 = vadd.f32 %v7024_v30, %v9251_v48  ;;  %v5201_v21 = vpop.f32.mrb[103].mxu1  ;;  %7073 = vmatprep.mubr.msk.f32.mxu0 %vm2005_vm0, %v5401_v38  ;;  %v5404_v55 = vsel %vm5336_vm10, %v5304_v58, %v5372_v59 }
 0x37e   : > { %v5269_v34 = vmul.f32 %v9238_v18, %v5199_v29  ;;  %v5202_v6 = vadd.f32 %v5201_v21, %v9233_v9  ;;  %v5402_v56 = vsel %vm5334_vm7, %v5302_v43, %v5370_v32 }
 0x37f   : > { %v5307_v33 = vadd.f32 %v9247_v4, %v5271_v7  ;;  %v5272_v46 = vmul.f32 %v9238_v18, %v5210_v28  ;;  %7074 = vmatmul.mubr.msk.f32.gmra.mrb[96].mxu0 %vm2005_vm0, %v5402_v56 }
 0x380   : > { %v5305_v48 = vadd.f32 %v9247_v4, %v5269_v34  ;;  %v5270_v49 = vmul.f32 %v9238_v18, %v5202_v6  ;;  %7076 = vmatprep.mubr.msk.f32.mxu0 %vm2005_vm0, %v5403_v35 }
 0x381   : > { %v5308_v19 = vadd.f32 %v9247_v4, %v5272_v46  ;;  %vm5339_vm11 = vcmp.ge.f32.partialorder %v5307_v33, 0.0  ;;  %v5375_v37 = vmul.f32 %v9262_v25, %v5307_v33  ;;  %v9453_v46 = vld [vmem:[%s9921_s4 + $0x6] ss:$0 sm:$0xff] }
 0x382   : > { %v5306_v9 = vadd.f32 %v9247_v4, %v5270_v49  ;;  %v7027_v31 = vpop.f32.mrb[104].mxu1  ;;  %vm5337_vm5 = vcmp.ge.f32.partialorder %v5305_v48, 0.0  ;;  %v5373_v50 = vmul.f32 %v9262_v25, %v5305_v48 }
 0x383   : > { %v5223_v63 = vadd.f32 %v7027_v31, %v9306_v53  ;;  %v5214_v40 = vpop.f32.mrb[105].mxu1  ;;  %7077 = vmatmul.mubr.msk.f32.gmra.mrb[98].mxu0 %vm2005_vm0, %v5404_v55  ;;  %v5376_v10 = vmul.f32 %v9262_v25, %v5308_v19  ;;  %v5407_v41 = vsel %vm5339_vm11, %v5307_v33, %v5375_v37  ;;  %vm5340_vm13 = vcmp.ge.f32.partialorder %v5308_v19, 0.0 }
 0x384   : > { %v5215_v2 = vadd.f32 %v5214_v40, %v9278_v57  ;;  %v7028_v12 = vpop.f32.mrb[106].mxu1  ;;  %v5405_v39 = vsel %vm5337_vm5, %v5305_v48, %v5373_v50  ;;  %vm5338_vm12 = vcmp.ge.f32.partialorder %v5306_v9, 0.0  ;;  %v5374_v3 = vmul.f32 %v9262_v25, %v5306_v9  ;;  %v9458_v48 = vld [vmem:[%s9921_s4 + $0x7] ss:$0 sm:$0xff] }
 0x385   : > { %v5275_v27 = vmul.f32 %v9238_v18, %v5223_v63  ;;  %v5226_v26 = vadd.f32 %v7028_v12, %v9311_v47  ;;  %v5217_v36 = vpop.f32.mrb[107].mxu1  ;;  %7079 = vmatprep.mubr.msk.f32.mxu0 %vm2005_vm0, %v5405_v39  ;;  %v5408_v62 = vsel %vm5340_vm13, %v5308_v19, %v5376_v10 }
 0x386   : > { %v5273_v53 = vmul.f32 %v9238_v18, %v5215_v2  ;;  %v5218_v14 = vadd.f32 %v5217_v36, %v9283_v54  ;;  %v5406_v8 = vsel %vm5338_vm12, %v5306_v9, %v5374_v3 }
 0x387   : > { %v5311_v57 = vadd.f32 %v9247_v4, %v5275_v27  ;;  %v5276_v11 = vmul.f32 %v9238_v18, %v5226_v26  ;;  %7080 = vmatmul.mubr.msk.f32.gmra.mrb[100].mxu0 %vm2005_vm0, %v5406_v8 }
 0x388   : > { %v5309_v47 = vadd.f32 %v9247_v4, %v5273_v53  ;;  %v5274_v20 = vmul.f32 %v9238_v18, %v5218_v14  ;;  %7082 = vmatprep.mubr.msk.f32.mxu0 %vm2005_vm0, %v5407_v41 }
 0x389   : > { %v5312_v54 = vadd.f32 %v9247_v4, %v5276_v11  ;;  %vm5343_vm15 = vcmp.ge.f32.partialorder %v5311_v57, 0.0  ;;  %v5379_v24 = vmul.f32 %v9262_v25, %v5311_v57 }
 0x38a   : > { %v5310_v52 = vadd.f32 %v9247_v4, %v5274_v20  ;;  %v7031_v60 = vpop.f32.mrb[108].mxu1  ;;  %vm5341_vm14 = vcmp.ge.f32.partialorder %v5309_v47, 0.0  ;;  %v5377_v17 = vmul.f32 %v9262_v25, %v5309_v47 }
 0x38b   : > { %v5239_v0 = vadd.f32 %v7031_v60, %v9370_v16  ;;  %v5230_v42 = vpop.f32.mrb[109].mxu1  ;;  %7083 = vmatmul.mubr.msk.f32.gmra.mrb[102].mxu0 %vm2005_vm0, %v5408_v62  ;;  %v5380_v16 = vmul.f32 %v9262_v25, %v5312_v54  ;;  %vm5344_vm3 = vcmp.ge.f32.partialorder %v5312_v54, 0.0  ;;  %v5411_v38 = vsel %vm5343_vm15, %v5311_v57, %v5379_v24 }
 0x38c   : > { %v5231_v15 = vadd.f32 %v5230_v42, %v9334_v51  ;;  %v7032_v58 = vpop.f32.mrb[110].mxu1  ;;  %v5409_v22 = vsel %vm5341_vm14, %v5309_v47, %v5377_v17  ;;  %vm5342_vm1 = vcmp.ge.f32.partialorder %v5310_v52, 0.0  ;;  %v5378_v43 = vmul.f32 %v9262_v25, %v5310_v52 }
 0x38d   : > { %v5279_v5 = vmul.f32 %v9238_v18, %v5239_v0  ;;  %v5242_v44 = vadd.f32 %v7032_v58, %v9377_v23  ;;  %v5233_v45 = vpop.f32.mrb[111].mxu1  ;;  %7085 = vmatprep.mubr.msk.f32.mxu0 %vm2005_vm0, %v5409_v22  ;;  %v5412_v7 = vsel %vm5344_vm3, %v5312_v54, %v5380_v16 }
 0x38e   : > { %v5277_v13 = vmul.f32 %v9238_v18, %v5231_v15  ;;  %v5234_v1 = vadd.f32 %v5233_v45, %v9339_v61  ;;  %v5410_v29 = vsel %vm5342_vm1, %v5310_v52, %v5378_v43 }
 0x38f   : > { %v5315_v51 = vadd.f32 %v9247_v4, %v5279_v5  ;;  %v5280_v30 = vmul.f32 %v9238_v18, %v5242_v44  ;;  %7086 = vmatmul.mubr.msk.f32.gmra.mrb[104].mxu0 %vm2005_vm0, %v5410_v29 }
 0x390   : > { %v5313_v23 = vadd.f32 %v9247_v4, %v5277_v13  ;;  %v5278_v32 = vmul.f32 %v9238_v18, %v5234_v1  ;;  %7088 = vmatprep.mubr.msk.f32.mxu0 %vm2005_vm0, %v5411_v38 }
 0x391   : > { %v5316_v28 = vadd.f32 %v9247_v4, %v5280_v30  ;;  %v5383_v59 = vmul.f32 %v9262_v25, %v5315_v51  ;;  %vm5347_vm2 = vcmp.ge.f32.partialorder %v5315_v51, 0.0 }
 0x392   : > { %v5314_v61 = vadd.f32 %v9247_v4, %v5278_v32  ;;  %vm5345_vm8 = vcmp.ge.f32.partialorder %v5313_v23, 0.0  ;;  %v5381_v21 = vmul.f32 %v9262_v25, %v5313_v23 }
 0x393   : > { %7089 = vmatmul.mubr.msk.f32.gmra.mrb[106].mxu0 %vm2005_vm0, %v5412_v7  ;;  %v5384_v56 = vmul.f32 %v9262_v25, %v5316_v28  ;;  %v5415_v4 = vsel %vm5347_vm2, %v5315_v51, %v5383_v59  ;;  %vm5348_vm4 = vcmp.ge.f32.partialorder %v5316_v28, 0.0 }
 0x394   : > { %v5413_v34 = vsel %vm5345_vm8, %v5313_v23, %v5381_v21  ;;  %vm5346_vm9 = vcmp.ge.f32.partialorder %v5314_v61, 0.0  ;;  %v5382_v6 = vmul.f32 %v9262_v25, %v5314_v61 }
 0x395   : > { %7091 = vmatprep.mubr.msk.f32.mxu0 %vm2005_vm0, %v5413_v34  ;;  %v5416_v33 = vsel %vm5348_vm4, %v5316_v28, %v5384_v56 }
 0x396   : > { %v5414_v18 = vsel %vm5346_vm9, %v5314_v61, %v5382_v6 }
 0x397   : > { %7092 = vmatmul.mubr.msk.f32.gmra.mrb[108].mxu0 %vm2005_vm0, %v5414_v18 }
 0x398   : > { %7094 = vmatprep.mubr.msk.f32.mxu0 %vm2005_vm0, %v5415_v4 }
 0x39b   : > { %7095 = vmatmul.mubr.msk.f32.gmra.mrb[110].mxu0 %vm2005_vm0, %v5416_v33 }
 0x432   : > { %v7051_v35 = vpop.f32.mrb[80].mxu0 }
 0x433   : > { %v5751_v25 = vmul.f32 %v7051_v35, %v9453_v46  ;;  %v5587_v49 = vpop.f32.mrb[81].mxu0 }
 0x434   : > { %v5750_v55 = vmul.f32 %v9453_v46, %v5587_v49 }
 0x435   : > { %v9463_v19 = vadd.f32 %v9458_v48, %v5751_v25 }
 0x436   : > { %v7054_v9 = vpop.f32.mrb[82].mxu0  ;;  %v9466_v31 = vadd.f32 %v9458_v48, %v5750_v55 }
 0x437   : > { %v5753_v50 = vmul.f32 %v7054_v9, %v9453_v46  ;;  %v5597_v63 = vpop.f32.mrb[83].mxu0  ;;  %v5821_v40 = vsel %vm2005_vm0, %v9463_v19, -inf }
 0x438   : > { %v5752_v37 = vmul.f32 %v9453_v46, %v5597_v63  ;;  %5822 = vmax.xlane.f32.xlu1 %v5821_v40  ;;  %v5818_v2 = vsel %vm2005_vm0, %v9466_v31, -inf }
 0x439   : > { %5819 = vmax.xlane.f32.xlu0 %v5818_v2  ;;  %v9475_v12 = vadd.f32 %v9458_v48, %v5753_v50 }
 0x43a   : > { %v7057_v39 = vpop.f32.mrb[84].mxu0  ;;  %v9482_v53 = vadd.f32 %v9458_v48, %v5752_v37 }
 0x43b   : > { %v5607_v3 = vpop.f32.mrb[85].mxu0  ;;  %v5827_v27 = vsel %vm2005_vm0, %v9475_v12, -inf  ;;  %v5755_v26 = vmul.f32 %v7057_v39, %v9453_v46 }
 0x43c   : > { %v5754_v36 = vmul.f32 %v9453_v46, %v5607_v3  ;;  %v5824_v41 = vsel %vm2005_vm0, %v9482_v53, -inf }
 0x43d   : > { %5828 = vmax.xlane.f32.xlu0 %v5827_v27  ;;  %v9494_v20 = vadd.f32 %v9458_v48, %v5755_v26 }
 0x43e   : > { %v7060_v14 = vpop.f32.mrb[86].mxu0  ;;  %v9485_v8 = vadd.f32 %v9458_v48, %v5754_v36 }
 0x43f   : > { %v5757_v10 = vmul.f32 %v7060_v14, %v9453_v46  ;;  %v5617_v57 = vpop.f32.mrb[87].mxu0  ;;  %v5833_v42 = vsel %vm2005_vm0, %v9494_v20, -inf }
 0x440   : > { %v5756_v11 = vmul.f32 %v9453_v46, %v5617_v57  ;;  %v5830_v47 = vsel %vm2005_vm0, %v9485_v8, -inf }
 0x441   : > { %5825 = vmax.xlane.f32.xlu0 %v5824_v41  ;;  %5831 = vmax.xlane.f32.xlu1 %v5830_v47  ;;  %v9500_v62 = vadd.f32 %v9458_v48, %v5757_v10 }
 0x442   : > { %v7063_v54 = vpop.f32.mrb[88].mxu0  ;;  %v9497_v52 = vadd.f32 %v9458_v48, %v5756_v11 }
 0x443   : > { %v5627_v60 = vpop.f32.mrb[89].mxu0  ;;  %v5759_v17 = vmul.f32 %v7063_v54, %v9453_v46  ;;  %v5839_v43 = vsel %vm2005_vm0, %v9500_v62, -inf }
 0x444   : > { %v5758_v0 = vmul.f32 %v9453_v46, %v5627_v60  ;;  %v5836_v24 = vsel %vm2005_vm0, %v9497_v52, -inf }
 0x445   : > { %5834 = vmax.xlane.f32.xlu0 %v5833_v42  ;;  %5837 = vmax.xlane.f32.xlu1 %v5836_v24  ;;  %v9518_v16 = vadd.f32 %v9458_v48, %v5759_v17 }
 0x446   : > { %v7066_v15 = vpop.f32.mrb[90].mxu0  ;;  %v9509_v58 = vadd.f32 %v9458_v48, %v5758_v0 }
 0x447   : > { %v5637_v22 = vpop.f32.mrb[91].mxu0  ;;  %v5761_v5 = vmul.f32 %v7066_v15, %v9453_v46  ;;  %v5845_v38 = vsel %vm2005_vm0, %v9518_v16, -inf }
 0x448   : > { %v5760_v44 = vmul.f32 %v9453_v46, %v5637_v22  ;;  %v5842_v45 = vsel %vm2005_vm0, %v9509_v58, -inf }
 0x449   : > { %5840 = vmax.xlane.f32.xlu0 %v5839_v43  ;;  %5843 = vmax.xlane.f32.xlu1 %v5842_v45  ;;  %v9530_v32 = vadd.f32 %v9458_v48, %v5761_v5 }
 0x44a   : > { %v7069_v13 = vpop.f32.mrb[92].mxu0  ;;  %v9521_v1 = vadd.f32 %v9458_v48, %v5760_v44 }
 0x44b   : > { %v5763_v29 = vmul.f32 %v7069_v13, %v9453_v46  ;;  %v5647_v51 = vpop.f32.mrb[93].mxu0  ;;  %v5851_v6 = vsel %vm2005_vm0, %v9530_v32, -inf }
 0x44c   : > { %v5762_v30 = vmul.f32 %v9453_v46, %v5647_v51  ;;  %v5848_v23 = vsel %vm2005_vm0, %v9521_v1, -inf }
 0x44d   : > { %5846 = vmax.xlane.f32.xlu0 %v5845_v38  ;;  %5849 = vmax.xlane.f32.xlu1 %v5848_v23  ;;  %v9536_v21 = vadd.f32 %v9458_v48, %v5763_v29 }
 0x44e   : > { %v7072_v7 = vpop.f32.mrb[94].mxu0  ;;  %v9533_v28 = vadd.f32 %v9458_v48, %v5762_v30 }
 0x44f   : > { %v5657_v61 = vpop.f32.mrb[95].mxu0  ;;  %v5765_v59 = vmul.f32 %v7072_v7, %v9453_v46  ;;  %v5857_v35 = vsel %vm2005_vm0, %v9536_v21, -inf }
 0x450   : > { %v5764_v34 = vmul.f32 %v9453_v46, %v5657_v61  ;;  %v5854_v18 = vsel %vm2005_vm0, %v9533_v28, -inf }
 0x451   : > { %5852 = vmax.xlane.f32.xlu0 %v5851_v6  ;;  %5855 = vmax.xlane.f32.xlu1 %v5854_v18  ;;  %v9554_v9 = vadd.f32 %v9458_v48, %v5765_v59 }
 0x452   : > { %v7075_v56 = vpop.f32.mrb[96].mxu0  ;;  %v9545_v4 = vadd.f32 %v9458_v48, %v5764_v34 }
 0x453   : > { %v5667_v33 = vpop.f32.mrb[97].mxu0  ;;  %v5767_v25 = vmul.f32 %v7075_v56, %v9453_v46  ;;  %v5863_v39 = vsel %vm2005_vm0, %v9554_v9, -inf }
 0x454   : > { %v5766_v49 = vmul.f32 %v9453_v46, %v5667_v33  ;;  %v5860_v55 = vsel %vm2005_vm0, %v9545_v4, -inf }
 0x455   : > { %5858 = vmax.xlane.f32.xlu0 %v5857_v35  ;;  %5861 = vmax.xlane.f32.xlu1 %v5860_v55  ;;  %v9566_v27 = vadd.f32 %v9458_v48, %v5767_v25 }
 0x456   : > { %v7078_v50 = vpop.f32.mrb[98].mxu0  ;;  %v9557_v63 = vadd.f32 %v9458_v48, %v5766_v49 }
 0x457   : > { %v5769_v40 = vmul.f32 %v7078_v50, %v9453_v46  ;;  %v5677_v37 = vpop.f32.mrb[99].mxu0  ;;  %v5869_v41 = vsel %vm2005_vm0, %v9566_v27, -inf }
 0x458   : > { %v5768_v2 = vmul.f32 %v9453_v46, %v5677_v37  ;;  %v5866_v3 = vsel %vm2005_vm0, %v9557_v63, -inf }
 0x459   : > { %5864 = vmax.xlane.f32.xlu0 %v5863_v39  ;;  %5867 = vmax.xlane.f32.xlu1 %v5866_v3  ;;  %v9572_v10 = vadd.f32 %v9458_v48, %v5769_v40 }
 0x45a   : > { %v7081_v26 = vpop.f32.mrb[100].mxu0  ;;  %v9569_v36 = vadd.f32 %v9458_v48, %v5768_v2 }
 0x45b   : > { %v5687_v14 = vpop.f32.mrb[101].mxu0  ;;  %v5771_v57 = vmul.f32 %v7081_v26, %v9453_v46  ;;  %v5875_v0 = vsel %vm2005_vm0, %v9572_v10, -inf }
 0x45c   : > { %v5770_v11 = vmul.f32 %v9453_v46, %v5687_v14  ;;  %v5872_v47 = vsel %vm2005_vm0, %v9569_v36, -inf }
 0x45d   : > { %5870 = vmax.xlane.f32.xlu0 %v5869_v41  ;;  %5873 = vmax.xlane.f32.xlu1 %v5872_v47  ;;  %v9590_v22 = vadd.f32 %v9458_v48, %v5771_v57 }
 0x45e   : > { %v7084_v54 = vpop.f32.mrb[102].mxu0  ;;  %v9581_v60 = vadd.f32 %v9458_v48, %v5770_v11 }
 0x45f   : > { %v5697_v17 = vpop.f32.mrb[103].mxu0  ;;  %v5773_v42 = vmul.f32 %v7084_v54, %v9453_v46  ;;  %v5881_v29 = vsel %vm2005_vm0, %v9590_v22, -inf }
 0x460   : > { %v5772_v24 = vmul.f32 %v9453_v46, %v5697_v17  ;;  %v5878_v15 = vsel %vm2005_vm0, %v9581_v60, -inf }
 0x461   : > { %5876 = vmax.xlane.f32.xlu0 %v5875_v0  ;;  %5879 = vmax.xlane.f32.xlu1 %v5878_v15  ;;  %v9602_v30 = vadd.f32 %v9458_v48, %v5773_v42 }
 0x462   : > { %v7087_v43 = vpop.f32.mrb[104].mxu0  ;;  %v9593_v5 = vadd.f32 %v9458_v48, %v5772_v24 }
 0x463   : > { %v5775_v44 = vmul.f32 %v7087_v43, %v9453_v46  ;;  %v5707_v45 = vpop.f32.mrb[105].mxu0  ;;  %v5887_v6 = vsel %vm2005_vm0, %v9602_v30, -inf }
 0x464   : > { %v5774_v13 = vmul.f32 %v9453_v46, %v5707_v45  ;;  %v5884_v51 = vsel %vm2005_vm0, %v9593_v5, -inf }
 0x465   : > { %5882 = vmax.xlane.f32.xlu0 %v5881_v29  ;;  %5885 = vmax.xlane.f32.xlu1 %v5884_v51  ;;  %v9608_v61 = vadd.f32 %v9458_v48, %v5775_v44 }
 0x466   : > { %v7090_v38 = vpop.f32.mrb[106].mxu0  ;;  %v9605_v23 = vadd.f32 %v9458_v48, %v5774_v13 }
 0x467   : > { %v5717_v7 = vpop.f32.mrb[107].mxu0  ;;  %v5777_v59 = vmul.f32 %v7090_v38, %v9453_v46  ;;  %v5893_v25 = vsel %vm2005_vm0, %v9608_v61, -inf }
 0x468   : > { %v5776_v34 = vmul.f32 %v9453_v46, %v5717_v7  ;;  %v5890_v18 = vsel %vm2005_vm0, %v9605_v23, -inf }
 0x469   : > { %5888 = vmax.xlane.f32.xlu0 %v5887_v6  ;;  %5891 = vmax.xlane.f32.xlu1 %v5890_v18  ;;  %v9626_v40 = vadd.f32 %v9458_v48, %v5777_v59 }
 0x46a   : > { %v7093_v56 = vpop.f32.mrb[108].mxu0  ;;  %v9617_v33 = vadd.f32 %v9458_v48, %v5776_v34 }
 0x46b   : > { %v5727_v35 = vpop.f32.mrb[109].mxu0  ;;  %v5779_v49 = vmul.f32 %v7093_v56, %v9453_v46  ;;  %v5899_v14 = vsel %vm2005_vm0, %v9626_v40, -inf }
 0x46c   : > { %v5778_v55 = vmul.f32 %v9453_v46, %v5727_v35  ;;  %v5896_v50 = vsel %vm2005_vm0, %v9617_v33, -inf }
 0x46d   : > { %5894 = vmax.xlane.f32.xlu0 %v5893_v25  ;;  %5897 = vmax.xlane.f32.xlu1 %v5896_v50  ;;  %v9638_v11 = vadd.f32 %v9458_v48, %v5779_v49 }
 0x46e   : > { %v7096_v37 = vpop.f32.mrb[110].mxu0  ;;  %v9629_v2 = vadd.f32 %v9458_v48, %v5778_v55 }
 0x46f   : > { %v5781_v39 = vmul.f32 %v7096_v37, %v9453_v46  ;;  %v5737_v3 = vpop.f32.mrb[111].mxu0 }
 0x470   : > { %v5780_v26 = vmul.f32 %v9453_v46, %v5737_v3  ;;  %v5902_v57 = vsel %vm2005_vm0, %v9629_v2, -inf  ;;  %v5905_v46 = vsel %vm2005_vm0, %v9638_v11, -inf }
 0x471   : > { %5900 = vmax.xlane.f32.xlu0 %v5899_v14  ;;  %5903 = vmax.xlane.f32.xlu1 %v5902_v57  ;;  %v9641_v41 = vadd.f32 %v9458_v48, %v5781_v39 }
 0x472   : > { %v9644_v47 = vadd.f32 %v9458_v48, %v5780_v26 }
 0x473   : > { %v5911_v17 = vsel %vm2005_vm0, %v9641_v41, -inf }
 0x474   : > { %v5908_v54 = vsel %vm2005_vm0, %v9644_v47, -inf }
 0x475   : > { %5906 = vmax.xlane.f32.xlu0 %v5905_v46  ;;  %5909 = vmax.xlane.f32.xlu1 %v5908_v54 }
 0x479   : > { %5912 = vmax.xlane.f32.xlu0 %v5911_v17 }
 0x4c5   : > { %v5823_v0 = vpop.xlane.xlu1 %5822 }
 0x4c6   : > { %v5915_v42 = vsub.f32 %v9463_v19, %v5823_v0  ;;  %v5820_v24 = vpop.xlane.xlu0 %5819 }
 0x4c7   : > { %v5914_v15 = vsub.f32 %v9466_v31, %v5820_v24 }
 0x4c8   : > { %v5948_v48 = vmul.f32 1.442695, %v5915_v42 }
 0x4c9   : > { %v5946_v43 = vmul.f32 1.442695, %v5914_v15 }
 0x4ca   : > { %7202 = vpow2.f32 %v5948_v48  ;;  %v5829_v44 = vpop.xlane.xlu0 %5828 }
 0x4cb   : > { %7204 = vpow2.f32 %v5946_v43  ;;  %v5917_v45 = vsub.f32 %v9475_v12, %v5829_v44 }
 0x4cd   : > { %v5952_v13 = vmul.f32 1.442695, %v5917_v45 }
 0x4ce   : > { %v5826_v29 = vpop.xlane.xlu0 %5825  ;;  %v5832_v51 = vpop.xlane.xlu1 %5831 }
 0x4cf   : > { %7206 = vpow2.f32 %v5952_v13  ;;  %v5916_v38 = vsub.f32 %v9482_v53, %v5826_v29  ;;  %v5918_v7 = vsub.f32 %v9485_v8, %v5832_v51 }
 0x4d1   : > { %v5950_v59 = vmul.f32 1.442695, %v5916_v38  ;;  %v5954_v19 = vmul.f32 1.442695, %v5918_v7 }
 0x4d2   : > { %v5835_v34 = vpop.xlane.xlu0 %5834  ;;  %v5838_v6 = vpop.xlane.xlu1 %5837 }
 0x4d3   : > { %7208 = vpow2.f32 %v5950_v59  ;;  %v5919_v31 = vsub.f32 %v9494_v20, %v5835_v34  ;;  %v5920_v18 = vsub.f32 %v9497_v52, %v5838_v6 }
 0x4d4   : > { %v9659_v56 = vpop.eup %7202  ;;  %7210 = vpow2.f32 %v5954_v19 }
 0x4d5   : > { %v9661_v12 = vpop.eup %7204  ;;  %v5956_v35 = vmul.f32 1.442695, %v5919_v31  ;;  %v5958_v25 = vmul.f32 1.442695, %v5920_v18  ;;  %v6013_v53 = vsel %vm2005_vm0, %v9659_v56, 0.0 }
 0x4d6   : > { %v5841_v8 = vpop.xlane.xlu0 %5840  ;;  %v5844_v49 = vpop.xlane.xlu1 %5843  ;;  %6014 = vadd.xlane.f32.xlu0 %v6013_v53  ;;  %v6010_v55 = vsel %vm2005_vm0, %v9661_v12, 0.0 }
 0x4d7   : > { %7212 = vpow2.f32 %v5956_v35  ;;  %v5921_v20 = vsub.f32 %v9500_v62, %v5841_v8  ;;  %v5922_v52 = vsub.f32 %v9509_v58, %v5844_v49  ;;  %6011 = vadd.xlane.f32.xlu1 %v6010_v55 }
 0x4d8   : > { %7214 = vpow2.f32 %v5958_v25 }
 0x4d9   : > { %v9669_v50 = vpop.eup %7206  ;;  %v5960_v37 = vmul.f32 1.442695, %v5921_v20  ;;  %v5962_v39 = vmul.f32 1.442695, %v5922_v52 }
 0x4da   : > { %v5847_v3 = vpop.xlane.xlu0 %5846  ;;  %v5850_v26 = vpop.xlane.xlu1 %5849  ;;  %v6019_v14 = vsel %vm2005_vm0, %v9669_v50, 0.0 }
 0x4db   : > { %7216 = vpow2.f32 %v5960_v37  ;;  %v5923_v57 = vsub.f32 %v9518_v16, %v5847_v3  ;;  %v5924_v46 = vsub.f32 %v9521_v1, %v5850_v26  ;;  %6020 = vadd.xlane.f32.xlu0 %v6019_v14 }
 0x4dc   : > { %7218 = vpow2.f32 %v5962_v39 }
 0x4dd   : > { %v9675_v62 = vpop.eup %7208  ;;  %v5964_v58 = vmul.f32 1.442695, %v5923_v57  ;;  %v5966_v54 = vmul.f32 1.442695, %v5924_v46 }
 0x4de   : > { %v5853_v17 = vpop.xlane.xlu0 %5852  ;;  %v5856_v0 = vpop.xlane.xlu1 %5855  ;;  %v6016_v42 = vsel %vm2005_vm0, %v9675_v62, 0.0 }
 0x4df   : > { %v9679_v24 = vpop.eup %7210  ;;  %7220 = vpow2.f32 %v5964_v58  ;;  %v5925_v15 = vsub.f32 %v9530_v32, %v5853_v17  ;;  %v5926_v16 = vsub.f32 %v9533_v28, %v5856_v0  ;;  %6017 = vadd.xlane.f32.xlu1 %v6016_v42 }
 0x4e0   : > { %7222 = vpow2.f32 %v5966_v54  ;;  %v6022_v29 = vsel %vm2005_vm0, %v9679_v24, 0.0 }
 0x4e1   : > { %v9683_v1 = vpop.eup %7212  ;;  %v5968_v48 = vmul.f32 1.442695, %v5925_v15  ;;  %v5970_v43 = vmul.f32 1.442695, %v5926_v16 }
 0x4e2   : > { %v5859_v44 = vpop.xlane.xlu0 %5858  ;;  %v5862_v45 = vpop.xlane.xlu1 %5861  ;;  %v6025_v13 = vsel %vm2005_vm0, %v9683_v1, 0.0 }
 0x4e3   : > { %v9689_v51 = vpop.eup %7214  ;;  %7224 = vpow2.f32 %v5968_v48  ;;  %v5927_v32 = vsub.f32 %v9536_v21, %v5859_v44  ;;  %v5928_v28 = vsub.f32 %v9545_v4, %v5862_v45  ;;  %6026 = vadd.xlane.f32.xlu0 %v6025_v13  ;;  %6023 = vadd.xlane.f32.xlu1 %v6022_v29 }
 0x4e4   : > { %7226 = vpow2.f32 %v5970_v43  ;;  %v6028_v31 = vsel %vm2005_vm0, %v9689_v51, 0.0 }
 0x4e5   : > { %v9693_v38 = vpop.eup %7216  ;;  %v5972_v7 = vmul.f32 1.442695, %v5927_v32  ;;  %v5974_v59 = vmul.f32 1.442695, %v5928_v28 }
 0x4e6   : > { %v5865_v19 = vpop.xlane.xlu0 %5864  ;;  %v5868_v34 = vpop.xlane.xlu1 %5867  ;;  %v6031_v6 = vsel %vm2005_vm0, %v9693_v38, 0.0 }
 0x4e7   : > { %v9699_v18 = vpop.eup %7218  ;;  %7228 = vpow2.f32 %v5972_v7  ;;  %v5929_v21 = vsub.f32 %v9554_v9, %v5865_v19  ;;  %v5930_v4 = vsub.f32 %v9557_v63, %v5868_v34  ;;  %6032 = vadd.xlane.f32.xlu0 %v6031_v6  ;;  %6029 = vadd.xlane.f32.xlu1 %v6028_v31 }
 0x4e8   : > { %7230 = vpow2.f32 %v5974_v59  ;;  %v6034_v20 = vsel %vm2005_vm0, %v9699_v18, 0.0 }
 0x4e9   : > { %v9703_v35 = vpop.eup %7220  ;;  %v5976_v25 = vmul.f32 1.442695, %v5929_v21  ;;  %v5978_v53 = vmul.f32 1.442695, %v5930_v4 }
 0x4ea   : > { %v5871_v8 = vpop.xlane.xlu0 %5870  ;;  %v5874_v49 = vpop.xlane.xlu1 %5873  ;;  %v6037_v55 = vsel %vm2005_vm0, %v9703_v35, 0.0 }
 0x4eb   : > { %v9709_v52 = vpop.eup %7222  ;;  %7232 = vpow2.f32 %v5976_v25  ;;  %v5931_v9 = vsub.f32 %v9566_v27, %v5871_v8  ;;  %v5932_v63 = vsub.f32 %v9569_v36, %v5874_v49  ;;  %6038 = vadd.xlane.f32.xlu0 %v6037_v55  ;;  %6035 = vadd.xlane.f32.xlu1 %v6034_v20 }
 0x4ec   : > { %7234 = vpow2.f32 %v5978_v53  ;;  %v6040_v46 = vsel %vm2005_vm0, %v9709_v52, 0.0 }
 0x4ed   : > { %v9713_v37 = vpop.eup %7224  ;;  %v5980_v39 = vmul.f32 1.442695, %v5931_v9  ;;  %v5982_v3 = vmul.f32 1.442695, %v5932_v63 }
 0x4ee   : > { %v5877_v26 = vpop.xlane.xlu0 %5876  ;;  %v5880_v14 = vpop.xlane.xlu1 %5879  ;;  %v6043_v57 = vsel %vm2005_vm0, %v9713_v37, 0.0 }
 0x4ef   : > { %v9719_v58 = vpop.eup %7226  ;;  %7236 = vpow2.f32 %v5980_v39  ;;  %v5933_v27 = vsub.f32 %v9572_v10, %v5877_v26  ;;  %v5934_v36 = vsub.f32 %v9581_v60, %v5880_v14  ;;  %6044 = vadd.xlane.f32.xlu0 %v6043_v57  ;;  %6041 = vadd.xlane.f32.xlu1 %v6040_v46 }
 0x4f0   : > { %7238 = vpow2.f32 %v5982_v3  ;;  %v6046_v48 = vsel %vm2005_vm0, %v9719_v58, 0.0 }
 0x4f1   : > { %v9723_v54 = vpop.eup %7228  ;;  %v5984_v17 = vmul.f32 1.442695, %v5933_v27  ;;  %v5986_v0 = vmul.f32 1.442695, %v5934_v36 }
 0x4f2   : > { %v5883_v42 = vpop.xlane.xlu0 %5882  ;;  %v5886_v15 = vpop.xlane.xlu1 %5885  ;;  %v6049_v16 = vsel %vm2005_vm0, %v9723_v54, 0.0 }
 0x4f3   : > { %v9729_v43 = vpop.eup %7230  ;;  %7240 = vpow2.f32 %v5984_v17  ;;  %v5935_v10 = vsub.f32 %v9590_v22, %v5883_v42  ;;  %v5936_v60 = vsub.f32 %v9593_v5, %v5886_v15  ;;  %6050 = vadd.xlane.f32.xlu0 %v6049_v16  ;;  %6047 = vadd.xlane.f32.xlu1 %v6046_v48 }
 0x4f4   : > { %7242 = vpow2.f32 %v5986_v0  ;;  %v6052_v7 = vsel %vm2005_vm0, %v9729_v43, 0.0 }
 0x4f5   : > { %v9733_v44 = vpop.eup %7232  ;;  %v5988_v45 = vmul.f32 1.442695, %v5935_v10  ;;  %v5990_v13 = vmul.f32 1.442695, %v5936_v60 }
 0x4f6   : > { %v5889_v29 = vpop.xlane.xlu0 %5888  ;;  %v5892_v32 = vpop.xlane.xlu1 %5891  ;;  %v6055_v28 = vsel %vm2005_vm0, %v9733_v44, 0.0 }
 0x4f7   : > { %v9739_v59 = vpop.eup %7234  ;;  %7244 = vpow2.f32 %v5988_v45  ;;  %v5937_v22 = vsub.f32 %v9602_v30, %v5889_v29  ;;  %v5938_v5 = vsub.f32 %v9605_v23, %v5892_v32  ;;  %6056 = vadd.xlane.f32.xlu0 %v6055_v28  ;;  %6053 = vadd.xlane.f32.xlu1 %v6052_v7 }
 0x4f8   : > { %7246 = vpow2.f32 %v5990_v13  ;;  %v6058_v25 = vsel %vm2005_vm0, %v9739_v59, 0.0 }
 0x4f9   : > { %v9743_v19 = vpop.eup %7236  ;;  %v5992_v34 = vmul.f32 1.442695, %v5937_v22  ;;  %v5994_v6 = vmul.f32 1.442695, %v5938_v5 }
 0x4fa   : > { %v5895_v31 = vpop.xlane.xlu0 %5894  ;;  %v5898_v21 = vpop.xlane.xlu1 %5897  ;;  %v6061_v4 = vsel %vm2005_vm0, %v9743_v19, 0.0 }
 0x4fb   : > { %v9749_v53 = vpop.eup %7238  ;;  %7248 = vpow2.f32 %v5992_v34  ;;  %v5939_v30 = vsub.f32 %v9608_v61, %v5895_v31  ;;  %v5940_v23 = vsub.f32 %v9617_v33, %v5898_v21  ;;  %6062 = vadd.xlane.f32.xlu0 %v6061_v4  ;;  %6059 = vadd.xlane.f32.xlu1 %v6058_v25 }
 0x4fc   : > { %7250 = vpow2.f32 %v5994_v6  ;;  %v6064_v39 = vsel %vm2005_vm0, %v9749_v53, 0.0 }
 0x4fd   : > { %v9753_v8 = vpop.eup %7240  ;;  %v5996_v49 = vmul.f32 1.442695, %v5939_v30  ;;  %v5998_v55 = vmul.f32 1.442695, %v5940_v23 }
 0x4fe   : > { %v5901_v20 = vpop.xlane.xlu0 %5900  ;;  %v5904_v9 = vpop.xlane.xlu1 %5903  ;;  %v6067_v63 = vsel %vm2005_vm0, %v9753_v8, 0.0 }
 0x4ff   : > { %v9759_v3 = vpop.eup %7242  ;;  %7252 = vpow2.f32 %v5996_v49  ;;  %v5941_v61 = vsub.f32 %v9626_v40, %v5901_v20  ;;  %v5942_v33 = vsub.f32 %v9629_v2, %v5904_v9  ;;  %6068 = vadd.xlane.f32.xlu0 %v6067_v63  ;;  %6065 = vadd.xlane.f32.xlu1 %v6064_v39 }
 0x500   : > { %7254 = vpow2.f32 %v5998_v55  ;;  %v6070_v17 = vsel %vm2005_vm0, %v9759_v3, 0.0 }
 0x501   : > { %v9763_v26 = vpop.eup %7244  ;;  %v6000_v14 = vmul.f32 1.442695, %v5941_v61  ;;  %v6002_v57 = vmul.f32 1.442695, %v5942_v33 }
 0x502   : > { %v5907_v46 = vpop.xlane.xlu0 %5906  ;;  %v5910_v27 = vpop.xlane.xlu1 %5909  ;;  %v6073_v36 = vsel %vm2005_vm0, %v9763_v26, 0.0 }
 0x503   : > { %v9769_v0 = vpop.eup %7246  ;;  %7256 = vpow2.f32 %v6000_v14  ;;  %v5943_v40 = vsub.f32 %v9638_v11, %v5907_v46  ;;  %v5944_v2 = vsub.f32 %v9644_v47, %v5910_v27  ;;  %6074 = vadd.xlane.f32.xlu0 %v6073_v36  ;;  %6071 = vadd.xlane.f32.xlu1 %v6070_v17 }
 0x504   : > { %7258 = vpow2.f32 %v6002_v57  ;;  %v6076_v60 = vsel %vm2005_vm0, %v9769_v0, 0.0 }
 0x505   : > { %v9773_v42 = vpop.eup %7248  ;;  %v6004_v15 = vmul.f32 1.442695, %v5943_v40  ;;  %v6006_v16 = vmul.f32 1.442695, %v5944_v2 }
 0x506   : > { %v5913_v48 = vpop.xlane.xlu0 %5912  ;;  %v6079_v10 = vsel %vm2005_vm0, %v9773_v42, 0.0  ;;  %v9779_v45 = vpop.eup %7250 }
 0x507   : > { %7260 = vpow2.f32 %v6004_v15  ;;  %v5945_v11 = vsub.f32 %v9641_v41, %v5913_v48  ;;  %6080 = vadd.xlane.f32.xlu0 %v6079_v10  ;;  %6077 = vadd.xlane.f32.xlu1 %v6076_v60  ;;  %v6082_v32 = vsel %vm2005_vm0, %v9779_v45, 0.0 }
 0x508   : > { %7262 = vpow2.f32 %v6006_v16 }
 0x509   : > { %v9782_v47 = vpop.eup %7252  ;;  %v6008_v13 = vmul.f32 1.442695, %v5945_v11 }
 0x50a   : > { %v6085_v29 = vsel %vm2005_vm0, %v9782_v47, 0.0  ;;  %v9788_v28 = vpop.eup %7254 }
 0x50b   : > { %7264 = vpow2.f32 %v6008_v13  ;;  %6086 = vadd.xlane.f32.xlu0 %v6085_v29  ;;  %6083 = vadd.xlane.f32.xlu1 %v6082_v32  ;;  %v6088_v22 = vsel %vm2005_vm0, %v9788_v28, 0.0 }
 0x50d   : > { %v9790_v7 = vpop.eup %7256 }
 0x50e   : > { %v6091_v41 = vsel %vm2005_vm0, %v9790_v7, 0.0  ;;  %v9796_v5 = vpop.eup %7258 }
 0x50f   : > { %6092 = vadd.xlane.f32.xlu0 %v6091_v41  ;;  %6089 = vadd.xlane.f32.xlu1 %v6088_v22  ;;  %v6094_v31 = vsel %vm2005_vm0, %v9796_v5, 0.0 }
 0x511   : > { %v9798_v34 = vpop.eup %7260 }
 0x512   : > { %v6097_v6 = vsel %vm2005_vm0, %v9798_v34, 0.0  ;;  %v9804_v21 = vpop.eup %7262 }
 0x513   : > { %6098 = vadd.xlane.f32.xlu0 %v6097_v6  ;;  %6095 = vadd.xlane.f32.xlu1 %v6094_v31  ;;  %v6100_v30 = vsel %vm2005_vm0, %v9804_v21, 0.0 }
 0x515   : > { %v9806_v4 = vpop.eup %7264 }
 0x516   : > { %v6103_v25 = vsel %vm2005_vm0, %v9806_v4, 0.0 }
 0x517   : > { %6104 = vadd.xlane.f32.xlu0 %v6103_v25  ;;  %6101 = vadd.xlane.f32.xlu1 %v6100_v30 }
 0x563   : > { %v6015_v23 = vpop.xlane.xlu0 %6014 }
 0x564   : > { %7266 = vrcp.f32 %v6015_v23  ;;  %v6012_v49 = vpop.xlane.xlu1 %6011 }
 0x565   : > { %7268 = vrcp.f32 %v6012_v49 }
 0x568   : > { %v6021_v55 = vpop.xlane.xlu0 %6020 }
 0x569   : > { %7270 = vrcp.f32 %v6021_v55 }
 0x56c   : > { %v6018_v20 = vpop.xlane.xlu1 %6017 }
 0x56d   : > { %7272 = vrcp.f32 %v6018_v20 }
 0x56e   : > { %v7267_v9 = vpop.eup %7266 }
 0x56f   : > { %v7269_v63 = vpop.eup %7268  ;;  %v6139_v39 = vmul.f32 %v7267_v9, %v9659_v56 }
 0x570   : > { %v6138_v61 = vmul.f32 %v7269_v63, %v9661_v12  ;;  %v6027_v33 = vpop.xlane.xlu0 %6026  ;;  %v6024_v14 = vpop.xlane.xlu1 %6023 }
 0x571   : > { %6171 = vst.msk [vmem:[%s9816_s9 + $0x8] sm:$0xff] %vm2005_vm0, %v6139_v39  ;;  %7274 = vrcp.f32 %v6027_v33 }
 0x572   : > { %6170 = vst.msk [vmem:[%s9816_s9] sm:$0xff] %vm2005_vm0, %v6138_v61  ;;  %7276 = vrcp.f32 %v6024_v14 }
 0x573   : > { %v7271_v57 = vpop.eup %7270 }
 0x574   : > { %v6141_v46 = vmul.f32 %v7271_v57, %v9669_v50  ;;  %v6033_v27 = vpop.xlane.xlu0 %6032  ;;  %v6030_v36 = vpop.xlane.xlu1 %6029 }
 0x575   : > { %7278 = vrcp.f32 %v6033_v27 }
 0x576   : > { %6173 = vst.msk [vmem:[%s9816_s9 + $0x18] sm:$0xff] %vm2005_vm0, %v6141_v46  ;;  %7280 = vrcp.f32 %v6030_v36 }
 0x577   : > { %v7273_v56 = vpop.eup %7272 }
 0x578   : > { %v6140_v12 = vmul.f32 %v7273_v56, %v9675_v62  ;;  %v6039_v17 = vpop.xlane.xlu0 %6038  ;;  %v6036_v40 = vpop.xlane.xlu1 %6035 }
 0x579   : > { %7282 = vrcp.f32 %v6039_v17 }
 0x57a   : > { %6172 = vst.msk [vmem:[%s9816_s9 + $0x10] sm:$0xff] %vm2005_vm0, %v6140_v12  ;;  %7284 = vrcp.f32 %v6036_v40 }
 0x57b   : > { %v7275_v2 = vpop.eup %7274 }
 0x57c   : > { %v7277_v15 = vpop.eup %7276  ;;  %v6143_v50 = vmul.f32 %v7275_v2, %v9683_v1  ;;  %v6045_v16 = vpop.xlane.xlu0 %6044 }
 0x57d   : > { %v6042_v48 = vpop.xlane.xlu1 %6041  ;;  %v6142_v10 = vmul.f32 %v7277_v15, %v9679_v24  ;;  %7286 = vrcp.f32 %v6045_v16 }
 0x57e   : > { %6175 = vst.msk [vmem:[%s9816_s9 + $0x28] sm:$0xff] %vm2005_vm0, %v6143_v50  ;;  %7288 = vrcp.f32 %v6042_v48 }
 0x57f   : > { %v7279_v62 = vpop.eup %7278  ;;  %6174 = vst.msk [vmem:[%s9816_s9 + $0x20] sm:$0xff] %vm2005_vm0, %v6142_v10 }
 0x580   : > { %v7281_v60 = vpop.eup %7280  ;;  %v6145_v11 = vmul.f32 %v7279_v62, %v9693_v38  ;;  %v6051_v13 = vpop.xlane.xlu0 %6050 }
 0x581   : > { %v6048_v29 = vpop.xlane.xlu1 %6047  ;;  %v6144_v1 = vmul.f32 %v7281_v60, %v9689_v51  ;;  %7290 = vrcp.f32 %v6051_v13 }
 0x582   : > { %6177 = vst.msk [vmem:[%s9816_s9 + $0x38] sm:$0xff] %vm2005_vm0, %v6145_v11  ;;  %7292 = vrcp.f32 %v6048_v29 }
 0x583   : > { %v7283_v24 = vpop.eup %7282  ;;  %6176 = vst.msk [vmem:[%s9816_s9 + $0x30] sm:$0xff] %vm2005_vm0, %v6144_v1 }
 0x584   : > { %v7285_v32 = vpop.eup %7284  ;;  %v6147_v41 = vmul.f32 %v7283_v24, %v9703_v35  ;;  %v6057_v22 = vpop.xlane.xlu0 %6056 }
 0x585   : > { %v6054_v6 = vpop.xlane.xlu1 %6053  ;;  %v6146_v38 = vmul.f32 %v7285_v32, %v9699_v18  ;;  %7294 = vrcp.f32 %v6057_v22 }
 0x586   : > { %6179 = vst.msk [vmem:[%s9816_s9 + $0x48] sm:$0xff] %vm2005_vm0, %v6147_v41  ;;  %7296 = vrcp.f32 %v6054_v6 }
 0x587   : > { %v7287_v51 = vpop.eup %7286  ;;  %6178 = vst.msk [vmem:[%s9816_s9 + $0x40] sm:$0xff] %vm2005_vm0, %v6146_v38 }
 0x588   : > { %v7289_v31 = vpop.eup %7288  ;;  %v6149_v25 = vmul.f32 %v7287_v51, %v9713_v37  ;;  %v6063_v30 = vpop.xlane.xlu0 %6062 }
 0x589   : > { %v6060_v23 = vpop.xlane.xlu1 %6059  ;;  %v6148_v35 = vmul.f32 %v7289_v31, %v9709_v52  ;;  %7298 = vrcp.f32 %v6063_v30 }
 0x58a   : > { %6181 = vst.msk [vmem:[%s9816_s9 + $0x58] sm:$0xff] %vm2005_vm0, %v6149_v25  ;;  %7300 = vrcp.f32 %v6060_v23 }
 0x58b   : > { %v7291_v18 = vpop.eup %7290  ;;  %6180 = vst.msk [vmem:[%s9816_s9 + $0x50] sm:$0xff] %vm2005_vm0, %v6148_v35 }
 0x58c   : > { %v7293_v49 = vpop.eup %7292  ;;  %v6151_v55 = vmul.f32 %v7291_v18, %v9723_v54  ;;  %v6069_v20 = vpop.xlane.xlu0 %6068 }
 0x58d   : > { %v6066_v9 = vpop.xlane.xlu1 %6065  ;;  %v6150_v37 = vmul.f32 %v7293_v49, %v9719_v58  ;;  %7302 = vrcp.f32 %v6069_v20 }
 0x58e   : > { %6183 = vst.msk [vmem:[%s9816_s9 + $0x68] sm:$0xff] %vm2005_vm0, %v6151_v55  ;;  %7304 = vrcp.f32 %v6066_v9 }
 0x58f   : > { %v7295_v52 = vpop.eup %7294  ;;  %6182 = vst.msk [vmem:[%s9816_s9 + $0x60] sm:$0xff] %vm2005_vm0, %v6150_v37 }
 0x590   : > { %v7297_v63 = vpop.eup %7296  ;;  %v6153_v39 = vmul.f32 %v7295_v52, %v9733_v44  ;;  %v6075_v61 = vpop.xlane.xlu0 %6074 }
 0x591   : > { %v6072_v33 = vpop.xlane.xlu1 %6071  ;;  %v6152_v54 = vmul.f32 %v7297_v63, %v9729_v43  ;;  %7306 = vrcp.f32 %v6075_v61 }
 0x592   : > { %6185 = vst.msk [vmem:[%s9816_s9 + $0x78] sm:$0xff] %vm2005_vm0, %v6153_v39  ;;  %7308 = vrcp.f32 %v6072_v33 }
 0x593   : > { %v7299_v58 = vpop.eup %7298  ;;  %6184 = vst.msk [vmem:[%s9816_s9 + $0x70] sm:$0xff] %vm2005_vm0, %v6152_v54 }
 0x594   : > { %v7301_v14 = vpop.eup %7300  ;;  %v6155_v57 = vmul.f32 %v7299_v58, %v9743_v19  ;;  %v6081_v46 = vpop.xlane.xlu0 %6080 }
 0x595   : > { %v6078_v27 = vpop.xlane.xlu1 %6077  ;;  %v6154_v44 = vmul.f32 %v7301_v14, %v9739_v59  ;;  %7310 = vrcp.f32 %v6081_v46 }
 0x596   : > { %6187 = vst.msk [vmem:[%s9816_s9 + $0x88] sm:$0xff] %vm2005_vm0, %v6155_v57  ;;  %7312 = vrcp.f32 %v6078_v27 }
 0x597   : > { %v7303_v43 = vpop.eup %7302  ;;  %6186 = vst.msk [vmem:[%s9816_s9 + $0x80] sm:$0xff] %vm2005_vm0, %v6154_v44 }
 0x598   : > { %v7305_v36 = vpop.eup %7304  ;;  %v6157_v56 = vmul.f32 %v7303_v43, %v9753_v8  ;;  %v6087_v12 = vpop.xlane.xlu0 %6086 }
 0x599   : > { %v6084_v17 = vpop.xlane.xlu1 %6083  ;;  %v6156_v19 = vmul.f32 %v7305_v36, %v9749_v53  ;;  %7314 = vrcp.f32 %v6087_v12 }
 0x59a   : > { %6189 = vst.msk [vmem:[%s9816_s9 + $0x98] sm:$0xff] %vm2005_vm0, %v6157_v56  ;;  %7316 = vrcp.f32 %v6084_v17 }
 0x59b   : > { %v7307_v59 = vpop.eup %7306  ;;  %6188 = vst.msk [vmem:[%s9816_s9 + $0x90] sm:$0xff] %vm2005_vm0, %v6156_v19 }
 0x59c   : > { %v7309_v40 = vpop.eup %7308  ;;  %v6159_v2 = vmul.f32 %v7307_v59, %v9763_v26  ;;  %v6093_v15 = vpop.xlane.xlu0 %6092 }
 0x59d   : > { %v6090_v50 = vpop.xlane.xlu1 %6089  ;;  %v6158_v8 = vmul.f32 %v7309_v40, %v9759_v3  ;;  %7318 = vrcp.f32 %v6093_v15 }
 0x59e   : > { %6191 = vst.msk [vmem:[%s9816_s9 + $0xa8] sm:$0xff] %vm2005_vm0, %v6159_v2  ;;  %7320 = vrcp.f32 %v6090_v50 }
 0x59f   : > { %v7311_v53 = vpop.eup %7310  ;;  %6190 = vst.msk [vmem:[%s9816_s9 + $0xa0] sm:$0xff] %vm2005_vm0, %v6158_v8 }
 0x5a0   : > { %v7313_v16 = vpop.eup %7312  ;;  %v6161_v48 = vmul.f32 %v7311_v53, %v9773_v42  ;;  %v6099_v10 = vpop.xlane.xlu0 %6098 }
 0x5a1   : > { %v6096_v62 = vpop.xlane.xlu1 %6095  ;;  %v6160_v26 = vmul.f32 %v7313_v16, %v9769_v0  ;;  %7322 = vrcp.f32 %v6099_v10 }
 0x5a2   : > { %6193 = vst.msk [vmem:[%s9816_s9 + $0xb8] sm:$0xff] %vm2005_vm0, %v6161_v48  ;;  %7324 = vrcp.f32 %v6096_v62 }
 0x5a3   : > { %v7315_v3 = vpop.eup %7314  ;;  %6192 = vst.msk [vmem:[%s9816_s9 + $0xb0] sm:$0xff] %vm2005_vm0, %v6160_v26 }
 0x5a4   : > { %v7317_v60 = vpop.eup %7316  ;;  %v6163_v11 = vmul.f32 %v7315_v3, %v9782_v47  ;;  %v6105_v13 = vpop.xlane.xlu0 %6104 }
 0x5a5   : > { %v6102_v29 = vpop.xlane.xlu1 %6101  ;;  %v6162_v42 = vmul.f32 %v7317_v60, %v9779_v45  ;;  %7326 = vrcp.f32 %v6105_v13 }
 0x5a6   : > { %6195 = vst.msk [vmem:[%s9816_s9 + $0xc8] sm:$0xff] %vm2005_vm0, %v6163_v11  ;;  %7328 = vrcp.f32 %v6102_v29 }
 0x5a7   : > { %v7319_v0 = vpop.eup %7318  ;;  %6194 = vst.msk [vmem:[%s9816_s9 + $0xc0] sm:$0xff] %vm2005_vm0, %v6162_v42 }
 0x5a8   : > { %v7321_v1 = vpop.eup %7320  ;;  %v6165_v24 = vmul.f32 %v7319_v0, %v9790_v7 }
 0x5a9   : > { %v6164_v47 = vmul.f32 %v7321_v1, %v9788_v28 }
 0x5aa   : > { %6197 = vst.msk [vmem:[%s9816_s9 + $0xd8] sm:$0xff] %vm2005_vm0, %v6165_v24 }
 0x5ab   : > { %v7323_v32 = vpop.eup %7322  ;;  %6196 = vst.msk [vmem:[%s9816_s9 + $0xd0] sm:$0xff] %vm2005_vm0, %v6164_v47 }
 0x5ac   : > { %v7325_v45 = vpop.eup %7324  ;;  %v6167_v41 = vmul.f32 %v7323_v32, %v9798_v34 }
 0x5ad   : > { %v6166_v22 = vmul.f32 %v7325_v45, %v9796_v5 }
 0x5ae   : > { %6199 = vst.msk [vmem:[%s9816_s9 + $0xe8] sm:$0xff] %vm2005_vm0, %v6167_v41 }
 0x5af   : > { %v7327_v6 = vpop.eup %7326  ;;  %6198 = vst.msk [vmem:[%s9816_s9 + $0xe0] sm:$0xff] %vm2005_vm0, %v6166_v22 }
 0x5b0   : > { %v7329_v38 = vpop.eup %7328  ;;  %v6169_v7 = vmul.f32 %v7327_v6, %v9806_v4 }
 0x5b1   : > { %v6168_v28 = vmul.f32 %v7329_v38, %v9804_v21 }
 0x5b2   : > { %6201 = vst.msk [vmem:[%s9816_s9 + $0xf8] sm:$0xff] %vm2005_vm0, %v6169_v7 }
 0x5b3   : > { %6200 = vst.msk [vmem:[%s9816_s9 + $0xf0] sm:$0xff] %vm2005_vm0, %v6168_v28 }
 0x5b4 PF: > { %s15_s18 = sadd.s32 1, %s7420_s18  }
 0x5b5   : > { %p12_p4 = scmp.ge.s32.totalorder %s15_s18, 4  }
 0x5b7   :  { %14 = sbr.rel (!%p12_p4) target bundleno = 1 (0x1), region = 73 }

</bundles_post_ra>
